<compile_context>
chip_gen: v5e
topology: v5e:2x2
jax: 0.10.0
libtpu: 0.0.40
codegen_flags: <defaults>
</compile_context>

<pallas_src>
import functools
import math

import jax
import jax.numpy as jnp
from jax import lax
from jax.experimental import pallas as pl
from jax.experimental.pallas import tpu as pltpu

LN_EPS = 1e-5  # torch.nn.LayerNorm default


def _layernorm(x, g, b):
    # x: (N, C); g, b: (1, C).  Biased variance (matches torch LayerNorm).
    mu = jnp.mean(x, axis=-1, keepdims=True)
    xc = x - mu
    var = jnp.mean(xc * xc, axis=-1, keepdims=True)
    inv = lax.rsqrt(var + LN_EPS)
    return xc * inv * g + b


# erf via Abramowitz & Stegun 7.1.26 (max abs err ~1.5e-7): only exp/mul/add/where,
# which all lower on Mosaic; keeps parity with torch's exact erf GELU.
_ERF_A1 = 0.254829592
_ERF_A2 = -0.284496736
_ERF_A3 = 1.421413741
_ERF_A4 = -1.453152027
_ERF_A5 = 1.061405429
_ERF_P = 0.3275911


def _erf_poly(x):
    sign = jnp.where(x < 0.0, jnp.float32(-1.0), jnp.float32(1.0))
    ax = jnp.abs(x)
    t = 1.0 / (1.0 + _ERF_P * ax)
    poly = ((((_ERF_A5 * t + _ERF_A4) * t + _ERF_A3) * t + _ERF_A2) * t + _ERF_A1) * t
    return sign * (1.0 - poly * jnp.exp(-ax * ax))


def _gelu_exact_kernel(x):
    # torch.nn.GELU() default: exact erf-based GELU (erf approximated to ~1e-7).
    return 0.5 * x * (1.0 + _erf_poly(x * (1.0 / math.sqrt(2.0))))


def _gelu_exact_ref(x):
    return 0.5 * x * (1.0 + lax.erf(x * (1.0 / math.sqrt(2.0))))


def decoder_block_kernel(
    x_ref, alpha_ref, beta_ref,
    ln1_g_ref, ln1_b_ref, wqkv_ref,
    ln2_g_ref, ln2_b_ref,
    ln3_g_ref, ln3_b_ref,
    w1_ref, b1_ref, wd_ref, bd_ref, w3_ref, b3_ref,
    out_ref,
    *, n_heads, is_causal, has_cond,
):
    x3 = x_ref[...].astype(jnp.float32)                 # (Bb, T, C)
    Bb, T, C = x3.shape
    BT = Bb * T
    d = C // n_heads
    x2 = x3.reshape(BT, C)

    # ---- x = self_attention(norm1(x)) + x ------------------------------------
    h = _layernorm(x2, ln1_g_ref[...], ln1_b_ref[...])              # (BT, C) f32
    # bf16 MXU operands, f32 accumulation; 1/sqrt(d) is folded into the Q
    # columns of wqkv at the call boundary.
    qkv = jnp.dot(h.astype(jnp.bfloat16), wqkv_ref[...],
                  preferred_element_type=jnp.float32)               # (BT, 3C) f32

    if is_causal:
        row = lax.broadcasted_iota(jnp.int32, (T, T), 0)
        col = lax.broadcasted_iota(jnp.int32, (T, T), 1)
        neg_mask = jnp.where(col > row, jnp.float32(-1e30), jnp.float32(0.0))

    # Per-head attention, batched over Bb via 3-D einsums (single leading batch
    # dim).  Head outputs stay in vregs and are lane-concatenated: no VMEM
    # scratch, no masked partial stores.
    head_outs = []
    for hh in range(n_heads):                           # static unroll, small H
        q_h = qkv[:, hh * d:(hh + 1) * d].reshape(Bb, T, d).astype(jnp.bfloat16)
        k_h = qkv[:, C + hh * d:C + (hh + 1) * d].reshape(Bb, T, d).astype(jnp.bfloat16)
        v_h = qkv[:, 2 * C + hh * d:2 * C + (hh + 1) * d].reshape(Bb, T, d).astype(jnp.bfloat16)
        s = jnp.einsum('bqd,bkd->bqk', q_h, k_h,
                       preferred_element_type=jnp.float32)          # (Bb, T, T) f32
        if is_causal:
            s = s + neg_mask
        s = s - jnp.max(s, axis=-1, keepdims=True)
        p = jnp.exp(s)
        p = p * pl.reciprocal(jnp.sum(p, axis=-1, keepdims=True), approx=True)
        o_h = jnp.einsum('bqk,bkd->bqd', p.astype(jnp.bfloat16), v_h,
                         preferred_element_type=jnp.float32)        # (Bb, T, d) f32
        head_outs.append(o_h.reshape(BT, d))
    attn = head_outs[0] if n_heads == 1 else jnp.concatenate(head_outs, axis=-1)
    x2 = attn + x2                                       # residual

    # ---- x = norm2(x); FiLM conditioning -------------------------------------
    x2 = _layernorm(x2, ln2_g_ref[...], ln2_b_ref[...])
    if has_cond:
        x3 = x2.reshape(Bb, T, C)
        x3 = x3 * (1.0 + alpha_ref[...]) + beta_ref[...]   # (Bb,1,C) broadcast over T
        x2 = x3.reshape(BT, C)

    # ---- x = mlp(norm3(x)) + x  (MLPSepConv) ----------------------------------
    hf = _layernorm(x2, ln3_g_ref[...], ln3_b_ref[...])
    # pointwise Conv1d k=1 -> matmul (bf16 MXU, f32 acc)
    h1 = jnp.dot(hf.astype(jnp.bfloat16), w1_ref[...],
                 preferred_element_type=jnp.float32) + b1_ref[...]  # (BT, MC)
    MC = h1.shape[-1]

    # depthwise Conv1d k=3, padding='same' along T: sublane rolls (XLU) with
    # rows that wrapped across a sequence (== batch-block) boundary zeroed.
    t_idx = lax.broadcasted_iota(jnp.int32, (BT, MC), 0) % T
    h_prev = jnp.where(t_idx == 0, 0.0, pltpu.roll(h1, shift=1, axis=0))           # x[t-1]
    h_next = jnp.where(t_idx == T - 1, 0.0, pltpu.roll(h1, shift=BT - 1, axis=0))  # x[t+1]
    hdw = (h_prev * wd_ref[0:1, :]
           + h1 * wd_ref[1:2, :]
           + h_next * wd_ref[2:3, :]) + bd_ref[...]
    hg = _gelu_exact_kernel(hdw)

    # pointwise Conv1d k=1 -> matmul back to C
    h2 = jnp.dot(hg.astype(jnp.bfloat16), w3_ref[...],
                 preferred_element_type=jnp.float32) + b3_ref[...]  # (BT, C)
    # TODO(synk): nn.Dropout is identity at inference; training-mode dropout not implemented.

    out_ref[...] = (h2 + x2).reshape(Bb, T, C).astype(out_ref.dtype)


def _const2(g):
    return (0, 0)


def _default_target_rows():
    # v5e MXU is 128x128: 128 flattened rows already fill it; v6e/v7x want 256.
    try:
        kind = jax.devices()[0].device_kind.lower()
    except Exception:
        return 256
    if "v5 lite" in kind or "v5e" in kind or "v5lite" in kind:
        return 128
    return 256


def _choose_batch_block(B, T, target_rows):
    # Largest divisor of B with Bb*T <= target_rows, while keeping >= 2 grid
    # steps whenever B >= 2 so the 'parallel' axis can shard across 2 TCs (v7x).
    want = max(1, target_rows // T)
    best = 1
    for cand in range(1, B + 1):
        if B % cand != 0 or cand > want:
            continue
        if B >= 2 and B // cand < 2:
            continue
        best = cand
    return best


def _estimate_vmem_bytes(Bb, T, C, MC, n_heads):
    bt = Bb * T
    weights = 2 * (C * 3 * C + C * MC + MC * C)          # bf16, single-buffered
    smalls = 4 * (8 * C + 5 * MC)                        # LN params / biases / wd
    pipeline = 2 * 2 * bt * C * 4 + 2 * 4 * Bb * C * 4   # x/out + alpha/beta, double-buffered
    interm = 4 * bt * (6 * C + 2 * MC) + 4 * n_heads * Bb * T * T
    return weights + smalls + pipeline + interm


def decoder_block(x, cond, params, *, n_heads, is_causal, batch_block=None):
    B, T, C = x.shape
    MC = params["w1"].shape[-1]
    head_dim = C // n_heads
    has_cond = cond is not None and cond.shape[-1] > 0

    target_rows = _default_target_rows()
    Bb = _choose_batch_block(B, T, target_rows) if batch_block is None else batch_block
    assert B % Bb == 0

    # Fold the attention scale into the Q columns of wqkv; cast the three large
    # MXU weights to bf16 once at the call boundary (f32 accumulation in-kernel).
    scale = 1.0 / math.sqrt(head_dim)
    wqkv = jnp.concatenate(
        [params["wqkv"][:, :C] * scale, params["wqkv"][:, C:]], axis=1
    ).astype(jnp.bfloat16)
    w1 = params["w1"].astype(jnp.bfloat16)
    w3 = params["w3"].astype(jnp.bfloat16)

    # FiLM projection hoisted out of the kernel (one XLA matmul over all B).
    if has_cond:
        film = cond.astype(jnp.float32) @ params["wc"] + params["bc"]   # (B, 2C)
        alpha = film[:, :C].reshape(B, 1, C)
        beta = film[:, C:].reshape(B, 1, C)
    else:
        alpha = jnp.zeros((B, 1, C), jnp.float32)
        beta = jnp.zeros((B, 1, C), jnp.float32)

    kernel = functools.partial(decoder_block_kernel, n_heads=n_heads,
                               is_causal=is_causal, has_cond=has_cond)

    const_args = [
        params["ln1_g"], params["ln1_b"], wqkv,
        params["ln2_g"], params["ln2_b"],
        params["ln3_g"], params["ln3_b"],
        w1, params["b1"], params["wd"], params["bd"],
        w3, params["b3"],
    ]
    args = [x, alpha, beta] + const_args

    est = _estimate_vmem_bytes(Bb, T, C, MC, n_heads)
    vmem_limit = int(min(max(2 * est, 32 * 2 ** 20), 100 * 2 ** 20))
    # TODO(synk): at production T/C/MC re-tile the MLP/attention over T (the
    # fully-resident fused block will not fit v7x's 64 MiB VMEM).

    grid = (B // Bb,)
    out_shape = jax.ShapeDtypeStruct((B, T, C), x.dtype)

    def call(single_buffer_weights):
        const_kwargs = {}
        if single_buffer_weights:
            # Constant-index-map inputs: single-buffer them (same block every
            # grid step), halving weight VMEM.
            const_kwargs = dict(pipeline_mode=pl.Buffered(1))

        def cspec(a):
            return pl.BlockSpec(a.shape, _const2, **const_kwargs)

        in_specs = (
            [pl.BlockSpec((Bb, T, C), lambda g: (g, 0, 0)),     # x (Bb batch rows/step)
             pl.BlockSpec((Bb, 1, C), lambda g: (g, 0, 0)),     # FiLM alpha
             pl.BlockSpec((Bb, 1, C), lambda g: (g, 0, 0))]     # FiLM beta
            + [cspec(a) for a in const_args]
        )
        return pl.pallas_call(
            kernel,
            out_shape=out_shape,
            grid=grid,
            in_specs=in_specs,
            out_specs=pl.BlockSpec((Bb, T, C), lambda g: (g, 0, 0)),
            compiler_params=pltpu.CompilerParams(
                dimension_semantics=("parallel",),
                vmem_limit_bytes=vmem_limit),
        )(*args)

    try:
        return call(True)
    except Exception:
        # Fallback if this JAX build rejects pipeline_mode=pl.Buffered(1).
        return call(False)


# ------------------------- pure-JAX reference ---------------------------------
def decoder_block_ref(x, cond, p, *, n_heads, is_causal):
    def ln(t, g, b):
        mu = t.mean(-1, keepdims=True)
        var = ((t - mu) ** 2).mean(-1, keepdims=True)
        return (t - mu) / jnp.sqrt(var + LN_EPS) * g + b

    B, T, C = x.shape
    hd = C // n_heads
    h = ln(x, p["ln1_g"], p["ln1_b"])
    qkv = h @ p["wqkv"]
    q, k, v = jnp.split(qkv, 3, axis=-1)
    qh = q.reshape(B, T, n_heads, hd).transpose(0, 2, 1, 3)
    kh = k.reshape(B, T, n_heads, hd).transpose(0, 2, 1, 3)
    vh = v.reshape(B, T, n_heads, hd).transpose(0, 2, 1, 3)
    s = jnp.einsum("bhqd,bhkd->bhqk", qh, kh) / math.sqrt(hd)
    if is_causal:
        row = lax.broadcasted_iota(jnp.int32, (T, T), 0)
        col = lax.broadcasted_iota(jnp.int32, (T, T), 1)
        s = s + jnp.where(col > row, jnp.float32(-1e30), jnp.float32(0.0))
    s = s - jnp.max(s, axis=-1, keepdims=True)
    pa = jnp.exp(s)
    pa = pa / jnp.sum(pa, axis=-1, keepdims=True)
    o = jnp.einsum("bhqk,bhkd->bhqd", pa, vh)
    o = o.transpose(0, 2, 1, 3).reshape(B, T, C)
    x = o + x
    x = ln(x, p["ln2_g"], p["ln2_b"])
    ab = cond @ p["wc"] + p["bc"]
    alpha, beta = ab[:, :C], ab[:, C:]
    x = x * (1.0 + alpha[:, None, :]) + beta[:, None, :]
    h = ln(x, p["ln3_g"], p["ln3_b"])
    h1 = h @ p["w1"] + p["b1"]
    hp = jnp.pad(h1, ((0, 0), (1, 1), (0, 0)))
    hdw = (hp[:, 0:T] * p["wd"][0:1]
           + hp[:, 1:T + 1] * p["wd"][1:2]
           + hp[:, 2:T + 2] * p["wd"][2:3]) + p["bd"]
    hg = _gelu_exact_ref(hdw)
    h2 = hg @ p["w3"] + p["b3"]
    return h2 + x


if __name__ == "__main__":
    B, T, C = 2, 16, 128         # embed_dim must be a multiple of 64 (n_heads = C // 64)
    Dc = 32                      # cond_dim
    mult = 2                     # mlp_multiplier
    MC = mult * C
    n_heads = C // 64
    is_causal = True

    key = jax.random.PRNGKey(0)
    ks = jax.random.split(key, 12)

    def w(k, shape, fan_in):
        return jax.random.normal(k, shape, jnp.float32) * (1.0 / math.sqrt(fan_in))

    params = {
        "ln1_g": jnp.ones((1, C), jnp.float32), "ln1_b": jnp.zeros((1, C), jnp.float32),
        "ln2_g": jnp.ones((1, C), jnp.float32), "ln2_b": jnp.zeros((1, C), jnp.float32),
        "ln3_g": jnp.ones((1, C), jnp.float32), "ln3_b": jnp.zeros((1, C), jnp.float32),
        "wqkv": w(ks[0], (C, 3 * C), C),                       # Linear(C, 3C, bias=False)
        "wc": w(ks[1], (Dc, 2 * C), Dc),                       # Linear(cond_dim, 2C)
        "bc": w(ks[2], (1, 2 * C), Dc),
        "w1": w(ks[3], (C, MC), C),                            # Conv1d(C, MC, k=1)
        "b1": w(ks[4], (1, MC), C),
        "wd": w(ks[5], (3, MC), 3),                            # depthwise Conv1d(MC, MC, k=3)
        "bd": w(ks[6], (1, MC), 3),
        "w3": w(ks[7], (MC, C), MC),                           # Conv1d(MC, C, k=1)
        "b3": w(ks[8], (1, C), MC),
    }

    x = jax.random.normal(ks[9], (B, T, C), jnp.float32)
    cond = jax.random.normal(ks[10], (B, Dc), jnp.float32)

    out = decoder_block(x, cond, params, n_heads=n_heads, is_causal=is_causal)
    out = jax.block_until_ready(out)

    ref = decoder_block_ref(x, cond, params, n_heads=n_heads, is_causal=is_causal)
    assert out.shape == (B, T, C)
    assert bool(jnp.all(jnp.isfinite(out)))
    # Kernel uses bf16 MXU operands with f32 accumulation (fp32 reference) plus
    # an approx EUP reciprocal in the softmax, so compare with a relative-L2
    # metric and a loose elementwise bound.
    max_abs = float(jnp.max(jnp.abs(out - ref)))
    rel_l2 = float(jnp.sqrt(jnp.sum((out - ref) ** 2) / jnp.sum(ref ** 2)))
    assert rel_l2 < 2e-2 and max_abs < 2.5e-1, (rel_l2, max_abs)
    print("KERNEL_OK")
</pallas_src>

<mosaic_0001>
module attributes {stable_mosaic.version = 11 : i64} {
  func.func @decoder_block_kernel(%arg0: i32, %arg1: memref<1x16x128xf32, #tpu.memory_space<vmem>>, %arg2: memref<1x1x128xf32, #tpu.memory_space<vmem>>, %arg3: memref<1x1x128xf32, #tpu.memory_space<vmem>>, %arg4: memref<1x128xf32, #tpu.memory_space<vmem>>, %arg5: memref<1x128xf32, #tpu.memory_space<vmem>>, %arg6: memref<128x384xbf16, #tpu.memory_space<vmem>>, %arg7: memref<1x128xf32, #tpu.memory_space<vmem>>, %arg8: memref<1x128xf32, #tpu.memory_space<vmem>>, %arg9: memref<1x128xf32, #tpu.memory_space<vmem>>, %arg10: memref<1x128xf32, #tpu.memory_space<vmem>>, %arg11: memref<128x256xbf16, #tpu.memory_space<vmem>>, %arg12: memref<1x256xf32, #tpu.memory_space<vmem>>, %arg13: memref<3x256xf32, #tpu.memory_space<vmem>>, %arg14: memref<1x256xf32, #tpu.memory_space<vmem>>, %arg15: memref<256x128xbf16, #tpu.memory_space<vmem>>, %arg16: memref<1x128xf32, #tpu.memory_space<vmem>>, %arg17: memref<1x16x128xf32, #tpu.memory_space<vmem>>) attributes {dimension_semantics = [#tpu.dimension_semantics<parallel>], iteration_bounds = array<i64: 2>, scalar_prefetch = 0 : i64, scratch_operands = 0 : i64, tpu.core_type = #tpu.core_type<tc>, window_params = [{transform_indices = @transform_0, window_bounds = array<i64: 1, 16, 128>}, {transform_indices = @transform_1, window_bounds = array<i64: 1, 1, 128>}, {transform_indices = @transform_2, window_bounds = array<i64: 1, 1, 128>}, {pipeline_mode = #tpu.pipeline_mode<synchronous>, transform_indices = @transform_3, window_bounds = array<i64: 1, 128>}, {pipeline_mode = #tpu.pipeline_mode<synchronous>, transform_indices = @transform_4, window_bounds = array<i64: 1, 128>}, {pipeline_mode = #tpu.pipeline_mode<synchronous>, transform_indices = @transform_5, window_bounds = array<i64: 128, 384>}, {pipeline_mode = #tpu.pipeline_mode<synchronous>, transform_indices = @transform_6, window_bounds = array<i64: 1, 128>}, {pipeline_mode = #tpu.pipeline_mode<synchronous>, transform_indices = @transform_7, window_bounds = array<i64: 1, 128>}, {pipeline_mode = #tpu.pipeline_mode<synchronous>, transform_indices = @transform_8, window_bounds = array<i64: 1, 128>}, {pipeline_mode = #tpu.pipeline_mode<synchronous>, transform_indices = @transform_9, window_bounds = array<i64: 1, 128>}, {pipeline_mode = #tpu.pipeline_mode<synchronous>, transform_indices = @transform_10, window_bounds = array<i64: 128, 256>}, {pipeline_mode = #tpu.pipeline_mode<synchronous>, transform_indices = @transform_11, window_bounds = array<i64: 1, 256>}, {pipeline_mode = #tpu.pipeline_mode<synchronous>, transform_indices = @transform_12, window_bounds = array<i64: 3, 256>}, {pipeline_mode = #tpu.pipeline_mode<synchronous>, transform_indices = @transform_13, window_bounds = array<i64: 1, 256>}, {pipeline_mode = #tpu.pipeline_mode<synchronous>, transform_indices = @transform_14, window_bounds = array<i64: 256, 128>}, {pipeline_mode = #tpu.pipeline_mode<synchronous>, transform_indices = @transform_15, window_bounds = array<i64: 1, 128>}, {transform_indices = @transform_16, window_bounds = array<i64: 1, 16, 128>}]} {
    %c0 = arith.constant 0 : index
    %c0_0 = arith.constant 0 : index
    %c0_1 = arith.constant 0 : index
    %0 = vector.load %arg1[%c0, %c0_0, %c0_1] : memref<1x16x128xf32, #tpu.memory_space<vmem>>, vector<1x16x128xf32>
    %1 = vector.shape_cast %0 : vector<1x16x128xf32> to vector<16x128xf32>
    %c0_2 = arith.constant 0 : index
    %c0_3 = arith.constant 0 : index
    %2 = vector.load %arg4[%c0_2, %c0_3] : memref<1x128xf32, #tpu.memory_space<vmem>>, vector<1x128xf32>
    %c0_4 = arith.constant 0 : index
    %c0_5 = arith.constant 0 : index
    %3 = vector.load %arg5[%c0_4, %c0_5] : memref<1x128xf32, #tpu.memory_space<vmem>>, vector<1x128xf32>
    %cst = arith.constant dense<0.000000e+00> : vector<16xf32>
    %4 = vector.multi_reduction <add>, %1, %cst [1] : vector<16x128xf32> to vector<16xf32>
    %5 = vector.shape_cast %4 : vector<16xf32> to vector<16x1xf32>
    %cst_6 = arith.constant 1.280000e+02 : f32
    %6 = vector.broadcast %cst_6 : f32 to vector<16x1xf32>
    %7 = arith.divf %5, %6 : vector<16x1xf32>
    %8 = vector.broadcast %7 : vector<16x1xf32> to vector<16x128xf32>
    %9 = arith.subf %1, %8 : vector<16x128xf32>
    %10 = arith.mulf %9, %9 : vector<16x128xf32>
    %cst_7 = arith.constant dense<0.000000e+00> : vector<16xf32>
    %11 = vector.multi_reduction <add>, %10, %cst_7 [1] : vector<16x128xf32> to vector<16xf32>
    %12 = vector.shape_cast %11 : vector<16xf32> to vector<16x1xf32>
    %cst_8 = arith.constant 1.280000e+02 : f32
    %13 = vector.broadcast %cst_8 : f32 to vector<16x1xf32>
    %14 = arith.divf %12, %13 : vector<16x1xf32>
    %cst_9 = arith.constant 9.99999974E-6 : f32
    %15 = vector.broadcast %cst_9 : f32 to vector<16x1xf32>
    %16 = arith.addf %14, %15 : vector<16x1xf32>
    %17 = math.rsqrt %16 : vector<16x1xf32>
    %18 = vector.broadcast %17 : vector<16x1xf32> to vector<16x128xf32>
    %19 = arith.mulf %9, %18 : vector<16x128xf32>
    %20 = vector.broadcast %2 : vector<1x128xf32> to vector<16x128xf32>
    %21 = arith.mulf %19, %20 : vector<16x128xf32>
    %22 = vector.broadcast %3 : vector<1x128xf32> to vector<16x128xf32>
    %23 = arith.addf %21, %22 : vector<16x128xf32>
    %24 = arith.truncf %23 : vector<16x128xf32> to vector<16x128xbf16>
    %c0_10 = arith.constant 0 : index
    %c0_11 = arith.constant 0 : index
    %25 = vector.load %arg6[%c0_10, %c0_11] : memref<128x384xbf16, #tpu.memory_space<vmem>>, vector<128x384xbf16>
    %cst_12 = arith.constant dense<0.000000e+00> : vector<16x384xf32>
    %26 = tpu.matmul %24, %25, %cst_12 {dimension_numbers = #tpu.dot_dimension_numbers<[1], [0], [0], [1], [0, 0, 1, 1], [], []>} : vector<16x128xbf16>, vector<128x384xbf16>, vector<16x384xf32> -> vector<16x384xf32>
    %27 = tpu.iota {dimensions = array<i32: 0>} : vector<16x16xi32>
    %28 = tpu.iota {dimensions = array<i32: 1>} : vector<16x16xi32>
    %29 = arith.cmpi sgt, %28, %27 : vector<16x16xi32>
    %cst_13 = arith.constant -1.000000e+30 : f32
    %cst_14 = arith.constant 0.000000e+00 : f32
    %30 = vector.broadcast %cst_13 : f32 to vector<16x16xf32>
    %31 = vector.broadcast %cst_14 : f32 to vector<16x16xf32>
    %32 = arith.select %29, %30, %31 : vector<16x16xi1>, vector<16x16xf32>
    %33 = vector.extract_strided_slice %26 {offsets = [0, 0], sizes = [16, 64], strides = [1, 1]} : vector<16x384xf32> to vector<16x64xf32>
    %34 = vector.shape_cast %33 : vector<16x64xf32> to vector<1x16x64xf32>
    %35 = arith.truncf %34 : vector<1x16x64xf32> to vector<1x16x64xbf16>
    %36 = vector.extract_strided_slice %26 {offsets = [0, 128], sizes = [16, 64], strides = [1, 1]} : vector<16x384xf32> to vector<16x64xf32>
    %37 = vector.shape_cast %36 : vector<16x64xf32> to vector<1x16x64xf32>
    %38 = arith.truncf %37 : vector<1x16x64xf32> to vector<1x16x64xbf16>
    %39 = vector.extract_strided_slice %26 {offsets = [0, 256], sizes = [16, 64], strides = [1, 1]} : vector<16x384xf32> to vector<16x64xf32>
    %40 = vector.shape_cast %39 : vector<16x64xf32> to vector<1x16x64xf32>
    %41 = arith.truncf %40 : vector<1x16x64xf32> to vector<1x16x64xbf16>
    "tpu.trace_start"() <{level = 10 : i32, message = "bqd,bkd->bqk"}> : () -> ()
    %cst_15 = arith.constant dense<0.000000e+00> : vector<1x16x16xf32>
    %42 = tpu.matmul %35, %38, %cst_15 {dimension_numbers = #tpu.dot_dimension_numbers<[2], [2], [1], [1], [0, 0, 0, 1, 1, 1], [0], [0]>} : vector<1x16x64xbf16>, vector<1x16x64xbf16>, vector<1x16x16xf32> -> vector<1x16x16xf32>
    "tpu.trace_stop"() : () -> ()
    %43 = vector.shape_cast %32 : vector<16x16xf32> to vector<1x16x16xf32>
    %44 = arith.addf %42, %43 : vector<1x16x16xf32>
    %cst_16 = arith.constant dense<0xFF800000> : vector<1x16xf32>
    %45 = vector.multi_reduction <maximumf>, %44, %cst_16 [2] : vector<1x16x16xf32> to vector<1x16xf32>
    %46 = vector.shape_cast %45 : vector<1x16xf32> to vector<1x16x1xf32>
    %47 = vector.broadcast %46 : vector<1x16x1xf32> to vector<1x16x16xf32>
    %48 = arith.subf %44, %47 : vector<1x16x16xf32>
    %49 = math.exp %48 : vector<1x16x16xf32>
    %cst_17 = arith.constant dense<0.000000e+00> : vector<1x16xf32>
    %50 = vector.multi_reduction <add>, %49, %cst_17 [2] : vector<1x16x16xf32> to vector<1x16xf32>
    %51 = vector.shape_cast %50 : vector<1x16xf32> to vector<1x16x1xf32>
    %52 = tpu.reciprocal %51 {approx = true} : vector<1x16x1xf32> -> vector<1x16x1xf32>
    %53 = vector.broadcast %52 : vector<1x16x1xf32> to vector<1x16x16xf32>
    %54 = arith.mulf %49, %53 : vector<1x16x16xf32>
    %55 = arith.truncf %54 : vector<1x16x16xf32> to vector<1x16x16xbf16>
    "tpu.trace_start"() <{level = 10 : i32, message = "bqk,bkd->bqd"}> : () -> ()
    %cst_18 = arith.constant dense<0.000000e+00> : vector<1x16x64xf32>
    %56 = tpu.matmul %55, %41, %cst_18 {dimension_numbers = #tpu.dot_dimension_numbers<[2], [1], [1], [2], [0, 0, 0, 1, 1, 2], [0], [0]>} : vector<1x16x16xbf16>, vector<1x16x64xbf16>, vector<1x16x64xf32> -> vector<1x16x64xf32>
    "tpu.trace_stop"() : () -> ()
    %57 = vector.shape_cast %56 : vector<1x16x64xf32> to vector<16x64xf32>
    %58 = vector.extract_strided_slice %26 {offsets = [0, 64], sizes = [16, 64], strides = [1, 1]} : vector<16x384xf32> to vector<16x64xf32>
    %59 = vector.shape_cast %58 : vector<16x64xf32> to vector<1x16x64xf32>
    %60 = arith.truncf %59 : vector<1x16x64xf32> to vector<1x16x64xbf16>
    %61 = vector.extract_strided_slice %26 {offsets = [0, 192], sizes = [16, 64], strides = [1, 1]} : vector<16x384xf32> to vector<16x64xf32>
    %62 = vector.shape_cast %61 : vector<16x64xf32> to vector<1x16x64xf32>
    %63 = arith.truncf %62 : vector<1x16x64xf32> to vector<1x16x64xbf16>
    %64 = vector.extract_strided_slice %26 {offsets = [0, 320], sizes = [16, 64], strides = [1, 1]} : vector<16x384xf32> to vector<16x64xf32>
    %65 = vector.shape_cast %64 : vector<16x64xf32> to vector<1x16x64xf32>
    %66 = arith.truncf %65 : vector<1x16x64xf32> to vector<1x16x64xbf16>
    "tpu.trace_start"() <{level = 10 : i32, message = "bqd,bkd->bqk"}> : () -> ()
    %cst_19 = arith.constant dense<0.000000e+00> : vector<1x16x16xf32>
    %67 = tpu.matmul %60, %63, %cst_19 {dimension_numbers = #tpu.dot_dimension_numbers<[2], [2], [1], [1], [0, 0, 0, 1, 1, 1], [0], [0]>} : vector<1x16x64xbf16>, vector<1x16x64xbf16>, vector<1x16x16xf32> -> vector<1x16x16xf32>
    "tpu.trace_stop"() : () -> ()
    %68 = vector.shape_cast %32 : vector<16x16xf32> to vector<1x16x16xf32>
    %69 = arith.addf %67, %68 : vector<1x16x16xf32>
    %cst_20 = arith.constant dense<0xFF800000> : vector<1x16xf32>
    %70 = vector.multi_reduction <maximumf>, %69, %cst_20 [2] : vector<1x16x16xf32> to vector<1x16xf32>
    %71 = vector.shape_cast %70 : vector<1x16xf32> to vector<1x16x1xf32>
    %72 = vector.broadcast %71 : vector<1x16x1xf32> to vector<1x16x16xf32>
    %73 = arith.subf %69, %72 : vector<1x16x16xf32>
    %74 = math.exp %73 : vector<1x16x16xf32>
    %cst_21 = arith.constant dense<0.000000e+00> : vector<1x16xf32>
    %75 = vector.multi_reduction <add>, %74, %cst_21 [2] : vector<1x16x16xf32> to vector<1x16xf32>
    %76 = vector.shape_cast %75 : vector<1x16xf32> to vector<1x16x1xf32>
    %77 = tpu.reciprocal %76 {approx = true} : vector<1x16x1xf32> -> vector<1x16x1xf32>
    %78 = vector.broadcast %77 : vector<1x16x1xf32> to vector<1x16x16xf32>
    %79 = arith.mulf %74, %78 : vector<1x16x16xf32>
    %80 = arith.truncf %79 : vector<1x16x16xf32> to vector<1x16x16xbf16>
    "tpu.trace_start"() <{level = 10 : i32, message = "bqk,bkd->bqd"}> : () -> ()
    %cst_22 = arith.constant dense<0.000000e+00> : vector<1x16x64xf32>
    %81 = tpu.matmul %80, %66, %cst_22 {dimension_numbers = #tpu.dot_dimension_numbers<[2], [1], [1], [2], [0, 0, 0, 1, 1, 2], [0], [0]>} : vector<1x16x16xbf16>, vector<1x16x64xbf16>, vector<1x16x64xf32> -> vector<1x16x64xf32>
    "tpu.trace_stop"() : () -> ()
    %82 = vector.shape_cast %81 : vector<1x16x64xf32> to vector<16x64xf32>
    %83 = tpu.concatenate %57, %82 in 1 : vector<16x64xf32>, vector<16x64xf32> -> vector<16x128xf32>
    %84 = arith.addf %83, %1 : vector<16x128xf32>
    %c0_23 = arith.constant 0 : index
    %c0_24 = arith.constant 0 : index
    %85 = vector.load %arg7[%c0_23, %c0_24] : memref<1x128xf32, #tpu.memory_space<vmem>>, vector<1x128xf32>
    %c0_25 = arith.constant 0 : index
    %c0_26 = arith.constant 0 : index
    %86 = vector.load %arg8[%c0_25, %c0_26] : memref<1x128xf32, #tpu.memory_space<vmem>>, vector<1x128xf32>
    %cst_27 = arith.constant dense<0.000000e+00> : vector<16xf32>
    %87 = vector.multi_reduction <add>, %84, %cst_27 [1] : vector<16x128xf32> to vector<16xf32>
    %88 = vector.shape_cast %87 : vector<16xf32> to vector<16x1xf32>
    %cst_28 = arith.constant 1.280000e+02 : f32
    %89 = vector.broadcast %cst_28 : f32 to vector<16x1xf32>
    %90 = arith.divf %88, %89 : vector<16x1xf32>
    %91 = vector.broadcast %90 : vector<16x1xf32> to vector<16x128xf32>
    %92 = arith.subf %84, %91 : vector<16x128xf32>
    %93 = arith.mulf %92, %92 : vector<16x128xf32>
    %cst_29 = arith.constant dense<0.000000e+00> : vector<16xf32>
    %94 = vector.multi_reduction <add>, %93, %cst_29 [1] : vector<16x128xf32> to vector<16xf32>
    %95 = vector.shape_cast %94 : vector<16xf32> to vector<16x1xf32>
    %cst_30 = arith.constant 1.280000e+02 : f32
    %96 = vector.broadcast %cst_30 : f32 to vector<16x1xf32>
    %97 = arith.divf %95, %96 : vector<16x1xf32>
    %cst_31 = arith.constant 9.99999974E-6 : f32
    %98 = vector.broadcast %cst_31 : f32 to vector<16x1xf32>
    %99 = arith.addf %97, %98 : vector<16x1xf32>
    %100 = math.rsqrt %99 : vector<16x1xf32>
    %101 = vector.broadcast %100 : vector<16x1xf32> to vector<16x128xf32>
    %102 = arith.mulf %92, %101 : vector<16x128xf32>
    %103 = vector.broadcast %85 : vector<1x128xf32> to vector<16x128xf32>
    %104 = arith.mulf %102, %103 : vector<16x128xf32>
    %105 = vector.broadcast %86 : vector<1x128xf32> to vector<16x128xf32>
    %106 = arith.addf %104, %105 : vector<16x128xf32>
    %107 = vector.shape_cast %106 : vector<16x128xf32> to vector<1x16x128xf32>
    %c0_32 = arith.constant 0 : index
    %c0_33 = arith.constant 0 : index
    %c0_34 = arith.constant 0 : index
    %108 = vector.load %arg2[%c0_32, %c0_33, %c0_34] : memref<1x1x128xf32, #tpu.memory_space<vmem>>, vector<1x1x128xf32>
    %cst_35 = arith.constant 1.000000e+00 : f32
    %109 = vector.broadcast %cst_35 : f32 to vector<1x1x128xf32>
    %110 = arith.addf %109, %108 : vector<1x1x128xf32>
    %111 = vector.broadcast %110 : vector<1x1x128xf32> to vector<1x16x128xf32>
    %112 = arith.mulf %107, %111 : vector<1x16x128xf32>
    %c0_36 = arith.constant 0 : index
    %c0_37 = arith.constant 0 : index
    %c0_38 = arith.constant 0 : index
    %113 = vector.load %arg3[%c0_36, %c0_37, %c0_38] : memref<1x1x128xf32, #tpu.memory_space<vmem>>, vector<1x1x128xf32>
    %114 = vector.broadcast %113 : vector<1x1x128xf32> to vector<1x16x128xf32>
    %115 = arith.addf %112, %114 : vector<1x16x128xf32>
    %116 = vector.shape_cast %115 : vector<1x16x128xf32> to vector<16x128xf32>
    %c0_39 = arith.constant 0 : index
    %c0_40 = arith.constant 0 : index
    %117 = vector.load %arg9[%c0_39, %c0_40] : memref<1x128xf32, #tpu.memory_space<vmem>>, vector<1x128xf32>
    %c0_41 = arith.constant 0 : index
    %c0_42 = arith.constant 0 : index
    %118 = vector.load %arg10[%c0_41, %c0_42] : memref<1x128xf32, #tpu.memory_space<vmem>>, vector<1x128xf32>
    %cst_43 = arith.constant dense<0.000000e+00> : vector<16xf32>
    %119 = vector.multi_reduction <add>, %116, %cst_43 [1] : vector<16x128xf32> to vector<16xf32>
    %120 = vector.shape_cast %119 : vector<16xf32> to vector<16x1xf32>
    %cst_44 = arith.constant 1.280000e+02 : f32
    %121 = vector.broadcast %cst_44 : f32 to vector<16x1xf32>
    %122 = arith.divf %120, %121 : vector<16x1xf32>
    %123 = vector.broadcast %122 : vector<16x1xf32> to vector<16x128xf32>
    %124 = arith.subf %116, %123 : vector<16x128xf32>
    %125 = arith.mulf %124, %124 : vector<16x128xf32>
    %cst_45 = arith.constant dense<0.000000e+00> : vector<16xf32>
    %126 = vector.multi_reduction <add>, %125, %cst_45 [1] : vector<16x128xf32> to vector<16xf32>
    %127 = vector.shape_cast %126 : vector<16xf32> to vector<16x1xf32>
    %cst_46 = arith.constant 1.280000e+02 : f32
    %128 = vector.broadcast %cst_46 : f32 to vector<16x1xf32>
    %129 = arith.divf %127, %128 : vector<16x1xf32>
    %cst_47 = arith.constant 9.99999974E-6 : f32
    %130 = vector.broadcast %cst_47 : f32 to vector<16x1xf32>
    %131 = arith.addf %129, %130 : vector<16x1xf32>
    %132 = math.rsqrt %131 : vector<16x1xf32>
    %133 = vector.broadcast %132 : vector<16x1xf32> to vector<16x128xf32>
    %134 = arith.mulf %124, %133 : vector<16x128xf32>
    %135 = vector.broadcast %117 : vector<1x128xf32> to vector<16x128xf32>
    %136 = arith.mulf %134, %135 : vector<16x128xf32>
    %137 = vector.broadcast %118 : vector<1x128xf32> to vector<16x128xf32>
    %138 = arith.addf %136, %137 : vector<16x128xf32>
    %139 = arith.truncf %138 : vector<16x128xf32> to vector<16x128xbf16>
    %c0_48 = arith.constant 0 : index
    %c0_49 = arith.constant 0 : index
    %140 = vector.load %arg11[%c0_48, %c0_49] : memref<128x256xbf16, #tpu.memory_space<vmem>>, vector<128x256xbf16>
    %cst_50 = arith.constant dense<0.000000e+00> : vector<16x256xf32>
    %141 = tpu.matmul %139, %140, %cst_50 {dimension_numbers = #tpu.dot_dimension_numbers<[1], [0], [0], [1], [0, 0, 1, 1], [], []>} : vector<16x128xbf16>, vector<128x256xbf16>, vector<16x256xf32> -> vector<16x256xf32>
    %c0_51 = arith.constant 0 : index
    %c0_52 = arith.constant 0 : index
    %142 = vector.load %arg12[%c0_51, %c0_52] : memref<1x256xf32, #tpu.memory_space<vmem>>, vector<1x256xf32>
    %143 = vector.broadcast %142 : vector<1x256xf32> to vector<16x256xf32>
    %144 = arith.addf %141, %143 : vector<16x256xf32>
    %145 = tpu.iota {dimensions = array<i32: 0>} : vector<16x256xi32>
    %c16_i32 = arith.constant 16 : i32
    %c0_i32 = arith.constant 0 : i32
    %146 = arith.cmpi eq, %c16_i32, %c0_i32 : i32
    %c1_i32 = arith.constant 1 : i32
    %147 = arith.select %146, %c1_i32, %c16_i32 : i32
    %148 = vector.broadcast %147 : i32 to vector<16x256xi32>
    %149 = arith.remsi %145, %148 : vector<16x256xi32>
    %c0_i32_53 = arith.constant 0 : i32
    %150 = vector.broadcast %c0_i32_53 : i32 to vector<16x256xi32>
    %151 = arith.cmpi ne, %149, %150 : vector<16x256xi32>
    %c0_i32_54 = arith.constant 0 : i32
    %152 = vector.broadcast %c0_i32_54 : i32 to vector<16x256xi32>
    %153 = arith.cmpi slt, %149, %152 : vector<16x256xi32>
    %c0_i32_55 = arith.constant 0 : i32
    %154 = arith.cmpi slt, %147, %c0_i32_55 : i32
    %155 = vector.broadcast %154 : i1 to vector<16x256xi1>
    %156 = vector.broadcast %155 : vector<16x256xi1> to vector<16x256xi1>
    %157 = arith.xori %153, %156 : vector<16x256xi1>
    %158 = arith.andi %157, %151 : vector<16x256xi1>
    %159 = vector.broadcast %147 : i32 to vector<16x256xi32>
    %160 = arith.addi %149, %159 : vector<16x256xi32>
    %161 = arith.select %158, %160, %149 : vector<16x256xi1>, vector<16x256xi32>
    %c0_i32_56 = arith.constant 0 : i32
    %162 = vector.broadcast %c0_i32_56 : i32 to vector<16x256xi32>
    %163 = arith.cmpi eq, %161, %162 : vector<16x256xi32>
    %c1_i32_57 = arith.constant 1 : i32
    %164 = tpu.dynamic_rotate %144 by %c1_i32_57 dim 0 : vector<16x256xf32>, i32 -> vector<16x256xf32>
    %cst_58 = arith.constant 0.000000e+00 : f32
    %165 = vector.broadcast %cst_58 : f32 to vector<16x256xf32>
    %166 = arith.select %163, %165, %164 : vector<16x256xi1>, vector<16x256xf32>
    %c15_i32 = arith.constant 15 : i32
    %167 = vector.broadcast %c15_i32 : i32 to vector<16x256xi32>
    %168 = arith.cmpi eq, %161, %167 : vector<16x256xi32>
    %c15_i32_59 = arith.constant 15 : i32
    %169 = tpu.dynamic_rotate %144 by %c15_i32_59 dim 0 : vector<16x256xf32>, i32 -> vector<16x256xf32>
    %cst_60 = arith.constant 0.000000e+00 : f32
    %170 = vector.broadcast %cst_60 : f32 to vector<16x256xf32>
    %171 = arith.select %168, %170, %169 : vector<16x256xi1>, vector<16x256xf32>
    %c0_61 = arith.constant 0 : index
    %c0_62 = arith.constant 0 : index
    %172 = vector.load %arg13[%c0_61, %c0_62] : memref<3x256xf32, #tpu.memory_space<vmem>>, vector<1x256xf32>
    %173 = vector.broadcast %172 : vector<1x256xf32> to vector<16x256xf32>
    %174 = arith.mulf %166, %173 : vector<16x256xf32>
    %c1 = arith.constant 1 : index
    %c0_63 = arith.constant 0 : index
    %175 = vector.load %arg13[%c1, %c0_63] : memref<3x256xf32, #tpu.memory_space<vmem>>, vector<1x256xf32>
    %176 = vector.broadcast %175 : vector<1x256xf32> to vector<16x256xf32>
    %177 = arith.mulf %144, %176 : vector<16x256xf32>
    %178 = arith.addf %174, %177 : vector<16x256xf32>
    %c2 = arith.constant 2 : index
    %c0_64 = arith.constant 0 : index
    %179 = vector.load %arg13[%c2, %c0_64] : memref<3x256xf32, #tpu.memory_space<vmem>>, vector<1x256xf32>
    %180 = vector.broadcast %179 : vector<1x256xf32> to vector<16x256xf32>
    %181 = arith.mulf %171, %180 : vector<16x256xf32>
    %182 = arith.addf %178, %181 : vector<16x256xf32>
    %c0_65 = arith.constant 0 : index
    %c0_66 = arith.constant 0 : index
    %183 = vector.load %arg14[%c0_65, %c0_66] : memref<1x256xf32, #tpu.memory_space<vmem>>, vector<1x256xf32>
    %184 = vector.broadcast %183 : vector<1x256xf32> to vector<16x256xf32>
    %185 = arith.addf %182, %184 : vector<16x256xf32>
    %cst_67 = arith.constant 5.000000e-01 : f32
    %186 = vector.broadcast %cst_67 : f32 to vector<16x256xf32>
    %187 = arith.mulf %186, %185 : vector<16x256xf32>
    %cst_68 = arith.constant 0.707106769 : f32
    %188 = vector.broadcast %cst_68 : f32 to vector<16x256xf32>
    %189 = arith.mulf %185, %188 : vector<16x256xf32>
    %cst_69 = arith.constant 0.000000e+00 : f32
    %190 = vector.broadcast %cst_69 : f32 to vector<16x256xf32>
    %191 = arith.cmpf olt, %189, %190 : vector<16x256xf32>
    %cst_70 = arith.constant -1.000000e+00 : f32
    %cst_71 = arith.constant 1.000000e+00 : f32
    %192 = vector.broadcast %cst_70 : f32 to vector<16x256xf32>
    %193 = vector.broadcast %cst_71 : f32 to vector<16x256xf32>
    %194 = arith.select %191, %192, %193 : vector<16x256xi1>, vector<16x256xf32>
    %195 = math.absf %189 : vector<16x256xf32>
    %cst_72 = arith.constant 0.327591091 : f32
    %196 = vector.broadcast %cst_72 : f32 to vector<16x256xf32>
    %197 = arith.mulf %196, %195 : vector<16x256xf32>
    %cst_73 = arith.constant 1.000000e+00 : f32
    %198 = vector.broadcast %cst_73 : f32 to vector<16x256xf32>
    %199 = arith.addf %198, %197 : vector<16x256xf32>
    %cst_74 = arith.constant 1.000000e+00 : f32
    %200 = vector.broadcast %cst_74 : f32 to vector<16x256xf32>
    %201 = arith.divf %200, %199 : vector<16x256xf32>
    %cst_75 = arith.constant 1.06140542 : f32
    %202 = vector.broadcast %cst_75 : f32 to vector<16x256xf32>
    %203 = arith.mulf %202, %201 : vector<16x256xf32>
    %cst_76 = arith.constant -1.45315206 : f32
    %204 = vector.broadcast %cst_76 : f32 to vector<16x256xf32>
    %205 = arith.addf %203, %204 : vector<16x256xf32>
    %206 = arith.mulf %205, %201 : vector<16x256xf32>
    %cst_77 = arith.constant 1.42141378 : f32
    %207 = vector.broadcast %cst_77 : f32 to vector<16x256xf32>
    %208 = arith.addf %206, %207 : vector<16x256xf32>
    %209 = arith.mulf %208, %201 : vector<16x256xf32>
    %cst_78 = arith.constant -0.284496725 : f32
    %210 = vector.broadcast %cst_78 : f32 to vector<16x256xf32>
    %211 = arith.addf %209, %210 : vector<16x256xf32>
    %212 = arith.mulf %211, %201 : vector<16x256xf32>
    %cst_79 = arith.constant 0.254829586 : f32
    %213 = vector.broadcast %cst_79 : f32 to vector<16x256xf32>
    %214 = arith.addf %212, %213 : vector<16x256xf32>
    %215 = arith.mulf %214, %201 : vector<16x256xf32>
    %cst_80 = arith.constant 0.000000e+00 : f32
    %216 = vector.broadcast %cst_80 : f32 to vector<16x256xf32>
    %217 = arith.subf %216, %195 : vector<16x256xf32>
    %218 = arith.mulf %217, %195 : vector<16x256xf32>
    %219 = math.exp %218 : vector<16x256xf32>
    %220 = arith.mulf %215, %219 : vector<16x256xf32>
    %cst_81 = arith.constant 1.000000e+00 : f32
    %221 = vector.broadcast %cst_81 : f32 to vector<16x256xf32>
    %222 = arith.subf %221, %220 : vector<16x256xf32>
    %223 = arith.mulf %194, %222 : vector<16x256xf32>
    %cst_82 = arith.constant 1.000000e+00 : f32
    %224 = vector.broadcast %cst_82 : f32 to vector<16x256xf32>
    %225 = arith.addf %224, %223 : vector<16x256xf32>
    %226 = arith.mulf %187, %225 : vector<16x256xf32>
    %227 = arith.truncf %226 : vector<16x256xf32> to vector<16x256xbf16>
    %c0_83 = arith.constant 0 : index
    %c0_84 = arith.constant 0 : index
    %228 = vector.load %arg15[%c0_83, %c0_84] : memref<256x128xbf16, #tpu.memory_space<vmem>>, vector<256x128xbf16>
    %cst_85 = arith.constant dense<0.000000e+00> : vector<16x128xf32>
    %229 = tpu.matmul %227, %228, %cst_85 {dimension_numbers = #tpu.dot_dimension_numbers<[1], [0], [0], [1], [0, 0, 1, 1], [], []>} : vector<16x256xbf16>, vector<256x128xbf16>, vector<16x128xf32> -> vector<16x128xf32>
    %c0_86 = arith.constant 0 : index
    %c0_87 = arith.constant 0 : index
    %230 = vector.load %arg16[%c0_86, %c0_87] : memref<1x128xf32, #tpu.memory_space<vmem>>, vector<1x128xf32>
    %231 = vector.broadcast %230 : vector<1x128xf32> to vector<16x128xf32>
    %232 = arith.addf %229, %231 : vector<16x128xf32>
    %233 = arith.addf %232, %116 : vector<16x128xf32>
    %234 = vector.shape_cast %233 : vector<16x128xf32> to vector<1x16x128xf32>
    %c0_88 = arith.constant 0 : index
    %c0_89 = arith.constant 0 : index
    %c0_90 = arith.constant 0 : index
    %235 = vector.load %arg17[%c0_88, %c0_89, %c0_90] : memref<1x16x128xf32, #tpu.memory_space<vmem>>, vector<1x16x128xf32>
    tpu.vector_store %arg17[%c0_88, %c0_89, %c0_90], %234 {strides = array<i32>} : memref<1x16x128xf32, #tpu.memory_space<vmem>>, vector<1x16x128xf32>,
    return
  }
  func.func @transform_0(%arg0: i32) -> (i32, i32, i32) {
    %c0_i32 = arith.constant 0 : i32
    %c0_i32_0 = arith.constant 0 : i32
    %c0_i32_1 = arith.constant 0 : i32
    return %arg0, %c0_i32, %c0_i32_0 : i32, i32, i32
  }
  func.func @transform_1(%arg0: i32) -> (i32, i32, i32) {
    %c0_i32 = arith.constant 0 : i32
    %c0_i32_0 = arith.constant 0 : i32
    %c0_i32_1 = arith.constant 0 : i32
    return %arg0, %c0_i32, %c0_i32_0 : i32, i32, i32
  }
  func.func @transform_2(%arg0: i32) -> (i32, i32, i32) {
    %c0_i32 = arith.constant 0 : i32
    %c0_i32_0 = arith.constant 0 : i32
    %c0_i32_1 = arith.constant 0 : i32
    return %arg0, %c0_i32, %c0_i32_0 : i32, i32, i32
  }
  func.func @transform_3(%arg0: i32) -> (i32, i32) {
    %c0_i32 = arith.constant 0 : i32
    %c0_i32_0 = arith.constant 0 : i32
    %c0_i32_1 = arith.constant 0 : i32
    return %c0_i32, %c0_i32_0 : i32, i32
  }
  func.func @transform_4(%arg0: i32) -> (i32, i32) {
    %c0_i32 = arith.constant 0 : i32
    %c0_i32_0 = arith.constant 0 : i32
    %c0_i32_1 = arith.constant 0 : i32
    return %c0_i32, %c0_i32_0 : i32, i32
  }
  func.func @transform_5(%arg0: i32) -> (i32, i32) {
    %c0_i32 = arith.constant 0 : i32
    %c0_i32_0 = arith.constant 0 : i32
    %c0_i32_1 = arith.constant 0 : i32
    return %c0_i32, %c0_i32_0 : i32, i32
  }
  func.func @transform_6(%arg0: i32) -> (i32, i32) {
    %c0_i32 = arith.constant 0 : i32
    %c0_i32_0 = arith.constant 0 : i32
    %c0_i32_1 = arith.constant 0 : i32
    return %c0_i32, %c0_i32_0 : i32, i32
  }
  func.func @transform_7(%arg0: i32) -> (i32, i32) {
    %c0_i32 = arith.constant 0 : i32
    %c0_i32_0 = arith.constant 0 : i32
    %c0_i32_1 = arith.constant 0 : i32
    return %c0_i32, %c0_i32_0 : i32, i32
  }
  func.func @transform_8(%arg0: i32) -> (i32, i32) {
    %c0_i32 = arith.constant 0 : i32
    %c0_i32_0 = arith.constant 0 : i32
    %c0_i32_1 = arith.constant 0 : i32
    return %c0_i32, %c0_i32_0 : i32, i32
  }
  func.func @transform_9(%arg0: i32) -> (i32, i32) {
    %c0_i32 = arith.constant 0 : i32
    %c0_i32_0 = arith.constant 0 : i32
    %c0_i32_1 = arith.constant 0 : i32
    return %c0_i32, %c0_i32_0 : i32, i32
  }
  func.func @transform_10(%arg0: i32) -> (i32, i32) {
    %c0_i32 = arith.constant 0 : i32
    %c0_i32_0 = arith.constant 0 : i32
    %c0_i32_1 = arith.constant 0 : i32
    return %c0_i32, %c0_i32_0 : i32, i32
  }
  func.func @transform_11(%arg0: i32) -> (i32, i32) {
    %c0_i32 = arith.constant 0 : i32
    %c0_i32_0 = arith.constant 0 : i32
    %c0_i32_1 = arith.constant 0 : i32
    return %c0_i32, %c0_i32_0 : i32, i32
  }
  func.func @transform_12(%arg0: i32) -> (i32, i32) {
    %c0_i32 = arith.constant 0 : i32
    %c0_i32_0 = arith.constant 0 : i32
    %c0_i32_1 = arith.constant 0 : i32
    return %c0_i32, %c0_i32_0 : i32, i32
  }
  func.func @transform_13(%arg0: i32) -> (i32, i32) {
    %c0_i32 = arith.constant 0 : i32
    %c0_i32_0 = arith.constant 0 : i32
    %c0_i32_1 = arith.constant 0 : i32
    return %c0_i32, %c0_i32_0 : i32, i32
  }
  func.func @transform_14(%arg0: i32) -> (i32, i32) {
    %c0_i32 = arith.constant 0 : i32
    %c0_i32_0 = arith.constant 0 : i32
    %c0_i32_1 = arith.constant 0 : i32
    return %c0_i32, %c0_i32_0 : i32, i32
  }
  func.func @transform_15(%arg0: i32) -> (i32, i32) {
    %c0_i32 = arith.constant 0 : i32
    %c0_i32_0 = arith.constant 0 : i32
    %c0_i32_1 = arith.constant 0 : i32
    return %c0_i32, %c0_i32_0 : i32, i32
  }
  func.func @transform_16(%arg0: i32) -> (i32, i32, i32) {
    %c0_i32 = arith.constant 0 : i32
    %c0_i32_0 = arith.constant 0 : i32
    %c0_i32_1 = arith.constant 0 : i32
    return %arg0, %c0_i32, %c0_i32_0 : i32, i32, i32
  }
}

module attributes {stable_mosaic.version = 11 : i64} {
  func.func @decoder_block_kernel(%arg0: i32, %arg1: memref<1x16x128xf32, #tpu.memory_space<vmem>>, %arg2: memref<1x1x128xf32, #tpu.memory_space<vmem>>, %arg3: memref<1x1x128xf32, #tpu.memory_space<vmem>>, %arg4: memref<1x128xf32, #tpu.memory_space<vmem>>, %arg5: memref<1x128xf32, #tpu.memory_space<vmem>>, %arg6: memref<128x384xbf16, #tpu.memory_space<vmem>>, %arg7: memref<1x128xf32, #tpu.memory_space<vmem>>, %arg8: memref<1x128xf32, #tpu.memory_space<vmem>>, %arg9: memref<1x128xf32, #tpu.memory_space<vmem>>, %arg10: memref<1x128xf32, #tpu.memory_space<vmem>>, %arg11: memref<128x256xbf16, #tpu.memory_space<vmem>>, %arg12: memref<1x256xf32, #tpu.memory_space<vmem>>, %arg13: memref<3x256xf32, #tpu.memory_space<vmem>>, %arg14: memref<1x256xf32, #tpu.memory_space<vmem>>, %arg15: memref<256x128xbf16, #tpu.memory_space<vmem>>, %arg16: memref<1x128xf32, #tpu.memory_space<vmem>>, %arg17: memref<1x16x128xf32, #tpu.memory_space<vmem>>) attributes {dimension_semantics = [#tpu.dimension_semantics<parallel>], iteration_bounds = array<i64: 2>, scalar_prefetch = 0 : i64, scratch_operands = 0 : i64, tpu.core_type = #tpu.core_type<tc>, window_params = [{transform_indices = @transform_0, window_bounds = array<i64: 1, 16, 128>}, {transform_indices = @transform_1, window_bounds = array<i64: 1, 1, 128>}, {transform_indices = @transform_2, window_bounds = array<i64: 1, 1, 128>}, {pipeline_mode = #tpu.pipeline_mode<synchronous>, transform_indices = @transform_3, window_bounds = array<i64: 1, 128>}, {pipeline_mode = #tpu.pipeline_mode<synchronous>, transform_indices = @transform_4, window_bounds = array<i64: 1, 128>}, {pipeline_mode = #tpu.pipeline_mode<synchronous>, transform_indices = @transform_5, window_bounds = array<i64: 128, 384>}, {pipeline_mode = #tpu.pipeline_mode<synchronous>, transform_indices = @transform_6, window_bounds = array<i64: 1, 128>}, {pipeline_mode = #tpu.pipeline_mode<synchronous>, transform_indices = @transform_7, window_bounds = array<i64: 1, 128>}, {pipeline_mode = #tpu.pipeline_mode<synchronous>, transform_indices = @transform_8, window_bounds = array<i64: 1, 128>}, {pipeline_mode = #tpu.pipeline_mode<synchronous>, transform_indices = @transform_9, window_bounds = array<i64: 1, 128>}, {pipeline_mode = #tpu.pipeline_mode<synchronous>, transform_indices = @transform_10, window_bounds = array<i64: 128, 256>}, {pipeline_mode = #tpu.pipeline_mode<synchronous>, transform_indices = @transform_11, window_bounds = array<i64: 1, 256>}, {pipeline_mode = #tpu.pipeline_mode<synchronous>, transform_indices = @transform_12, window_bounds = array<i64: 3, 256>}, {pipeline_mode = #tpu.pipeline_mode<synchronous>, transform_indices = @transform_13, window_bounds = array<i64: 1, 256>}, {pipeline_mode = #tpu.pipeline_mode<synchronous>, transform_indices = @transform_14, window_bounds = array<i64: 256, 128>}, {pipeline_mode = #tpu.pipeline_mode<synchronous>, transform_indices = @transform_15, window_bounds = array<i64: 1, 128>}, {transform_indices = @transform_16, window_bounds = array<i64: 1, 16, 128>}]} {
    %c0 = arith.constant 0 : index
    %c0_0 = arith.constant 0 : index
    %c0_1 = arith.constant 0 : index
    %0 = vector.load %arg1[%c0, %c0_0, %c0_1] : memref<1x16x128xf32, #tpu.memory_space<vmem>>, vector<1x16x128xf32>
    %1 = vector.shape_cast %0 : vector<1x16x128xf32> to vector<16x128xf32>
    %c0_2 = arith.constant 0 : index
    %c0_3 = arith.constant 0 : index
    %2 = vector.load %arg4[%c0_2, %c0_3] : memref<1x128xf32, #tpu.memory_space<vmem>>, vector<1x128xf32>
    %c0_4 = arith.constant 0 : index
    %c0_5 = arith.constant 0 : index
    %3 = vector.load %arg5[%c0_4, %c0_5] : memref<1x128xf32, #tpu.memory_space<vmem>>, vector<1x128xf32>
    %cst = arith.constant dense<0.000000e+00> : vector<16xf32>
    %4 = vector.multi_reduction <add>, %1, %cst [1] : vector<16x128xf32> to vector<16xf32>
    %5 = vector.shape_cast %4 : vector<16xf32> to vector<16x1xf32>
    %cst_6 = arith.constant 1.280000e+02 : f32
    %6 = vector.broadcast %cst_6 : f32 to vector<16x1xf32>
    %7 = arith.divf %5, %6 : vector<16x1xf32>
    %8 = vector.broadcast %7 : vector<16x1xf32> to vector<16x128xf32>
    %9 = arith.subf %1, %8 : vector<16x128xf32>
    %10 = arith.mulf %9, %9 : vector<16x128xf32>
    %cst_7 = arith.constant dense<0.000000e+00> : vector<16xf32>
    %11 = vector.multi_reduction <add>, %10, %cst_7 [1] : vector<16x128xf32> to vector<16xf32>
    %12 = vector.shape_cast %11 : vector<16xf32> to vector<16x1xf32>
    %cst_8 = arith.constant 1.280000e+02 : f32
    %13 = vector.broadcast %cst_8 : f32 to vector<16x1xf32>
    %14 = arith.divf %12, %13 : vector<16x1xf32>
    %cst_9 = arith.constant 9.99999974E-6 : f32
    %15 = vector.broadcast %cst_9 : f32 to vector<16x1xf32>
    %16 = arith.addf %14, %15 : vector<16x1xf32>
    %17 = math.rsqrt %16 : vector<16x1xf32>
    %18 = vector.broadcast %17 : vector<16x1xf32> to vector<16x128xf32>
    %19 = arith.mulf %9, %18 : vector<16x128xf32>
    %20 = vector.broadcast %2 : vector<1x128xf32> to vector<16x128xf32>
    %21 = arith.mulf %19, %20 : vector<16x128xf32>
    %22 = vector.broadcast %3 : vector<1x128xf32> to vector<16x128xf32>
    %23 = arith.addf %21, %22 : vector<16x128xf32>
    %24 = arith.truncf %23 : vector<16x128xf32> to vector<16x128xbf16>
    %c0_10 = arith.constant 0 : index
    %c0_11 = arith.constant 0 : index
    %25 = vector.load %arg6[%c0_10, %c0_11] : memref<128x384xbf16, #tpu.memory_space<vmem>>, vector<128x384xbf16>
    %cst_12 = arith.constant dense<0.000000e+00> : vector<16x384xf32>
    %26 = tpu.matmul %24, %25, %cst_12 {dimension_numbers = #tpu.dot_dimension_numbers<[1], [0], [0], [1], [0, 0, 1, 1], [], []>} : vector<16x128xbf16>, vector<128x384xbf16>, vector<16x384xf32> -> vector<16x384xf32>
    %27 = tpu.iota {dimensions = array<i32: 0>} : vector<16x16xi32>
    %28 = tpu.iota {dimensions = array<i32: 1>} : vector<16x16xi32>
    %29 = arith.cmpi sgt, %28, %27 : vector<16x16xi32>
    %cst_13 = arith.constant -1.000000e+30 : f32
    %cst_14 = arith.constant 0.000000e+00 : f32
    %30 = vector.broadcast %cst_13 : f32 to vector<16x16xf32>
    %31 = vector.broadcast %cst_14 : f32 to vector<16x16xf32>
    %32 = arith.select %29, %30, %31 : vector<16x16xi1>, vector<16x16xf32>
    %33 = vector.extract_strided_slice %26 {offsets = [0, 0], sizes = [16, 64], strides = [1, 1]} : vector<16x384xf32> to vector<16x64xf32>
    %34 = vector.shape_cast %33 : vector<16x64xf32> to vector<1x16x64xf32>
    %35 = arith.truncf %34 : vector<1x16x64xf32> to vector<1x16x64xbf16>
    %36 = vector.extract_strided_slice %26 {offsets = [0, 128], sizes = [16, 64], strides = [1, 1]} : vector<16x384xf32> to vector<16x64xf32>
    %37 = vector.shape_cast %36 : vector<16x64xf32> to vector<1x16x64xf32>
    %38 = arith.truncf %37 : vector<1x16x64xf32> to vector<1x16x64xbf16>
    %39 = vector.extract_strided_slice %26 {offsets = [0, 256], sizes = [16, 64], strides = [1, 1]} : vector<16x384xf32> to vector<16x64xf32>
    %40 = vector.shape_cast %39 : vector<16x64xf32> to vector<1x16x64xf32>
    %41 = arith.truncf %40 : vector<1x16x64xf32> to vector<1x16x64xbf16>
    "tpu.trace_start"() <{level = 10 : i32, message = "bqd,bkd->bqk"}> : () -> ()
    %cst_15 = arith.constant dense<0.000000e+00> : vector<1x16x16xf32>
    %42 = tpu.matmul %35, %38, %cst_15 {dimension_numbers = #tpu.dot_dimension_numbers<[2], [2], [1], [1], [0, 0, 0, 1, 1, 1], [0], [0]>} : vector<1x16x64xbf16>, vector<1x16x64xbf16>, vector<1x16x16xf32> -> vector<1x16x16xf32>
    "tpu.trace_stop"() : () -> ()
    %43 = vector.shape_cast %32 : vector<16x16xf32> to vector<1x16x16xf32>
    %44 = arith.addf %42, %43 : vector<1x16x16xf32>
    %cst_16 = arith.constant dense<0xFF800000> : vector<1x16xf32>
    %45 = vector.multi_reduction <maximumf>, %44, %cst_16 [2] : vector<1x16x16xf32> to vector<1x16xf32>
    %46 = vector.shape_cast %45 : vector<1x16xf32> to vector<1x16x1xf32>
    %47 = vector.broadcast %46 : vector<1x16x1xf32> to vector<1x16x16xf32>
    %48 = arith.subf %44, %47 : vector<1x16x16xf32>
    %49 = math.exp %48 : vector<1x16x16xf32>
    %cst_17 = arith.constant dense<0.000000e+00> : vector<1x16xf32>
    %50 = vector.multi_reduction <add>, %49, %cst_17 [2] : vector<1x16x16xf32> to vector<1x16xf32>
    %51 = vector.shape_cast %50 : vector<1x16xf32> to vector<1x16x1xf32>
    %52 = tpu.reciprocal %51 {approx = true} : vector<1x16x1xf32> -> vector<1x16x1xf32>
    %53 = vector.broadcast %52 : vector<1x16x1xf32> to vector<1x16x16xf32>
    %54 = arith.mulf %49, %53 : vector<1x16x16xf32>
    %55 = arith.truncf %54 : vector<1x16x16xf32> to vector<1x16x16xbf16>
    "tpu.trace_start"() <{level = 10 : i32, message = "bqk,bkd->bqd"}> : () -> ()
    %cst_18 = arith.constant dense<0.000000e+00> : vector<1x16x64xf32>
    %56 = tpu.matmul %55, %41, %cst_18 {dimension_numbers = #tpu.dot_dimension_numbers<[2], [1], [1], [2], [0, 0, 0, 1, 1, 2], [0], [0]>} : vector<1x16x16xbf16>, vector<1x16x64xbf16>, vector<1x16x64xf32> -> vector<1x16x64xf32>
    "tpu.trace_stop"() : () -> ()
    %57 = vector.shape_cast %56 : vector<1x16x64xf32> to vector<16x64xf32>
    %58 = vector.extract_strided_slice %26 {offsets = [0, 64], sizes = [16, 64], strides = [1, 1]} : vector<16x384xf32> to vector<16x64xf32>
    %59 = vector.shape_cast %58 : vector<16x64xf32> to vector<1x16x64xf32>
    %60 = arith.truncf %59 : vector<1x16x64xf32> to vector<1x16x64xbf16>
    %61 = vector.extract_strided_slice %26 {offsets = [0, 192], sizes = [16, 64], strides = [1, 1]} : vector<16x384xf32> to vector<16x64xf32>
    %62 = vector.shape_cast %61 : vector<16x64xf32> to vector<1x16x64xf32>
    %63 = arith.truncf %62 : vector<1x16x64xf32> to vector<1x16x64xbf16>
    %64 = vector.extract_strided_slice %26 {offsets = [0, 320], sizes = [16, 64], strides = [1, 1]} : vector<16x384xf32> to vector<16x64xf32>
    %65 = vector.shape_cast %64 : vector<16x64xf32> to vector<1x16x64xf32>
    %66 = arith.truncf %65 : vector<1x16x64xf32> to vector<1x16x64xbf16>
    "tpu.trace_start"() <{level = 10 : i32, message = "bqd,bkd->bqk"}> : () -> ()
    %cst_19 = arith.constant dense<0.000000e+00> : vector<1x16x16xf32>
    %67 = tpu.matmul %60, %63, %cst_19 {dimension_numbers = #tpu.dot_dimension_numbers<[2], [2], [1], [1], [0, 0, 0, 1, 1, 1], [0], [0]>} : vector<1x16x64xbf16>, vector<1x16x64xbf16>, vector<1x16x16xf32> -> vector<1x16x16xf32>
    "tpu.trace_stop"() : () -> ()
    %68 = vector.shape_cast %32 : vector<16x16xf32> to vector<1x16x16xf32>
    %69 = arith.addf %67, %68 : vector<1x16x16xf32>
    %cst_20 = arith.constant dense<0xFF800000> : vector<1x16xf32>
    %70 = vector.multi_reduction <maximumf>, %69, %cst_20 [2] : vector<1x16x16xf32> to vector<1x16xf32>
    %71 = vector.shape_cast %70 : vector<1x16xf32> to vector<1x16x1xf32>
    %72 = vector.broadcast %71 : vector<1x16x1xf32> to vector<1x16x16xf32>
    %73 = arith.subf %69, %72 : vector<1x16x16xf32>
    %74 = math.exp %73 : vector<1x16x16xf32>
    %cst_21 = arith.constant dense<0.000000e+00> : vector<1x16xf32>
    %75 = vector.multi_reduction <add>, %74, %cst_21 [2] : vector<1x16x16xf32> to vector<1x16xf32>
    %76 = vector.shape_cast %75 : vector<1x16xf32> to vector<1x16x1xf32>
    %77 = tpu.reciprocal %76 {approx = true} : vector<1x16x1xf32> -> vector<1x16x1xf32>
    %78 = vector.broadcast %77 : vector<1x16x1xf32> to vector<1x16x16xf32>
    %79 = arith.mulf %74, %78 : vector<1x16x16xf32>
    %80 = arith.truncf %79 : vector<1x16x16xf32> to vector<1x16x16xbf16>
    "tpu.trace_start"() <{level = 10 : i32, message = "bqk,bkd->bqd"}> : () -> ()
    %cst_22 = arith.constant dense<0.000000e+00> : vector<1x16x64xf32>
    %81 = tpu.matmul %80, %66, %cst_22 {dimension_numbers = #tpu.dot_dimension_numbers<[2], [1], [1], [2], [0, 0, 0, 1, 1, 2], [0], [0]>} : vector<1x16x16xbf16>, vector<1x16x64xbf16>, vector<1x16x64xf32> -> vector<1x16x64xf32>
    "tpu.trace_stop"() : () -> ()
    %82 = vector.shape_cast %81 : vector<1x16x64xf32> to vector<16x64xf32>
    %83 = tpu.concatenate %57, %82 in 1 : vector<16x64xf32>, vector<16x64xf32> -> vector<16x128xf32>
    %84 = arith.addf %83, %1 : vector<16x128xf32>
    %c0_23 = arith.constant 0 : index
    %c0_24 = arith.constant 0 : index
    %85 = vector.load %arg7[%c0_23, %c0_24] : memref<1x128xf32, #tpu.memory_space<vmem>>, vector<1x128xf32>
    %c0_25 = arith.constant 0 : index
    %c0_26 = arith.constant 0 : index
    %86 = vector.load %arg8[%c0_25, %c0_26] : memref<1x128xf32, #tpu.memory_space<vmem>>, vector<1x128xf32>
    %cst_27 = arith.constant dense<0.000000e+00> : vector<16xf32>
    %87 = vector.multi_reduction <add>, %84, %cst_27 [1] : vector<16x128xf32> to vector<16xf32>
    %88 = vector.shape_cast %87 : vector<16xf32> to vector<16x1xf32>
    %cst_28 = arith.constant 1.280000e+02 : f32
    %89 = vector.broadcast %cst_28 : f32 to vector<16x1xf32>
    %90 = arith.divf %88, %89 : vector<16x1xf32>
    %91 = vector.broadcast %90 : vector<16x1xf32> to vector<16x128xf32>
    %92 = arith.subf %84, %91 : vector<16x128xf32>
    %93 = arith.mulf %92, %92 : vector<16x128xf32>
    %cst_29 = arith.constant dense<0.000000e+00> : vector<16xf32>
    %94 = vector.multi_reduction <add>, %93, %cst_29 [1] : vector<16x128xf32> to vector<16xf32>
    %95 = vector.shape_cast %94 : vector<16xf32> to vector<16x1xf32>
    %cst_30 = arith.constant 1.280000e+02 : f32
    %96 = vector.broadcast %cst_30 : f32 to vector<16x1xf32>
    %97 = arith.divf %95, %96 : vector<16x1xf32>
    %cst_31 = arith.constant 9.99999974E-6 : f32
    %98 = vector.broadcast %cst_31 : f32 to vector<16x1xf32>
    %99 = arith.addf %97, %98 : vector<16x1xf32>
    %100 = math.rsqrt %99 : vector<16x1xf32>
    %101 = vector.broadcast %100 : vector<16x1xf32> to vector<16x128xf32>
    %102 = arith.mulf %92, %101 : vector<16x128xf32>
    %103 = vector.broadcast %85 : vector<1x128xf32> to vector<16x128xf32>
    %104 = arith.mulf %102, %103 : vector<16x128xf32>
    %105 = vector.broadcast %86 : vector<1x128xf32> to vector<16x128xf32>
    %106 = arith.addf %104, %105 : vector<16x128xf32>
    %107 = vector.shape_cast %106 : vector<16x128xf32> to vector<1x16x128xf32>
    %c0_32 = arith.constant 0 : index
    %c0_33 = arith.constant 0 : index
    %c0_34 = arith.constant 0 : index
    %108 = vector.load %arg2[%c0_32, %c0_33, %c0_34] : memref<1x1x128xf32, #tpu.memory_space<vmem>>, vector<1x1x128xf32>
    %cst_35 = arith.constant 1.000000e+00 : f32
    %109 = vector.broadcast %cst_35 : f32 to vector<1x1x128xf32>
    %110 = arith.addf %109, %108 : vector<1x1x128xf32>
    %111 = vector.broadcast %110 : vector<1x1x128xf32> to vector<1x16x128xf32>
    %112 = arith.mulf %107, %111 : vector<1x16x128xf32>
    %c0_36 = arith.constant 0 : index
    %c0_37 = arith.constant 0 : index
    %c0_38 = arith.constant 0 : index
    %113 = vector.load %arg3[%c0_36, %c0_37, %c0_38] : memref<1x1x128xf32, #tpu.memory_space<vmem>>, vector<1x1x128xf32>
    %114 = vector.broadcast %113 : vector<1x1x128xf32> to vector<1x16x128xf32>
    %115 = arith.addf %112, %114 : vector<1x16x128xf32>
    %116 = vector.shape_cast %115 : vector<1x16x128xf32> to vector<16x128xf32>
    %c0_39 = arith.constant 0 : index
    %c0_40 = arith.constant 0 : index
    %117 = vector.load %arg9[%c0_39, %c0_40] : memref<1x128xf32, #tpu.memory_space<vmem>>, vector<1x128xf32>
    %c0_41 = arith.constant 0 : index
    %c0_42 = arith.constant 0 : index
    %118 = vector.load %arg10[%c0_41, %c0_42] : memref<1x128xf32, #tpu.memory_space<vmem>>, vector<1x128xf32>
    %cst_43 = arith.constant dense<0.000000e+00> : vector<16xf32>
    %119 = vector.multi_reduction <add>, %116, %cst_43 [1] : vector<16x128xf32> to vector<16xf32>
    %120 = vector.shape_cast %119 : vector<16xf32> to vector<16x1xf32>
    %cst_44 = arith.constant 1.280000e+02 : f32
    %121 = vector.broadcast %cst_44 : f32 to vector<16x1xf32>
    %122 = arith.divf %120, %121 : vector<16x1xf32>
    %123 = vector.broadcast %122 : vector<16x1xf32> to vector<16x128xf32>
    %124 = arith.subf %116, %123 : vector<16x128xf32>
    %125 = arith.mulf %124, %124 : vector<16x128xf32>
    %cst_45 = arith.constant dense<0.000000e+00> : vector<16xf32>
    %126 = vector.multi_reduction <add>, %125, %cst_45 [1] : vector<16x128xf32> to vector<16xf32>
    %127 = vector.shape_cast %126 : vector<16xf32> to vector<16x1xf32>
    %cst_46 = arith.constant 1.280000e+02 : f32
    %128 = vector.broadcast %cst_46 : f32 to vector<16x1xf32>
    %129 = arith.divf %127, %128 : vector<16x1xf32>
    %cst_47 = arith.constant 9.99999974E-6 : f32
    %130 = vector.broadcast %cst_47 : f32 to vector<16x1xf32>
    %131 = arith.addf %129, %130 : vector<16x1xf32>
    %132 = math.rsqrt %131 : vector<16x1xf32>
    %133 = vector.broadcast %132 : vector<16x1xf32> to vector<16x128xf32>
    %134 = arith.mulf %124, %133 : vector<16x128xf32>
    %135 = vector.broadcast %117 : vector<1x128xf32> to vector<16x128xf32>
    %136 = arith.mulf %134, %135 : vector<16x128xf32>
    %137 = vector.broadcast %118 : vector<1x128xf32> to vector<16x128xf32>
    %138 = arith.addf %136, %137 : vector<16x128xf32>
    %139 = arith.truncf %138 : vector<16x128xf32> to vector<16x128xbf16>
    %c0_48 = arith.constant 0 : index
    %c0_49 = arith.constant 0 : index
    %140 = vector.load %arg11[%c0_48, %c0_49] : memref<128x256xbf16, #tpu.memory_space<vmem>>, vector<128x256xbf16>
    %cst_50 = arith.constant dense<0.000000e+00> : vector<16x256xf32>
    %141 = tpu.matmul %139, %140, %cst_50 {dimension_numbers = #tpu.dot_dimension_numbers<[1], [0], [0], [1], [0, 0, 1, 1], [], []>} : vector<16x128xbf16>, vector<128x256xbf16>, vector<16x256xf32> -> vector<16x256xf32>
    %c0_51 = arith.constant 0 : index
    %c0_52 = arith.constant 0 : index
    %142 = vector.load %arg12[%c0_51, %c0_52] : memref<1x256xf32, #tpu.memory_space<vmem>>, vector<1x256xf32>
    %143 = vector.broadcast %142 : vector<1x256xf32> to vector<16x256xf32>
    %144 = arith.addf %141, %143 : vector<16x256xf32>
    %145 = tpu.iota {dimensions = array<i32: 0>} : vector<16x256xi32>
    %c16_i32 = arith.constant 16 : i32
    %c0_i32 = arith.constant 0 : i32
    %146 = arith.cmpi eq, %c16_i32, %c0_i32 : i32
    %c1_i32 = arith.constant 1 : i32
    %147 = arith.select %146, %c1_i32, %c16_i32 : i32
    %148 = vector.broadcast %147 : i32 to vector<16x256xi32>
    %149 = arith.remsi %145, %148 : vector<16x256xi32>
    %c0_i32_53 = arith.constant 0 : i32
    %150 = vector.broadcast %c0_i32_53 : i32 to vector<16x256xi32>
    %151 = arith.cmpi ne, %149, %150 : vector<16x256xi32>
    %c0_i32_54 = arith.constant 0 : i32
    %152 = vector.broadcast %c0_i32_54 : i32 to vector<16x256xi32>
    %153 = arith.cmpi slt, %149, %152 : vector<16x256xi32>
    %c0_i32_55 = arith.constant 0 : i32
    %154 = arith.cmpi slt, %147, %c0_i32_55 : i32
    %155 = vector.broadcast %154 : i1 to vector<16x256xi1>
    %156 = vector.broadcast %155 : vector<16x256xi1> to vector<16x256xi1>
    %157 = arith.xori %153, %156 : vector<16x256xi1>
    %158 = arith.andi %157, %151 : vector<16x256xi1>
    %159 = vector.broadcast %147 : i32 to vector<16x256xi32>
    %160 = arith.addi %149, %159 : vector<16x256xi32>
    %161 = arith.select %158, %160, %149 : vector<16x256xi1>, vector<16x256xi32>
    %c0_i32_56 = arith.constant 0 : i32
    %162 = vector.broadcast %c0_i32_56 : i32 to vector<16x256xi32>
    %163 = arith.cmpi eq, %161, %162 : vector<16x256xi32>
    %c1_i32_57 = arith.constant 1 : i32
    %164 = tpu.dynamic_rotate %144 by %c1_i32_57 dim 0 : vector<16x256xf32>, i32 -> vector<16x256xf32>
    %cst_58 = arith.constant 0.000000e+00 : f32
    %165 = vector.broadcast %cst_58 : f32 to vector<16x256xf32>
    %166 = arith.select %163, %165, %164 : vector<16x256xi1>, vector<16x256xf32>
    %c15_i32 = arith.constant 15 : i32
    %167 = vector.broadcast %c15_i32 : i32 to vector<16x256xi32>
    %168 = arith.cmpi eq, %161, %167 : vector<16x256xi32>
    %c15_i32_59 = arith.constant 15 : i32
    %169 = tpu.dynamic_rotate %144 by %c15_i32_59 dim 0 : vector<16x256xf32>, i32 -> vector<16x256xf32>
    %cst_60 = arith.constant 0.000000e+00 : f32
    %170 = vector.broadcast %cst_60 : f32 to vector<16x256xf32>
    %171 = arith.select %168, %170, %169 : vector<16x256xi1>, vector<16x256xf32>
    %c0_61 = arith.constant 0 : index
    %c0_62 = arith.constant 0 : index
    %172 = vector.load %arg13[%c0_61, %c0_62] : memref<3x256xf32, #tpu.memory_space<vmem>>, vector<1x256xf32>
    %173 = vector.broadcast %172 : vector<1x256xf32> to vector<16x256xf32>
    %174 = arith.mulf %166, %173 : vector<16x256xf32>
    %c1 = arith.constant 1 : index
    %c0_63 = arith.constant 0 : index
    %175 = vector.load %arg13[%c1, %c0_63] : memref<3x256xf32, #tpu.memory_space<vmem>>, vector<1x256xf32>
    %176 = vector.broadcast %175 : vector<1x256xf32> to vector<16x256xf32>
    %177 = arith.mulf %144, %176 : vector<16x256xf32>
    %178 = arith.addf %174, %177 : vector<16x256xf32>
    %c2 = arith.constant 2 : index
    %c0_64 = arith.constant 0 : index
    %179 = vector.load %arg13[%c2, %c0_64] : memref<3x256xf32, #tpu.memory_space<vmem>>, vector<1x256xf32>
    %180 = vector.broadcast %179 : vector<1x256xf32> to vector<16x256xf32>
    %181 = arith.mulf %171, %180 : vector<16x256xf32>
    %182 = arith.addf %178, %181 : vector<16x256xf32>
    %c0_65 = arith.constant 0 : index
    %c0_66 = arith.constant 0 : index
    %183 = vector.load %arg14[%c0_65, %c0_66] : memref<1x256xf32, #tpu.memory_space<vmem>>, vector<1x256xf32>
    %184 = vector.broadcast %183 : vector<1x256xf32> to vector<16x256xf32>
    %185 = arith.addf %182, %184 : vector<16x256xf32>
    %cst_67 = arith.constant 5.000000e-01 : f32
    %186 = vector.broadcast %cst_67 : f32 to vector<16x256xf32>
    %187 = arith.mulf %186, %185 : vector<16x256xf32>
    %cst_68 = arith.constant 0.707106769 : f32
    %188 = vector.broadcast %cst_68 : f32 to vector<16x256xf32>
    %189 = arith.mulf %185, %188 : vector<16x256xf32>
    %cst_69 = arith.constant 0.000000e+00 : f32
    %190 = vector.broadcast %cst_69 : f32 to vector<16x256xf32>
    %191 = arith.cmpf olt, %189, %190 : vector<16x256xf32>
    %cst_70 = arith.constant -1.000000e+00 : f32
    %cst_71 = arith.constant 1.000000e+00 : f32
    %192 = vector.broadcast %cst_70 : f32 to vector<16x256xf32>
    %193 = vector.broadcast %cst_71 : f32 to vector<16x256xf32>
    %194 = arith.select %191, %192, %193 : vector<16x256xi1>, vector<16x256xf32>
    %195 = math.absf %189 : vector<16x256xf32>
    %cst_72 = arith.constant 0.327591091 : f32
    %196 = vector.broadcast %cst_72 : f32 to vector<16x256xf32>
    %197 = arith.mulf %196, %195 : vector<16x256xf32>
    %cst_73 = arith.constant 1.000000e+00 : f32
    %198 = vector.broadcast %cst_73 : f32 to vector<16x256xf32>
    %199 = arith.addf %198, %197 : vector<16x256xf32>
    %cst_74 = arith.constant 1.000000e+00 : f32
    %200 = vector.broadcast %cst_74 : f32 to vector<16x256xf32>
    %201 = arith.divf %200, %199 : vector<16x256xf32>
    %cst_75 = arith.constant 1.06140542 : f32
    %202 = vector.broadcast %cst_75 : f32 to vector<16x256xf32>
    %203 = arith.mulf %202, %201 : vector<16x256xf32>
    %cst_76 = arith.constant -1.45315206 : f32
    %204 = vector.broadcast %cst_76 : f32 to vector<16x256xf32>
    %205 = arith.addf %203, %204 : vector<16x256xf32>
    %206 = arith.mulf %205, %201 : vector<16x256xf32>
    %cst_77 = arith.constant 1.42141378 : f32
    %207 = vector.broadcast %cst_77 : f32 to vector<16x256xf32>
    %208 = arith.addf %206, %207 : vector<16x256xf32>
    %209 = arith.mulf %208, %201 : vector<16x256xf32>
    %cst_78 = arith.constant -0.284496725 : f32
    %210 = vector.broadcast %cst_78 : f32 to vector<16x256xf32>
    %211 = arith.addf %209, %210 : vector<16x256xf32>
    %212 = arith.mulf %211, %201 : vector<16x256xf32>
    %cst_79 = arith.constant 0.254829586 : f32
    %213 = vector.broadcast %cst_79 : f32 to vector<16x256xf32>
    %214 = arith.addf %212, %213 : vector<16x256xf32>
    %215 = arith.mulf %214, %201 : vector<16x256xf32>
    %cst_80 = arith.constant 0.000000e+00 : f32
    %216 = vector.broadcast %cst_80 : f32 to vector<16x256xf32>
    %217 = arith.subf %216, %195 : vector<16x256xf32>
    %218 = arith.mulf %217, %195 : vector<16x256xf32>
    %219 = math.exp %218 : vector<16x256xf32>
    %220 = arith.mulf %215, %219 : vector<16x256xf32>
    %cst_81 = arith.constant 1.000000e+00 : f32
    %221 = vector.broadcast %cst_81 : f32 to vector<16x256xf32>
    %222 = arith.subf %221, %220 : vector<16x256xf32>
    %223 = arith.mulf %194, %222 : vector<16x256xf32>
    %cst_82 = arith.constant 1.000000e+00 : f32
    %224 = vector.broadcast %cst_82 : f32 to vector<16x256xf32>
    %225 = arith.addf %224, %223 : vector<16x256xf32>
    %226 = arith.mulf %187, %225 : vector<16x256xf32>
    %227 = arith.truncf %226 : vector<16x256xf32> to vector<16x256xbf16>
    %c0_83 = arith.constant 0 : index
    %c0_84 = arith.constant 0 : index
    %228 = vector.load %arg15[%c0_83, %c0_84] : memref<256x128xbf16, #tpu.memory_space<vmem>>, vector<256x128xbf16>
    %cst_85 = arith.constant dense<0.000000e+00> : vector<16x128xf32>
    %229 = tpu.matmul %227, %228, %cst_85 {dimension_numbers = #tpu.dot_dimension_numbers<[1], [0], [0], [1], [0, 0, 1, 1], [], []>} : vector<16x256xbf16>, vector<256x128xbf16>, vector<16x128xf32> -> vector<16x128xf32>
    %c0_86 = arith.constant 0 : index
    %c0_87 = arith.constant 0 : index
    %230 = vector.load %arg16[%c0_86, %c0_87] : memref<1x128xf32, #tpu.memory_space<vmem>>, vector<1x128xf32>
    %231 = vector.broadcast %230 : vector<1x128xf32> to vector<16x128xf32>
    %232 = arith.addf %229, %231 : vector<16x128xf32>
    %233 = arith.addf %232, %116 : vector<16x128xf32>
    %234 = vector.shape_cast %233 : vector<16x128xf32> to vector<1x16x128xf32>
    %c0_88 = arith.constant 0 : index
    %c0_89 = arith.constant 0 : index
    %c0_90 = arith.constant 0 : index
    %235 = vector.load %arg17[%c0_88, %c0_89, %c0_90] : memref<1x16x128xf32, #tpu.memory_space<vmem>>, vector<1x16x128xf32>
    tpu.vector_store %arg17[%c0_88, %c0_89, %c0_90], %234 {strides = array<i32>} : memref<1x16x128xf32, #tpu.memory_space<vmem>>, vector<1x16x128xf32>,
    return
  }
  func.func @transform_0(%arg0: i32) -> (i32, i32, i32) {
    %c0_i32 = arith.constant 0 : i32
    %c0_i32_0 = arith.constant 0 : i32
    %c0_i32_1 = arith.constant 0 : i32
    return %arg0, %c0_i32, %c0_i32_0 : i32, i32, i32
  }
  func.func @transform_1(%arg0: i32) -> (i32, i32, i32) {
    %c0_i32 = arith.constant 0 : i32
    %c0_i32_0 = arith.constant 0 : i32
    %c0_i32_1 = arith.constant 0 : i32
    return %arg0, %c0_i32, %c0_i32_0 : i32, i32, i32
  }
  func.func @transform_2(%arg0: i32) -> (i32, i32, i32) {
    %c0_i32 = arith.constant 0 : i32
    %c0_i32_0 = arith.constant 0 : i32
    %c0_i32_1 = arith.constant 0 : i32
    return %arg0, %c0_i32, %c0_i32_0 : i32, i32, i32
  }
  func.func @transform_3(%arg0: i32) -> (i32, i32) {
    %c0_i32 = arith.constant 0 : i32
    %c0_i32_0 = arith.constant 0 : i32
    %c0_i32_1 = arith.constant 0 : i32
    return %c0_i32, %c0_i32_0 : i32, i32
  }
  func.func @transform_4(%arg0: i32) -> (i32, i32) {
    %c0_i32 = arith.constant 0 : i32
    %c0_i32_0 = arith.constant 0 : i32
    %c0_i32_1 = arith.constant 0 : i32
    return %c0_i32, %c0_i32_0 : i32, i32
  }
  func.func @transform_5(%arg0: i32) -> (i32, i32) {
    %c0_i32 = arith.constant 0 : i32
    %c0_i32_0 = arith.constant 0 : i32
    %c0_i32_1 = arith.constant 0 : i32
    return %c0_i32, %c0_i32_0 : i32, i32
  }
  func.func @transform_6(%arg0: i32) -> (i32, i32) {
    %c0_i32 = arith.constant 0 : i32
    %c0_i32_0 = arith.constant 0 : i32
    %c0_i32_1 = arith.constant 0 : i32
    return %c0_i32, %c0_i32_0 : i32, i32
  }
  func.func @transform_7(%arg0: i32) -> (i32, i32) {
    %c0_i32 = arith.constant 0 : i32
    %c0_i32_0 = arith.constant 0 : i32
    %c0_i32_1 = arith.constant 0 : i32
    return %c0_i32, %c0_i32_0 : i32, i32
  }
  func.func @transform_8(%arg0: i32) -> (i32, i32) {
    %c0_i32 = arith.constant 0 : i32
    %c0_i32_0 = arith.constant 0 : i32
    %c0_i32_1 = arith.constant 0 : i32
    return %c0_i32, %c0_i32_0 : i32, i32
  }
  func.func @transform_9(%arg0: i32) -> (i32, i32) {
    %c0_i32 = arith.constant 0 : i32
    %c0_i32_0 = arith.constant 0 : i32
    %c0_i32_1 = arith.constant 0 : i32
    return %c0_i32, %c0_i32_0 : i32, i32
  }
  func.func @transform_10(%arg0: i32) -> (i32, i32) {
    %c0_i32 = arith.constant 0 : i32
    %c0_i32_0 = arith.constant 0 : i32
    %c0_i32_1 = arith.constant 0 : i32
    return %c0_i32, %c0_i32_0 : i32, i32
  }
  func.func @transform_11(%arg0: i32) -> (i32, i32) {
    %c0_i32 = arith.constant 0 : i32
    %c0_i32_0 = arith.constant 0 : i32
    %c0_i32_1 = arith.constant 0 : i32
    return %c0_i32, %c0_i32_0 : i32, i32
  }
  func.func @transform_12(%arg0: i32) -> (i32, i32) {
    %c0_i32 = arith.constant 0 : i32
    %c0_i32_0 = arith.constant 0 : i32
    %c0_i32_1 = arith.constant 0 : i32
    return %c0_i32, %c0_i32_0 : i32, i32
  }
  func.func @transform_13(%arg0: i32) -> (i32, i32) {
    %c0_i32 = arith.constant 0 : i32
    %c0_i32_0 = arith.constant 0 : i32
    %c0_i32_1 = arith.constant 0 : i32
    return %c0_i32, %c0_i32_0 : i32, i32
  }
  func.func @transform_14(%arg0: i32) -> (i32, i32) {
    %c0_i32 = arith.constant 0 : i32
    %c0_i32_0 = arith.constant 0 : i32
    %c0_i32_1 = arith.constant 0 : i32
    return %c0_i32, %c0_i32_0 : i32, i32
  }
  func.func @transform_15(%arg0: i32) -> (i32, i32) {
    %c0_i32 = arith.constant 0 : i32
    %c0_i32_0 = arith.constant 0 : i32
    %c0_i32_1 = arith.constant 0 : i32
    return %c0_i32, %c0_i32_0 : i32, i32
  }
  func.func @transform_16(%arg0: i32) -> (i32, i32, i32) {
    %c0_i32 = arith.constant 0 : i32
    %c0_i32_0 = arith.constant 0 : i32
    %c0_i32_1 = arith.constant 0 : i32
    return %arg0, %c0_i32, %c0_i32_0 : i32, i32, i32
  }
}

</mosaic_0001>

<bundles_post_ra>
// kernel: tpu_custom_call.1
= control target key start
LH: loop header
LB: loop body
LE: loop exit
PB: predicated region body
PF: predicated region fallthrough
CT: control target
= control target key end

     0   :  { %s3670_s0 = inlined_call_operand.hbm [shape: f32[2,16,128], index: 0, kind: input, shape index: {}]   ;;  %s3671_s1 = inlined_call_operand.hbm [shape: f32[2,1,128], index: 1, kind: input, shape index: {}]   ;;  %s3672_s2 = inlined_call_operand.hbm [shape: f32[2,1,128], index: 2, kind: input, shape index: {}]   ;;  %s3673_s3 = inlined_call_operand.hbm [shape: f32[1,128], index: 3, kind: input, shape index: {}]   ;;  %s3674_s4 = inlined_call_operand.hbm [shape: f32[1,128], index: 4, kind: input, shape index: {}]   ;;  %s3675_s5 = inlined_call_operand.hbm [shape: bf16[128,384], index: 5, kind: input, shape index: {}]   ;;  %s3676_s6 = inlined_call_operand.hbm [shape: f32[1,128], index: 6, kind: input, shape index: {}]   ;;  %s3677_s7 = inlined_call_operand.hbm [shape: f32[1,128], index: 7, kind: input, shape index: {}]   ;;  %s3678_s8 = inlined_call_operand.hbm [shape: f32[1,128], index: 8, kind: input, shape index: {}]   ;;  %s3679_s9 = inlined_call_operand.hbm [shape: f32[1,128], index: 9, kind: input, shape index: {}]   ;;  %s3680_s10 = inlined_call_operand.hbm [shape: bf16[128,256], index: 10, kind: input, shape index: {}]   ;;  %s3681_s11 = inlined_call_operand.vmem [shape: f32[1,256], index: 11, kind: input, shape index: {}]   ;;  %s3682_s12 = inlined_call_operand.vmem [shape: f32[3,256], index: 12, kind: input, shape index: {}]   ;;  %s3683_s13 = inlined_call_operand.vmem [shape: f32[1,256], index: 13, kind: input, shape index: {}]   ;;  %s3684_s14 = inlined_call_operand.hbm [shape: bf16[256,128], index: 14, kind: input, shape index: {}]   ;;  %s3685_s15 = inlined_call_operand.vmem [shape: f32[1,128], index: 15, kind: input, shape index: {}]   ;;  %s3686_s16 = inlined_call_operand.hbm [shape: f32[2,16,128], index: 16, kind: output, shape index: {}]  }
   0x1   :  { %3699 = sst [smem:[#allocation37_spill]] %s3670_s0 }
   0x2   :  { %3700 = sst [smem:[#allocation38_spill]] %s3671_s1 }
   0x3   :  { %3701 = sst [smem:[#allocation39_spill]] %s3673_s3 }
   0x4   :  { %3702 = sst [smem:[#allocation40_spill]] %s3674_s4 }
   0x5   :  { %3703 = sst [smem:[#allocation41_spill]] %s3675_s5 }
   0x6   :  { %3704 = sst [smem:[#allocation42_spill]] %s3676_s6 }
   0x7   :  { %3705 = sst [smem:[#allocation43_spill]] %s3677_s7 }
   0x8   :  { %3706 = sst [smem:[#allocation44_spill]] %s3678_s8 }
   0x9   :  { %3707 = sst [smem:[#allocation45_spill]] %s3679_s9 }
   0xa   :  { %3708 = sst [smem:[#allocation46_spill]] %s3685_s15 }
   0xb   :  { %3709 = sst [smem:[#allocation47_spill]] %s3686_s16 }
   0xc   :  { %21 = vsyncpa [#allocation3], 0 }
   0xd   :  { %23 = vsyncpa [#allocation3 + $0x1], 0 }
   0xe   :  { %24 = vsyncpa [#allocation6], 0 }
   0xf   :  { %26 = vsyncpa [#allocation6 + $0x1], 0 }
  0x10   :  { %27 = vsyncpa [#allocation9], 0 }
  0x11   :  { %28 = vsyncpa [#allocation12], 0 }
  0x12   :  { %29 = vsyncpa [#allocation15], 0 }
  0x13   :  { %30 = vsyncpa [#allocation18], 0 }
  0x14   :  { %31 = vsyncpa [#allocation21], 0 }
  0x15   :  { %32 = vsyncpa [#allocation4], 0 }
  0x16   :  { %34 = vsyncpa [#allocation4 + $0x1], 0  ;;  %s3174_s21 = smov 0   ;;  %s3176_s22 = smov 0  }
  0x17   :  { %s3178_s23 = smov 0   ;;  %s3180_s24 = smov 0  }
  0x18 LB: > { %3710 = sst [smem:[#allocation31_spill]] %s3054_s21  ;;  %s3198_s28 = sadd.s32 4294967295, %s3066_s24   ;;  %s3066_s24 = sphi %s3180_s24, %s3753_s24   ;;  %s3062_s23 = sphi %s3178_s23, %s3755_s23   ;;  %s3058_s22 = sphi %s3176_s22, %s3757_s22   ;;  %s3054_s21 = sphi %s3174_s21, %s3756_s21  }
  0x19   : > { %3711 = sst [smem:[#allocation32_spill]] %s3062_s23  ;;  %p2084_p0 = scmp.ge.s32.totalorder %s3066_s24, 1 }
  0x1a   : > { %s3712_s3 = sld [smem:[#allocation39_spill]]  ;;  %p3693_p1 = scmp.eq.s32.totalorder %s3198_s28, 0 }
  0x1b   : > { %p422_p2 = scmp.lt.s32.totalorder %s3066_s24, 3  ;;  %s3068_s30 = smov [#allocation8]  }
  0x1c   : > { %s436_s0 = sshll.u32 %s3068_s30, 4  ;;  %s3714_s5 = sld [smem:[#allocation41_spill]]  ;;  %s437_s0 = int_to_ptr.vmem [resolvable:$true] %s436_s0 }
  0x1d   : > { %p3203_p3 = pnand %p2084_p0, %p422_p2  ;;  %s3069_s25 = smov [#allocation11]  }
  0x1e   : > { %s459_s26 = sshll.u32 %s3069_s25, 4  ;;  %s3070_s30 = smov 192   ;;  %s460_s26 = int_to_ptr.vmem [resolvable:$true] %s459_s26 }
  0x1f   : > { %p2447_p5 = pneg %p3203_p3  ;;  %s3071_s17 = smov 12  }
  0x20   : > { %s434_s27 = sshll.u32 %s3712_s3, 4  ;;  %s3716_s7 = sld [smem:[#allocation43_spill]]  ;;  %s435_s27 = int_to_ptr.hbm [resolvable:$true] %s434_s27 }
  0x21   : > { %p3215_p6 = pnand %p2447_p5, %p3693_p1  ;;  %s3072_s25 = smov [#allocation14]  }
  0x22   : > { %s457_s19 = sshll.u32 %s3714_s5, 4  ;;  %s486_s16 = sshll.u32 %s3072_s25, 4  ;;  %s458_s19 = int_to_ptr.hbm [resolvable:$true] %s457_s19  ;;  %s487_s16 = int_to_ptr.vmem [resolvable:$true] %s486_s16 }
  0x23   : > { %2450 = dma.hbm_to_vmem [thread:$0]  (!%p3215_p6), %s435_s27, 16, %s437_s0, [#allocation9]  }
  0x24   : > { %2456 = dma.hbm_to_vmem [thread:$0]  (!%p3215_p6), %s458_s19, 3072, %s460_s26, [#allocation12], %s3070_s30, %s3070_s30, %s3071_s17  }
  0x25   : > { %s3717_s9 = sld [smem:[#allocation45_spill]]  ;;  %s3073_s3 = smov [#allocation17]  }
  0x26   : > { %s484_s5 = sshll.u32 %s3716_s7, 4  ;;  %s510_s19 = sshll.u32 %s3073_s3, 4  ;;  %s485_s5 = int_to_ptr.hbm [resolvable:$true] %s484_s5  ;;  %s511_s19 = int_to_ptr.vmem [resolvable:$true] %s510_s19 }
  0x27   : > { %2462 = dma.hbm_to_vmem [thread:$0]  (!%p3215_p6), %s485_s5, 16, %s487_s16, [#allocation15]  }
  0x28   : > { %s2083_s26 = sadd.s32 4294967294, %s3066_s24   ;;  %s3235_s30 = sadd.s32 1, %s3066_s24  }
  0x29   : > { %3718 = sst [smem:[#allocation33_spill]] %s3235_s30  ;;  %s44_s17 = ssub.s32 %s3066_s24, %s3235_s30 }
  0x2a   : > { %s47_s18 = sadd.s32 1, %s3062_s23  ;;  %p45_p7 = scmp.eq.s32.totalorder %s44_s17, 0 }
  0x2b   : > { %s508_s15 = sshll.u32 %s3717_s9, 4  ;;  %p54_p8 = scmp.ne.s32.totalorder %s3062_s23, %s3058_s22  ;;  %s509_s15 = int_to_ptr.hbm [resolvable:$true] %s508_s15 }
  0x2c   : > { %2468 = dma.hbm_to_vmem [thread:$0]  (!%p3215_p6), %s509_s15, 16, %s511_s19, [#allocation18]  }
  0x2d   : > { %p55_p9 = scmp.eq.s32.totalorder %s3066_s24, 0  ;;  %p60_p10 = scmp.ne.s32.totalorder %s3058_s22, %s3054_s21 }
  0x2e   : > { %s3246_s5 = scalar_select %p45_p7, %s3062_s23, %s47_s18  }
  0x2f   : > { %p56_p11 = por %p55_p9, %p54_p8  ;;  %p3250_p12 = por %p3693_p1, %p60_p10 }
  0x30   : > { %3719 = sst [smem:[#allocation34_spill]] %s3246_s5  ;;  %p409_p13 = scmp.eq.s32.totalorder %s3198_s28, 1 }
  0x31   : > { %p415_p0 = scmp.eq.s32.totalorder %s2083_s26, 1  ;;  %p2498_p2 = scmp.lt.s32.totalorder %s3066_s24, 2 }
  0x32   : > { %s3257_s15 = sand.u32 1, %s3062_s23   ;;  %p3259_p5 = por %p409_p13, %p54_p8 }
  0x33   : > { %p3263_p4 = por %p415_p0, %p60_p10  ;;  %p3267_p7 = pnand %p2498_p2, %p56_p11 }
  0x34   : > { %s3721_s25 = scalar_select %p3259_p5, 1, 0 }
  0x35   : > { %s3723_s27 = scalar_select %p3263_p4, 1, 0 }
  0x36   : > { %3722 = sst [smem:[#allocation35_spill]] %s3721_s25  ;;  %s583_s3 = sand.u32 1, %s3066_s24  }
  0x37   : > { %3724 = sst [smem:[#allocation36_spill]] %s3723_s27  ;;  %s586_s7 = scalar_lea.vmem [#allocation5], %s3257_s15 }
  0x38   : > { %s3726_s1 = sld [smem:[#allocation38_spill]]  ;;  %s593_s9 = sshll.u32 %s586_s7, 4  ;;  %s594_s9 = int_to_ptr.vmem [resolvable:$true] %s593_s9 }
  0x39   : > { %s3277_s5 = scalar_lea.sflag [#allocation6], %s583_s3  ;;  %p2740_p9 = pneg %p3267_p7 }
  0x3e   : > { %s589_s17 = scalar_lea.hbm %s3726_s1, %s3066_s24  ;;  %s2743_s26 = scalar_lea.hbm %s3726_s1, 2 }
  0x3f   : > { %s591_s18 = sshll.u32 %s589_s17, 4  ;;  %s592_s18 = int_to_ptr.hbm [resolvable:$true] %s591_s18 }
  0x40   : > { %s2736_s23 = sshra.s32 %s592_s18, 4  ;;  %s2737_s23 = int_to_ptr.hbm [resolvable:$true] %s2736_s23 }
  0x41   : > { %s2738_s30 = scalar_lea.hbm %s2737_s23, 1  ;;  %p2744_p13 = scmp.lt.s32.totalorder %s2737_s23, %s3726_s1 }
  0x42   : > { %p2739_p8 = scmp.ne.s32.totalorder %s2737_s23, %s2738_s30  ;;  %p2745_p0 = scmp.lt.s32.totalorder %s2743_s26, %s2738_s30 }
  0x44   : > { %p2741_p10 = pnand %p2740_p9, %p2739_p8  ;;  %p2746_p2 = por %p2745_p0, %p2744_p13 }
  0x46   : > { %p2742_p11 = pneg %p2741_p10 }
  0x48   : > { %p2747_p1 = pnand %p2746_p2, %p2742_p11 }
  0x4a   : > { %2750 = shalt.err (!%p2747_p1)
}
  0x4b   : > { %2481 = dma.hbm_to_vmem [thread:$0]  (!%p3267_p7), %s592_s18, 16, %s594_s9, %s3277_s5  }
  0x4c   : > { %s3727_s4 = sld [smem:[#allocation40_spill]]  ;;  %s3074_s27 = smov [#allocation10]  }
  0x4d   : > { %s448_s19 = sshll.u32 %s3074_s27, 4  ;;  %s3728_s6 = sld [smem:[#allocation42_spill]]  ;;  %s449_s19 = int_to_ptr.vmem [resolvable:$true] %s448_s19 }
  0x4e   : > { %s3075_s17 = smov [#allocation13]   ;;  %s3729_s8 = sld [smem:[#allocation44_spill]] }
  0x4f   : > { %s474_s7 = sshll.u32 %s3075_s17, 4  ;;  %s519_s27 = sshll.u32 %s3680_s10, 4  ;;  %s475_s7 = int_to_ptr.vmem [resolvable:$true] %s474_s7  ;;  %s520_s27 = int_to_ptr.hbm [resolvable:$true] %s519_s27 }
  0x50   : > { %s3076_s23 = smov [#allocation16]   ;;  %s3077_s1 = smov [#allocation19]  }
  0x51   : > { %s498_s30 = sshll.u32 %s3076_s23, 4  ;;  %s3698_s17 = smov 8   ;;  %s499_s30 = int_to_ptr.vmem [resolvable:$true] %s498_s30 }
  0x52   : > { %s446_s25 = sshll.u32 %s3727_s4, 4  ;;  %s542_s9 = sshll.u32 %s3684_s14, 4  ;;  %s447_s25 = int_to_ptr.hbm [resolvable:$true] %s446_s25  ;;  %s543_s9 = int_to_ptr.hbm [resolvable:$true] %s542_s9 }
  0x53   : > { %s472_s26 = sshll.u32 %s3728_s6, 4  ;;  %s3080_s18 = smov [#allocation20]   ;;  %s473_s26 = int_to_ptr.hbm [resolvable:$true] %s472_s26 }
  0x54   : > { %2453 = dma.hbm_to_vmem [thread:$0]  (!%p3215_p6), %s447_s25, 16, %s449_s19, [#allocation9]  }
  0x55   : > { %s496_s21 = sshll.u32 %s3729_s8, 4  ;;  %s521_s25 = sshll.u32 %s3077_s1, 4  ;;  %s497_s21 = int_to_ptr.hbm [resolvable:$true] %s496_s21  ;;  %s522_s25 = int_to_ptr.vmem [resolvable:$true] %s521_s25 }
  0x56   : > { %2459 = dma.hbm_to_vmem [thread:$0]  (!%p3215_p6), %s473_s26, 16, %s475_s7, [#allocation12]  }
  0x57   : > { %2465 = dma.hbm_to_vmem [thread:$0]  (!%p3215_p6), %s497_s21, 16, %s499_s30, [#allocation15]  }
  0x58   : > { %s3697_s19 = smov 128   ;;  %s544_s3 = sshll.u32 %s3080_s18, 4  ;;  %s545_s3 = int_to_ptr.vmem [resolvable:$true] %s544_s3 }
  0x59   : > { %2471 = dma.hbm_to_vmem [thread:$0]  (!%p3215_p6), %s520_s27, 2048, %s522_s25, [#allocation18], %s3697_s19, %s3697_s19, %s3698_s17  }
  0x5a   : > { %s3081_s21 = smov 64   ;;  %s3082_s23 = smov 4  }
  0x5b   : > { %2474 = dma.hbm_to_vmem [thread:$0]  (!%p3215_p6), %s543_s9, 2048, %s545_s3, [#allocation21], %s3081_s21, %s3081_s21, %s3082_s23  }
  0x5c   : > { %s2095_s30 = sshll.u32 %s3257_s15, 4  ;;  %s2345_s1 = sshll.u32 %s3066_s24, 4 }
  0x5d   : > { %s3730_s8 = sld [smem:[#allocation37_spill]]  ;;  %s565_s19 = scalar_lea.vmem [#allocation2], %s2095_s30 }
  0x5e   : > { %s573_s26 = sshll.u32 %s565_s19, 4  ;;  %s562_s7 = scalar_lea.sflag [#allocation3], %s3257_s15  ;;  %s574_s26 = int_to_ptr.vmem [resolvable:$true] %s573_s26 }
  0x63   : > { %s570_s27 = scalar_lea.hbm %s3730_s8, %s2345_s1  ;;  %s2923_s3 = scalar_lea.hbm %s3730_s8, 32 }
  0x64   : > { %s571_s25 = sshll.u32 %s570_s27, 4  ;;  %s572_s25 = int_to_ptr.hbm [resolvable:$true] %s571_s25 }
  0x65   : > { %s2916_s17 = sshra.s32 %s572_s25, 4  ;;  %s2917_s17 = int_to_ptr.hbm [resolvable:$true] %s2916_s17 }
  0x66   : > { %s2918_s18 = scalar_lea.hbm %s2917_s17, 16  ;;  %p2924_p10 = scmp.lt.s32.totalorder %s2917_s17, %s3730_s8 }
  0x67   : > { %p2919_p1 = scmp.ne.s32.totalorder %s2917_s17, %s2918_s18  ;;  %p2925_p11 = scmp.lt.s32.totalorder %s2923_s3, %s2918_s18 }
  0x69   : > { %p2921_p8 = pnand %p2919_p1, %p2740_p9  ;;  %p2926_p13 = por %p2925_p11, %p2924_p10 }
  0x6b   : > { %p2922_p6 = pneg %p2921_p8 }
  0x6d   : > { %p2927_p0 = pnand %p2926_p13, %p2922_p6 }
  0x6f   : > { %2930 = shalt.err (!%p2927_p0)
}
  0x70   : > { %s3731_s19 = smov 8   ;;  %s3732_s21 = smov 128  }
  0x71   : > { %2478 = dma.hbm_to_vmem [thread:$0]  (!%p3267_p7), %s572_s25, 256, %s574_s26, %s562_s7, %s3732_s21, %s3732_s21, %s3731_s19  }
  0x72   : > { %s606_s1 = scalar_lea.hbm %s3672_s2, %s3066_s24  ;;  %s603_s20 = scalar_lea.vmem [#allocation7], %s3257_s15 }
  0x73   : > { %s608_s27 = sshll.u32 %s606_s1, 4  ;;  %s610_s17 = sshll.u32 %s603_s20, 4  ;;  %s609_s27 = int_to_ptr.hbm [resolvable:$true] %s608_s27  ;;  %s611_s17 = int_to_ptr.vmem [resolvable:$true] %s610_s17 }
  0x74   : > { %s2946_s18 = sshra.s32 %s609_s27, 4  ;;  %s2953_s25 = scalar_lea.hbm %s3672_s2, 2  ;;  %s2947_s18 = int_to_ptr.hbm [resolvable:$true] %s2946_s18 }
  0x75   : > { %s2948_s9 = scalar_lea.hbm %s2947_s18, 1  ;;  %p2954_p6 = scmp.lt.s32.totalorder %s2947_s18, %s3672_s2 }
  0x76   : > { %p2949_p2 = scmp.ne.s32.totalorder %s2947_s18, %s2948_s9  ;;  %p2955_p10 = scmp.lt.s32.totalorder %s2953_s25, %s2948_s9 }
  0x78   : > { %p2951_p1 = pnand %p2949_p2, %p2740_p9  ;;  %p2956_p11 = por %p2955_p10, %p2954_p6 }
  0x7a   : > { %p2952_p8 = pneg %p2951_p1 }
  0x7c   : > { %p2957_p13 = pnand %p2956_p11, %p2952_p8 }
  0x7e   : > { %2960 = shalt.err (!%p2957_p13)
}
  0x7f   : > { %2484 = dma.hbm_to_vmem [thread:$0]  (!%p3267_p7), %s609_s27, 16, %s611_s17, %s3277_s5  }
  0x80   : > { %619 = sbr.rel (%p3203_p3) target bundleno = 2541 (0x9ed), region = 84  ;;  %s3361_s15 = sand.u32 (!%p3203_p3), 1, %s3058_s22  }
  0x81   : > { %s2099_s6 = sshll.u32 (!%p3203_p3), %s3361_s15, 4  ;;  %s622_s19 = scalar_lea.sflag (!%p3203_p3), [#allocation3], %s3361_s15 }
  0x82   : > { %s625_s21 = scalar_lea.vmem (!%p3203_p3), [#allocation2], %s2099_s6 }
  0x85   : > { %3021 = dma.done.wait (%p3250_p12), %s622_s19, 256  }
  0x86   : > { %3023 = vsyncadd (%p3250_p12), %s622_s19, 4294967040  ;;  %s631_s29 = sand.u32 1, %s3198_s28   ;;  %s634_s0 = scalar_lea.vmem [#allocation5], %s3361_s15 }
  0x87   : > { %s632_s5 = scalar_lea.sflag [#allocation6], %s631_s29 }
  0x88   : > { %3025 = dma.done.wait (%p3250_p12), %s632_s5, 32  }
  0x89   : > { %3027 = vsyncadd (%p3250_p12), %s632_s5, 4294967264  ;;  %s643_s23 = scalar_lea.vmem [#allocation7], %s3361_s15  ;;  %p3733_p3 = scmp.eq.s32.totalorder %s3198_s28, 0 }
  0x8b   : > { %3029 = dma.done.wait (%p3733_p3), [#allocation9], 32   ;;  %p3734_p7 = pmov %p3733_p3 }
  0x8c   : > { %p3735_p9 = pmov %p3733_p3 }
  0x8d   : > { %3031 = vsyncadd (%p3734_p7), [#allocation9], 4294967264 }
  0x8e   : > { %3033 = dma.done.wait (%p3735_p9), [#allocation12], 3088   ;;  %p3736_p0 = pmov %p3733_p3 }
  0x90   : > { %3035 = vsyncadd (%p3736_p0), [#allocation12], 4294964208  ;;  %p3737_p2 = pmov %p3736_p0 }
  0x91   : > { %p3738_p1 = pmov %p3736_p0 }
  0x92   : > { %3037 = dma.done.wait (%p3737_p2), [#allocation15], 32  }
  0x93   : > { %3039 = vsyncadd (%p3738_p1), [#allocation15], 4294967264  ;;  %p3739_p12 = pmov %p3736_p0 }
  0x94   : > { %p3740_p8 = pmov %p3736_p0 }
  0x95   : > { %3041 = dma.done.wait (%p3739_p12), [#allocation18], 2064  }
  0x96   : > { %3043 = vsyncadd (%p3740_p8), [#allocation18], 4294965232  ;;  %p3741_p6 = pmov %p3736_p0 }
  0x97   : > { %p3742_p10 = pmov %p3736_p0 }
  0x98   : > { %3045 = dma.done.wait (%p3741_p6), [#allocation21], 2048  }
  0x99   : > { %3047 = vsyncadd (%p3742_p10), [#allocation21], 4294965248  ;;  %v3398_v0 = vld [vmem:[%s625_s21] sm:$0xff]  ;;  %v3401_v1 = vld [vmem:[%s625_s21 + $0x8] sm:$0xff]  ;;  %v3083_v2 = vmov 128.0   ;;  %vm1036_vm7 = vcmask 523264  }
  0x9a   : > { %751 = vadd.xlane.f32.xlu0 %v3398_v0  ;;  %2570 = vrcp.f32 %v3083_v2  ;;  %v2196_v17 = vld [vmem:[#allocation11 + $0xa8] sm:$0xf]  ;;  %v2368_v18 = vld [vmem:[#allocation11 + $0xb0] sm:$0xf0]  ;;  %v2367_v19 = vld [vmem:[#allocation11 + $0xac] sm:$0xf] }
  0x9b   : > { %v2197_v20 = vor.u32 %v2368_v18, %v2196_v17  ;;  %v2198_v21 = vld [vmem:[#allocation11 + $0xb4] sm:$0xf0]  ;;  %v2204_v22 = vld [vmem:[#allocation11 + $0xb0] sm:$0xf]  ;;  %v2369_v23 = vld [vmem:[#allocation11 + $0xb8] sm:$0xf0] }
  0x9c   : > { %v2201_v24 = vor.u32 %v2367_v19, %v2198_v21  ;;  %v2205_v25 = vor.u32 %v2369_v23, %v2204_v22  ;;  %v2184_v26 = vld [vmem:[#allocation11 + $0x90] sm:$0xf]  ;;  %v2365_v27 = vld [vmem:[#allocation11 + $0x98] sm:$0xf0]  ;;  %v2364_v28 = vld [vmem:[#allocation11 + $0x94] sm:$0xf] }
  0x9d   : > { %969 = vmatpush.bf16.msra.mxu0 %v2197_v20  ;;  %v2185_v29 = vor.u32 %v2365_v27, %v2184_v26  ;;  %v2186_v30 = vld [vmem:[#allocation11 + $0x9c] sm:$0xf0]  ;;  %v2192_v31 = vld [vmem:[#allocation11 + $0x98] sm:$0xf]  ;;  %v2366_v32 = vld [vmem:[#allocation11 + $0xa0] sm:$0xf0] }
  0x9e   : > { %983 = vmatpush.bf16.msra.mxu1 %v2201_v24  ;;  %997 = vmatpush.bf16.msra.mxu2 %v2205_v25  ;;  %v2189_v33 = vor.u32 %v2364_v28, %v2186_v30  ;;  %v2193_v34 = vor.u32 %v2366_v32, %v2192_v31  ;;  %v2172_v35 = vld [vmem:[#allocation11 + $0x78] sm:$0xf]  ;;  %v2362_v36 = vld [vmem:[#allocation11 + $0x80] sm:$0xf0]  ;;  %v2361_v37 = vld [vmem:[#allocation11 + $0x7c] sm:$0xf] }
  0x9f   : > { %v2173_v38 = vor.u32 %v2362_v36, %v2172_v35  ;;  %v2174_v39 = vld [vmem:[#allocation11 + $0x84] sm:$0xf0]  ;;  %v2180_v40 = vld [vmem:[#allocation11 + $0x80] sm:$0xf]  ;;  %v2363_v41 = vld [vmem:[#allocation11 + $0x88] sm:$0xf0] }
  0xa0   : > { %v2571_v3 = vpop.eup %2570  ;;  %v2177_v42 = vor.u32 %v2361_v37, %v2174_v39  ;;  %v2181_v43 = vor.u32 %v2363_v41, %v2180_v40  ;;  %v2160_v44 = vld [vmem:[#allocation11 + $0x60] sm:$0xf]  ;;  %v2359_v45 = vld [vmem:[#allocation11 + $0x68] sm:$0xf0]  ;;  %v2358_v46 = vld [vmem:[#allocation11 + $0x64] sm:$0xf] }
  0xa1   : > { %v756_v4 = vmul.f32 128.0, %v2571_v3  ;;  %vm760_vm0 = vweird.f32 %v2571_v3  ;;  %970 = vmatpush.bf16.msra.mxu0 %v2185_v29  ;;  %v2161_v47 = vor.u32 %v2359_v45, %v2160_v44  ;;  %v2162_v48 = vld [vmem:[#allocation11 + $0x6c] sm:$0xf0]  ;;  %v2168_v49 = vld [vmem:[#allocation11 + $0x68] sm:$0xf]  ;;  %vm1057_vm9 = vcmask 130048  }
  0xa2   : > { %753 = vadd.xlane.f32.xlu0 %v3401_v1  ;;  %984 = vmatpush.bf16.msra.mxu1 %v2189_v33  ;;  %v2360_v50 = vld [vmem:[#allocation11 + $0x70] sm:$0xf0]  ;;  %v2165_v51 = vor.u32 %v2358_v46, %v2162_v48  ;;  %v2148_v53 = vld [vmem:[#allocation11 + $0x48] sm:$0xf]  ;;  %v2355_v55 = vld [vmem:[#allocation11 + $0x4c] sm:$0xf] }
  0xa3   : > { %v757_v5 = vsub.f32 1.0, %v756_v4  ;;  %998 = vmatpush.bf16.msra.mxu2 %v2193_v34  ;;  %v2169_v52 = vor.u32 %v2360_v50, %v2168_v49  ;;  %v2356_v54 = vld [vmem:[#allocation11 + $0x50] sm:$0xf0]  ;;  %v2150_v57 = vld [vmem:[#allocation11 + $0x54] sm:$0xf0]  ;;  %s3085_s16 = smov 64  }
  0xa4   : > { %v2149_v56 = vor.u32 %v2356_v54, %v2148_v53  ;;  %v2156_v58 = vld [vmem:[#allocation11 + $0x50] sm:$0xf]  ;;  %v2357_v59 = vld [vmem:[#allocation11 + $0x58] sm:$0xf0]  ;;  %v2153_v60 = vor.u32 %v2355_v55, %v2150_v57  ;;  %v2352_v2 = vld [vmem:[#allocation11 + $0x34] sm:$0xf] }
  0xa5   : > { %v758_v6 = vmul.f32 %v2571_v3, %v757_v5  ;;  %971 = vmatpush.bf16.msra.mxu0 %v2173_v38  ;;  %v2157_v61 = vor.u32 %v2357_v59, %v2156_v58  ;;  %v2136_v62 = vld [vmem:[#allocation11 + $0x30] sm:$0xf]  ;;  %v2353_v63 = vld [vmem:[#allocation11 + $0x38] sm:$0xf0]  ;;  %v2138_v4 = vld [vmem:[#allocation11 + $0x3c] sm:$0xf0] }
  0xa6   : > { %985 = vmatpush.bf16.msra.mxu1 %v2177_v42  ;;  %v2144_v5 = vld [vmem:[#allocation11 + $0x38] sm:$0xf]  ;;  %v2132_v17 = vld [vmem:[#allocation11 + $0x20] sm:$0xf]  ;;  %v2351_v18 = vld [vmem:[#allocation11 + $0x28] sm:$0xf0] }
  0xa7   : > { %v759_v7 = vadd.f32 %v2571_v3, %v758_v6  ;;  %999 = vmatpush.bf16.msra.mxu2 %v2181_v43  ;;  %v2354_v6 = vld [vmem:[#allocation11 + $0x40] sm:$0xf0]  ;;  %v2133_v20 = vor.u32 %v2351_v18, %v2132_v17  ;;  %v2112_v21 = vld [vmem:[#allocation11] sm:$0xf]  ;;  %v2347_v22 = vld [vmem:[#allocation11 + $0x8] sm:$0xf0] }
  0xa8   : > { %v2346_v23 = vld [vmem:[#allocation11 + $0x4] sm:$0xf]  ;;  %v2113_v25 = vor.u32 %v2347_v22, %v2112_v21  ;;  %v2114_v26 = vld [vmem:[#allocation11 + $0xc] sm:$0xf0]  ;;  %v2120_v27 = vld [vmem:[#allocation11 + $0x8] sm:$0xf] }
  0xa9   : > { %v3404_v8 = vsel %vm760_vm0, %v2571_v3, %v759_v7  ;;  %972 = vmatpush.bf16.msra.mxu0 %v2161_v47  ;;  %v2137_v3 = vor.u32 %v2353_v63, %v2136_v62  ;;  %v2141_v7 = vor.u32 %v2352_v2, %v2138_v4  ;;  %v2348_v28 = vld [vmem:[#allocation11 + $0x10] sm:$0xf0]  ;;  %v2117_v30 = vor.u32 %v2346_v23, %v2114_v26  ;;  %v2562_v49 = vld [vmem:[#allocation8] ss:$0 sm:$0xff]  ;;  %v2563_v54 = vld [vmem:[#allocation10] ss:$0 sm:$0xff] }
  0xaa   : > { %986 = vmatpush.bf16.msra.mxu1 %v2165_v51  ;;  %v2121_v31 = vor.u32 %v2348_v28, %v2120_v27  ;;  %v3084_v23 = vmov 0.0   ;;  %s3747_s19 = sld [smem:[#allocation46_spill]]  ;;  %s2402_s21 = sshll.u32 %s3198_s28, 4 }
  0xab   : > { %1000 = vmatpush.bf16.msra.mxu2 %v2169_v52  ;;  %s745_s29 = scalar_lea.vmem [#allocation22], %s2099_s6  ;;  %s1874_s28 = scalar_lea.sflag [#allocation4], %s3361_s15 }
  0xac   : > { %s1886_s1 = sshll.u32 %s745_s29, 4  ;;  %s1887_s1 = int_to_ptr.vmem [resolvable:$true] %s1886_s1 }
  0xad   : > { %973 = vmatpush.bf16.msra.mxu0 %v2149_v56 }
  0xae   : > { %987 = vmatpush.bf16.msra.mxu1 %v2153_v60 }
  0xaf   : > { %1001 = vmatpush.bf16.msra.mxu2 %v2157_v61 }
  0xb1   : > { %974 = vmatpush.bf16.msra.mxu0 %v2137_v3 }
  0xb2   : > { %988 = vmatpush.bf16.msra.mxu1 %v2141_v7 }
 0x10d   : > { %v752_v9 = vpop.xlane.xlu0 %751 }
 0x10e   : > { %v762_v10 = vmul.f32 %v3404_v8, %v752_v9  ;;  %v2145_v9 = vor.u32 %v2354_v6, %v2144_v5 }
 0x110   : > { %v3408_v11 = vsub.f32 %v3398_v0, %v762_v10  ;;  %1002 = vmatpush.bf16.msra.mxu2 %v2145_v9  ;;  %v2124_v10 = vld [vmem:[#allocation11 + $0x18] sm:$0xf] }
 0x112   : > { %v766_v12 = vmul.f32 %v3408_v11, %v3408_v11 }
 0x114   : > { %768 = vadd.xlane.f32.xlu1 %v766_v12  ;;  %v2350_v12 = vld [vmem:[#allocation11 + $0x20] sm:$0xf0]  ;;  %1003 = vmatpush.bf16.msra.mxu2 %v2133_v20  ;;  %v1011_v20 = vlaneseq }
 0x115   : > { %v754_v13 = vpop.xlane.xlu0 %753 }
 0x116   : > { %v763_v14 = vmul.f32 %v3404_v8, %v754_v13  ;;  %v2349_v13 = vld [vmem:[#allocation11 + $0x1c] sm:$0xf]  ;;  %v3424_v21 = vshrl.u32 %v1011_v20, 7  ;;  %v1015_v22 = vand.u32 127, %v1011_v20 }
 0x118   : > { %v3414_v15 = vsub.f32 %v3401_v1, %v763_v14  ;;  %v2125_v14 = vor.u32 %v2350_v12, %v2124_v10  ;;  %1004 = vmatpush.bf16.msra.mxu2 %v2121_v31  ;;  %vm1016_vm8 = vcmp.gt.s32.totalorder %v1015_v22, %v3424_v21 }
 0x11a   : > { %v767_v16 = vmul.f32 %v3414_v15, %v3414_v15  ;;  %975 = vmatpush.bf16.msra.mxu0 %v2125_v14 }
 0x11c   : > { %770 = vadd.xlane.f32.xlu1 %v767_v16  ;;  %v2126_v16 = vld [vmem:[#allocation11 + $0x24] sm:$0xf0] }
 0x11d   : > { %v2129_v19 = vor.u32 %v2349_v13, %v2126_v16 }
 0x11e   : > { %976 = vmatpush.bf16.msra.mxu0 %v2113_v25  ;;  %v3428_v25 = vadd.s32 8, %v3424_v21 }
 0x11f   : > { %989 = vmatpush.bf16.msra.mxu1 %v2129_v19 }
 0x120   : > { %vm1017_vm10 = vcmp.gt.s32.totalorder %v1015_v22, %v3428_v25 }
 0x123   : > { %990 = vmatpush.bf16.msra.mxu1 %v2117_v30 }
 0x187   : > { %v769_v24 = vpop.xlane.xlu1 %768 }
 0x188   : > { %v772_v29 = vmul.f32 %v769_v24, %v3404_v8  ;;  %v1018_v24 = vsel %vm1016_vm8, -1e+30, %v3084_v23 }
 0x18a   : > { %v774_v32 = vadd.f32 1e-05, %v772_v29  ;;  %v1019_v29 = vsel %vm1017_vm10, -1e+30, %v3084_v23  ;;  %vm1488_vm10 = vcmp.lt.s32.totalorder %v3424_v21, 7 }
 0x18c   : > { %2572 = vrsqrt.f32 %v774_v32  ;;  %vm782_vm2 = vweird.f32 %v774_v32 }
 0x18f   : > { %v771_v33 = vpop.xlane.xlu1 %770 }
 0x190   : > { %v773_v34 = vmul.f32 %v771_v33, %v3404_v8 }
 0x192   : > { %v2573_v35 = vpop.eup %2572  ;;  %v775_v36 = vadd.f32 1e-05, %v773_v34 }
 0x193   : > { %v777_v37 = vmul.f32 %v2573_v35, %v774_v32  ;;  %vm783_vm1 = vweird.f32 %v2573_v35 }
 0x194   : > { %2574 = vrsqrt.f32 %v775_v36  ;;  %vm784_vm3 = vmor %vm782_vm2, %vm783_vm1  ;;  %vm792_vm5 = vweird.f32 %v775_v36 }
 0x195   : > { %v778_v38 = vmul.f32 %v2573_v35, %v777_v37 }
 0x197   : > { %v779_v39 = vmul.f32 0.5, %v778_v38 }
 0x199   : > { %v780_v40 = vsub.f32 1.5, %v779_v39 }
 0x19a   : > { %v2575_v41 = vpop.eup %2574 }
 0x19b   : > { %v781_v42 = vmul.f32 %v2573_v35, %v780_v40  ;;  %v787_v43 = vmul.f32 %v2575_v41, %v775_v36  ;;  %vm793_vm4 = vweird.f32 %v2575_v41 }
 0x19c   : > { %vm794_vm6 = vmor %vm792_vm5, %vm793_vm4 }
 0x19d   : > { %v788_v44 = vmul.f32 %v2575_v41, %v787_v43  ;;  %v785_v45 = vsel %vm784_vm3, %v2573_v35, %v781_v42 }
 0x19e   : > { %v796_v48 = vmul.f32 %v785_v45, %v3408_v11 }
 0x19f   : > { %v789_v46 = vmul.f32 0.5, %v788_v44 }
 0x1a0   : > { %v801_v53 = vmul.f32 %v2562_v49, %v796_v48 }
 0x1a1   : > { %v790_v47 = vsub.f32 1.5, %v789_v46 }
 0x1a2   : > { %v806_v56 = vadd.f32 %v2563_v54, %v801_v53 }
 0x1a3   : > { %v791_v50 = vmul.f32 %v2575_v41, %v790_v47 }
 0x1a5   : > { %v795_v51 = vsel %vm794_vm6, %v2575_v41, %v791_v50 }
 0x1a6   : > { %v797_v52 = vmul.f32 %v795_v51, %v3414_v15 }
 0x1a8   : > { %v802_v55 = vmul.f32 %v2562_v49, %v797_v52 }
 0x1aa   : > { %v807_v57 = vadd.f32 %v2563_v54, %v802_v55 }
 0x1ac   : > { %v808_v58 = vpack.c.bf16 %v807_v57, %v806_v56 }
 0x1ae   : > { %977 = vmatmul.bf16.vlgmr.msra.gmra.mxu0 %v808_v58  ;;  %991 = vmatmul.bf16.vlgmr.msra.gmra.mxu1 %v808_v58 }
 0x1af   : > { %1005 = vmatmul.bf16.vlgmr.msra.gmra.mxu2 %v808_v58 }
 0x22b   : > { %v978_v59 = vpop.f32.mrf.mxu0  ;;  %v992_v60 = vpop.f32.mrf.mxu1 }
 0x22c   : > { %v1022_v61 = vpack.c.bf16 %v992_v60, %v992_v60  ;;  %v1020_v7 = vpack.c.bf16 %v978_v59, %v978_v59 }
 0x22e   : > { %v1033_v3 = vunpack.c.l.b16 %v1022_v61  ;;  %v1028_v17 = vunpack.c.l.b16 %v1020_v7 }
 0x232   : > { %v1006_v11 = vpop.f32.mrf.mxu2 }
 0x233   : > { %v994_v62 = vpop.f32.mrf.mxu1  ;;  %v980_v2 = vpop.f32.mrf.mxu0  ;;  %v1024_v6 = vpack.c.bf16 %v1006_v11, %v1006_v11 }
 0x234   : > { %v1023_v63 = vpack.c.bf16 %v994_v62, %v994_v62  ;;  %v1021_v15 = vpack.c.bf16 %v980_v2, %v980_v2 }
 0x235   : > { %v1089_v14 = vunpack.c.l.b16 %v1024_v6 }
 0x236   : > { %v1034_v4 = vunpack.c.l.b16 %v1023_v63  ;;  %v1029_v13 = vunpack.c.l.b16 %v1021_v15 }
 0x238   : > { %v1035_v5 = vpack.c.b16 %v1034_v4, %v1033_v3  ;;  %v1030_v19 = vpack.c.b16 %v1029_v13, %v1028_v17 }
 0x23a   : > { %v1008_v9 = vpop.f32.mrf.mxu2  ;;  %v1041_v10 = vsel %vm1036_vm7, %v1035_v5, 0 }
 0x23b   : > { %v1025_v12 = vpack.c.bf16 %v1008_v9, %v1008_v9  ;;  %1050 = vmatpush.bf16.xpose.msra.mxu3 %v1041_v10 }
 0x23d   : > { %v1090_v16 = vunpack.c.l.b16 %v1025_v12 }
 0x23f   : > { %v1091_v18 = vpack.c.b16 %v1090_v16, %v1089_v14 }
 0x242   : > { %2206 = vmatmul.msk.bf16.vlgmr.msra.gmra.mxu3 %vm1036_vm7, %v1030_v19 }
 0x243   : > { %1103 = vmatpush.bf16.msrb.mxu3 %v1091_v18 }
 0x2c5   : > { %v1052_v26 = vpop.f32.mrf.mxu3 }
 0x2c6   : > { %v1053_v27 = vadd.f32 %v1052_v26, %v1018_v24 }
 0x2c8   : > { %v1058_v28 = vsel %vm1057_vm9, %v1053_v27, -inf }
 0x2c9   : > { %1059 = vmax.xlane.f32.xlu2 %v1058_v28 }
 0x2cd   : > { %v1054_v30 = vpop.f32.mrf.mxu3 }
 0x2ce   : > { %v1055_v31 = vadd.f32 %v1054_v30, %v1019_v29 }
 0x2d0   : > { %v1061_v32 = vsel %vm1057_vm9, %v1055_v31, -inf }
 0x2d1   : > { %1062 = vmax.xlane.f32.xlu2 %v1061_v32 }
 0x2e9   : > { %1112 = vrot.lane.b32.xlu2 %v1035_v5, %s3085_s16 }
 0x33c   : > { %v1060_v33 = vpop.xlane.xlu2 %1059 }
 0x33d   : > { %v1064_v34 = vsub.f32 %v1053_v27, %v1060_v33 }
 0x33f   : > { %v1066_v35 = vmul.f32 1.442695, %v1064_v34 }
 0x341   : > { %2576 = vpow2.f32 %v1066_v35 }
 0x344   : > { %v1063_v36 = vpop.xlane.xlu2 %1062 }
 0x345   : > { %v1065_v37 = vsub.f32 %v1055_v31, %v1063_v36 }
 0x347   : > { %v2577_v38 = vpop.eup %2576  ;;  %v1068_v39 = vmul.f32 1.442695, %v1065_v37 }
 0x348   : > { %v1070_v40 = vsel %vm1057_vm9, %v2577_v38, 0.0 }
 0x349   : > { %2578 = vpow2.f32 %v1068_v39  ;;  %1071 = vadd.xlane.f32.xlu0 %v1070_v40 }
 0x34c   : > { %v1113_v41 = vpop.permute.xlu2 %1112 }
 0x34d   : > { %v1118_v42 = vsel %vm1036_vm7, %v1113_v41, 0 }
 0x34e   : > { %1127 = vmatpush.bf16.xpose.msra.mxu3 %v1118_v42 }
 0x34f   : > { %v2579_v43 = vpop.eup %2578 }
 0x350   : > { %v1073_v44 = vsel %vm1057_vm9, %v2579_v43, 0.0 }
 0x351   : > { %1074 = vadd.xlane.f32.xlu1 %v1073_v44 }
 0x35d   : > { %1110 = vrot.lane.b32.xlu0 %v1030_v19, %s3085_s16 }
 0x365   : > { %1163 = vrot.lane.b32.xlu0 %v1091_v18, %s3085_s16 }
 0x3bc   : > { %v1072_v45 = vpop.xlane.xlu0 %1071 }
 0x3bd   : > { %2580 = vrcp.f32 %v1072_v45 }
 0x3c3   : > { %v2581_v47 = vpop.eup %2580 }
 0x3c4   : > { %v1075_v46 = vpop.xlane.xlu1 %1074  ;;  %v1078_v48 = vmul.f32 %v2581_v47, %v2577_v38 }
 0x3c5   : > { %2582 = vrcp.f32 %v1075_v46 }
 0x3c6   : > { %v1080_v50 = vpack.c.bf16 %v1078_v48, %v1078_v48 }
 0x3c8   : > { %v1084_v54 = vunpack.c.l.b16 %v1080_v50 }
 0x3cb   : > { %v2583_v49 = vpop.eup %2582 }
 0x3cc   : > { %v1079_v51 = vmul.f32 %v2583_v49, %v2579_v43 }
 0x3ce   : > { %v1081_v52 = vpack.c.bf16 %v1079_v51, %v1079_v51 }
 0x3cf   : > { %v1111_v53 = vpop.permute.xlu0 %1110 }
 0x3d0   : > { %v1085_v55 = vunpack.c.l.b16 %v1081_v52 }
 0x3d2   : > { %v1086_v56 = vpack.c.b16 %v1085_v55, %v1084_v54 }
 0x3d4   : > { %2207 = vmatmul.msk.bf16.vlgmr.msrb.gmra.mxu3 %vm1057_vm9, %v1086_v56 }
 0x3d7   : > { %v1164_v57 = vpop.permute.xlu0 %1163 }
 0x3d8   : > { %1176 = vmatpush.bf16.msrb.mxu0 %v1164_v57  ;;  %v2564_v57 = vld [vmem:[#allocation13] ss:$0 sm:$0xff] }
 0x3e4   : > { %2208 = vmatmul.msk.bf16.vlgmr.msra.gmra.mxu3 %vm1036_vm7, %v1111_v53  ;;  %v1247_v53 = vld [vmem:[%s634_s0] sm:$0x1] }
 0x457   : > { %v1105_v58 = vpop.f32.mrf.mxu3 }
 0x45f   : > { %v1107_v59 = vpop.f32.mrf.mxu3 }
 0x467   : > { %v1129_v60 = vpop.f32.mrf.mxu3 }
 0x468   : > { %v1130_v61 = vadd.f32 %v1129_v60, %v1018_v24 }
 0x46a   : > { %v1134_v11 = vsel %vm1057_vm9, %v1130_v61, -inf }
 0x46b   : > { %1135 = vmax.xlane.f32.xlu1 %v1134_v11  ;;  %v2565_v11 = vld [vmem:[#allocation14] ss:$0 sm:$0xff] }
 0x46f   : > { %v1131_v62 = vpop.f32.mrf.mxu3 }
 0x470   : > { %v1132_v63 = vadd.f32 %v1131_v62, %v1019_v29 }
 0x472   : > { %v1137_v2 = vsel %vm1057_vm9, %v1132_v63, -inf }
 0x473   : > { %1138 = vmax.xlane.f32.xlu1 %v1137_v2 }
 0x4de   : > { %v1136_v3 = vpop.xlane.xlu1 %1135 }
 0x4df   : > { %v1140_v4 = vsub.f32 %v1130_v61, %v1136_v3 }
 0x4e1   : > { %v1142_v15 = vmul.f32 1.442695, %v1140_v4 }
 0x4e3   : > { %2584 = vpow2.f32 %v1142_v15  ;;  %v2566_v15 = vld [vmem:[%s643_s23] ss:$0 sm:$0xff] }
 0x4e6   : > { %v1139_v5 = vpop.xlane.xlu1 %1138 }
 0x4e7   : > { %v1141_v6 = vsub.f32 %v1132_v63, %v1139_v5 }
 0x4e9   : > { %v2585_v7 = vpop.eup %2584  ;;  %v1144_v9 = vmul.f32 1.442695, %v1141_v6 }
 0x4ea   : > { %v1146_v10 = vsel %vm1057_vm9, %v2585_v7, 0.0 }
 0x4eb   : > { %2586 = vpow2.f32 %v1144_v9  ;;  %1147 = vadd.xlane.f32.xlu1 %v1146_v10 }
 0x4f1   : > { %v2587_v12 = vpop.eup %2586 }
 0x4f2   : > { %v1149_v13 = vsel %vm1057_vm9, %v2587_v12, 0.0 }
 0x4f3   : > { %1150 = vadd.xlane.f32.xlu2 %v1149_v13 }
 0x55e   : > { %v1148_v14 = vpop.xlane.xlu1 %1147 }
 0x55f   : > { %2588 = vrcp.f32 %v1148_v14 }
 0x565   : > { %v2589_v17 = vpop.eup %2588 }
 0x566   : > { %v1151_v16 = vpop.xlane.xlu2 %1150  ;;  %v1154_v18 = vmul.f32 %v2589_v17, %v2585_v7 }
 0x567   : > { %2590 = vrcp.f32 %v1151_v16 }
 0x568   : > { %v1156_v20 = vpack.c.bf16 %v1154_v18, %v1154_v18 }
 0x56a   : > { %v1160_v24 = vunpack.c.l.b16 %v1156_v20 }
 0x56d   : > { %v2591_v19 = vpop.eup %2590 }
 0x56e   : > { %v1155_v22 = vmul.f32 %v2591_v19, %v2587_v12 }
 0x570   : > { %v1157_v23 = vpack.c.bf16 %v1155_v22, %v1155_v22 }
 0x572   : > { %v1161_v26 = vunpack.c.l.b16 %v1157_v23 }
 0x574   : > { %v1162_v27 = vpack.c.b16 %v1161_v26, %v1160_v24 }
 0x576   : > { %2209 = vmatmul.msk.bf16.vlgmr.msrb.gmra.mxu0 %vm1057_vm9, %v1162_v27  ;;  %v2268_v27 = vld [vmem:[#allocation19 + $0x70] sm:$0xf]  ;;  %vm1473_vm9 = vcmp.lt.s32.totalorder %v3424_v21, 1 }
 0x5f3   : > { %v1178_v28 = vpop.f32.mrf.mxu0 }
 0x5f4   : > { %1185 = vrot.lane.b32.xlu1 %v1178_v28, %s3085_s16  ;;  %v2385_v28 = vld [vmem:[#allocation19 + $0x74] sm:$0xf0] }
 0x5fb   : > { %v1180_v29 = vpop.f32.mrf.mxu0 }
 0x5fc   : > { %1187 = vrot.lane.b32.xlu0 %v1180_v29, %s3085_s16  ;;  %v2384_v29 = vld [vmem:[#allocation19 + $0x74] sm:$0xf]  ;;  %s3749_s16 = sld [smem:[#allocation47_spill]] }
 0x602   : > { %s1885_s30 = scalar_lea.hbm %s3749_s16, %s2402_s21  ;;  %s2996_s9 = scalar_lea.hbm %s3749_s16, 32 }
 0x603   : > { %s1888_s27 = sshll.u32 %s1885_s30, 4  ;;  %s1889_s27 = int_to_ptr.hbm [resolvable:$true] %s1888_s27 }
 0x604   : > { %s2990_s20 = sshra.s32 %s1889_s27, 4  ;;  %s2991_s20 = int_to_ptr.hbm [resolvable:$true] %s2990_s20 }
 0x605   : > { %s2992_s6 = scalar_lea.hbm %s2991_s20, 16  ;;  %p2997_p7 = scmp.lt.s32.totalorder %s2991_s20, %s3749_s16 }
 0x606   : > { %p2993_p11 = scmp.ne.s32.totalorder %s2991_s20, %s2992_s6  ;;  %p2998_p9 = scmp.lt.s32.totalorder %s2996_s9, %s2992_s6 }
 0x608   : > { %p2994_p13 = pnand %p2993_p11, %p3259_p5  ;;  %p2999_p0 = por %p2998_p9, %p2997_p7 }
 0x60a   : > { %p2995_p3 = pneg %p2994_p13 }
 0x60c   : > { %p3000_p2 = pnand %p2999_p0, %p2995_p3 }
 0x666   : > { %v1186_v30 = vpop.permute.xlu1 %1185 }
 0x667   : > { %v1191_v31 = vsel %vm1036_vm7, %v1105_v58, %v1186_v30  ;;  %v1248_v58 = vadd.f32 1.0, %v1247_v53  ;;  %v2269_v30 = vor.u32 %v2385_v28, %v2268_v27  ;;  %v2238_v53 = vld [vmem:[#allocation19 + $0x38] sm:$0xf0] }
 0x668   : > { %v1193_v32 = vadd.f32 %v1191_v31, %v3398_v0  ;;  %v2270_v31 = vld [vmem:[#allocation19 + $0x78] sm:$0xf0] }
 0x669   : > { %v1250_v2 = vperm.slane %v1248_v58, 0  ;;  %1415 = vmatpush.bf16.msrb.mxu1 %v2269_v30 }
 0x66a   : > { %1197 = vadd.xlane.f32.xlu0 %v1193_v32 }
 0x66e   : > { %v1188_v33 = vpop.permute.xlu0 %1187 }
 0x66f   : > { %v1192_v34 = vsel %vm1036_vm7, %v1107_v59, %v1188_v33  ;;  %v2260_v33 = vld [vmem:[#allocation19 + $0x60] sm:$0xf] }
 0x670   : > { %v1194_v35 = vadd.f32 %v1192_v34, %v3401_v1  ;;  %v2383_v34 = vld [vmem:[#allocation19 + $0x64] sm:$0xf0] }
 0x672   : > { %1199 = vadd.xlane.f32.xlu1 %v1194_v35 }
 0x6dd   : > { %v1198_v36 = vpop.xlane.xlu0 %1197 }
 0x6de   : > { %v1201_v37 = vmul.f32 %v1198_v36, %v3404_v8  ;;  %v2261_v36 = vor.u32 %v2383_v34, %v2260_v33 }
 0x6e0   : > { %v1203_v38 = vsub.f32 %v1193_v32, %v1201_v37  ;;  %v2273_v32 = vor.u32 %v2384_v29, %v2270_v31  ;;  %v2262_v37 = vld [vmem:[#allocation19 + $0x68] sm:$0xf0]  ;;  %1416 = vmatpush.bf16.msrb.mxu1 %v2261_v36  ;;  %v2567_v36 = vld [vmem:[#allocation16] ss:$0 sm:$0xff] }
 0x6e2   : > { %v1205_v39 = vmul.f32 %v1203_v38, %v1203_v38  ;;  %1429 = vmatpush.bf16.msrb.mxu2 %v2273_v32 }
 0x6e4   : > { %1207 = vadd.xlane.f32.xlu2 %v1205_v39  ;;  %v2252_v39 = vld [vmem:[#allocation19 + $0x50] sm:$0xf] }
 0x6e5   : > { %v1200_v40 = vpop.xlane.xlu1 %1199 }
 0x6e6   : > { %v1202_v41 = vmul.f32 %v1200_v40, %v3404_v8  ;;  %v2381_v40 = vld [vmem:[#allocation19 + $0x54] sm:$0xf0] }
 0x6e8   : > { %v1204_v42 = vsub.f32 %v1194_v35, %v1202_v41  ;;  %v2382_v35 = vld [vmem:[#allocation19 + $0x64] sm:$0xf]  ;;  %v2380_v41 = vld [vmem:[#allocation19 + $0x54] sm:$0xf] }
 0x6ea   : > { %v1206_v43 = vmul.f32 %v1204_v42, %v1204_v42 }
 0x6ec   : > { %1209 = vadd.xlane.f32.xlu2 %v1206_v43  ;;  %v2254_v43 = vld [vmem:[#allocation19 + $0x58] sm:$0xf0] }
 0x757   : > { %v1208_v0 = vpop.xlane.xlu2 %1207 }
 0x758   : > { %v1211_v44 = vmul.f32 %v1208_v0, %v3404_v8  ;;  %v2257_v0 = vor.u32 %v2380_v41, %v2254_v43  ;;  %v2568_v41 = vld [vmem:[#allocation17] ss:$0 sm:$0xff] }
 0x75a   : > { %v1213_v45 = vadd.f32 1e-05, %v1211_v44  ;;  %v2244_v44 = vld [vmem:[#allocation19 + $0x40] sm:$0xf] }
 0x75c   : > { %2592 = vrsqrt.f32 %v1213_v45  ;;  %vm1221_vm12 = vweird.f32 %v1213_v45 }
 0x75f   : > { %v1210_v1 = vpop.xlane.xlu2 %1209 }
 0x760   : > { %v1212_v46 = vmul.f32 %v1210_v1, %v3404_v8  ;;  %v2378_v1 = vld [vmem:[#allocation19 + $0x44] sm:$0xf] }
 0x762   : > { %v2593_v47 = vpop.eup %2592  ;;  %v1214_v48 = vadd.f32 1e-05, %v1212_v46 }
 0x763   : > { %v1216_v49 = vmul.f32 %v2593_v47, %v1213_v45  ;;  %vm1222_vm11 = vweird.f32 %v2593_v47  ;;  %v2379_v45 = vld [vmem:[#allocation19 + $0x44] sm:$0xf0] }
 0x764   : > { %2594 = vrsqrt.f32 %v1214_v48  ;;  %vm1223_vm13 = vmor %vm1221_vm12, %vm1222_vm11  ;;  %vm1231_vm15 = vweird.f32 %v1214_v48  ;;  %v2245_v46 = vor.u32 %v2379_v45, %v2244_v44  ;;  %v1329_v45 = vld [vmem:[%s3681_s11] sm:$0x3] }
 0x765   : > { %v1217_v50 = vmul.f32 %v2593_v47, %v1216_v49  ;;  %v2236_v49 = vld [vmem:[#allocation19 + $0x30] sm:$0xf] }
 0x767   : > { %v1218_v51 = vmul.f32 0.5, %v1217_v50  ;;  %v2377_v50 = vld [vmem:[#allocation19 + $0x34] sm:$0xf0] }
 0x769   : > { %v1219_v52 = vsub.f32 1.5, %v1218_v51  ;;  %v2376_v51 = vld [vmem:[#allocation19 + $0x34] sm:$0xf] }
 0x76a   : > { %v2595_v54 = vpop.eup %2594 }
 0x76b   : > { %v1220_v55 = vmul.f32 %v2593_v47, %v1219_v52  ;;  %v1226_v56 = vmul.f32 %v2595_v54, %v1214_v48  ;;  %vm1232_vm14 = vweird.f32 %v2595_v54  ;;  %v2237_v52 = vor.u32 %v2377_v50, %v2236_v49  ;;  %v3495_v50 = vld [vmem:[%s3682_s12] ss:$4 sm:$0x3] }
 0x76c   : > { %vm1233_vm0 = vmor %vm1231_vm15, %vm1232_vm14 }
 0x76d   : > { %v1224_v59 = vsel %vm1223_vm13, %v2593_v47, %v1220_v55  ;;  %v1227_v60 = vmul.f32 %v2595_v54, %v1226_v56  ;;  %v2246_v47 = vld [vmem:[#allocation19 + $0x48] sm:$0xf0]  ;;  %v2228_v55 = vld [vmem:[#allocation19 + $0x20] sm:$0xf]  ;;  %v2375_v56 = vld [vmem:[#allocation19 + $0x24] sm:$0xf0] }
 0x76e   : > { %v1235_v61 = vmul.f32 %v1224_v59, %v1203_v38  ;;  %v2265_v38 = vor.u32 %v2382_v35, %v2262_v37  ;;  %v2249_v48 = vor.u32 %v2378_v1, %v2246_v47  ;;  %v2229_v58 = vor.u32 %v2375_v56, %v2228_v55  ;;  %v2230_v59 = vld [vmem:[#allocation19 + $0x28] sm:$0xf0] }
 0x76f   : > { %v1228_v62 = vmul.f32 0.5, %v1227_v60  ;;  %v1331_v1 = vperm.slane %v1329_v45, 0  ;;  %v1447_v47 = vand.u32 15, %v3424_v21 }
 0x770   : > { %v1240_v63 = vmul.f32 %v2564_v57, %v1235_v61  ;;  %1430 = vmatpush.bf16.msrb.mxu2 %v2265_v38  ;;  %v2220_v61 = vld [vmem:[#allocation19 + $0x10] sm:$0xf] }
 0x771   : > { %v1229_v3 = vsub.f32 1.5, %v1228_v62  ;;  %v2372_v62 = vld [vmem:[#allocation19 + $0x14] sm:$0xf]  ;;  %vm3507_vm8 = vcmp.eq.s32.totalorder %v1447_v47, 0 }
 0x772   : > { %v1245_v4 = vadd.f32 %v2565_v11, %v1240_v63 }
 0x773   : > { %v1230_v5 = vmul.f32 %v2595_v54, %v1229_v3  ;;  %v2212_v3 = vld [vmem:[#allocation19] sm:$0xf] }
 0x774   : > { %v1252_v6 = vmul.f32 %v1250_v2, %v1245_v4  ;;  %1431 = vmatpush.bf16.msrb.mxu2 %v2257_v0  ;;  %v2371_v4 = vld [vmem:[#allocation19 + $0x4] sm:$0xf0] }
 0x775   : > { %v1234_v7 = vsel %vm1233_vm0, %v2595_v54, %v1230_v5  ;;  %v2241_v54 = vor.u32 %v2376_v51, %v2238_v53  ;;  %v3500_v51 = vld [vmem:[%s3682_s12 + $0x2] ss:$4 sm:$0x3] }
 0x776   : > { %v1236_v9 = vmul.f32 %v1234_v7, %v1204_v42  ;;  %v3460_v10 = vadd.f32 %v2566_v15, %v1252_v6  ;;  %v2253_v42 = vor.u32 %v2381_v40, %v2252_v39  ;;  %v2370_v6 = vld [vmem:[#allocation19 + $0x4] sm:$0xf]  ;;  %v2214_v7 = vld [vmem:[#allocation19 + $0x8] sm:$0xf0] }
 0x778   : > { %1262 = vadd.xlane.f32.xlu2 %v3460_v10  ;;  %v1241_v12 = vmul.f32 %v2564_v57, %v1236_v9  ;;  %1417 = vmatpush.bf16.msrb.mxu1 %v2253_v42  ;;  %v2374_v57 = vld [vmem:[#allocation19 + $0x24] sm:$0xf] }
 0x779   : > { %1432 = vmatpush.bf16.msrb.mxu2 %v2249_v48  ;;  %v2233_v60 = vor.u32 %v2374_v57, %v2230_v59  ;;  %v1499_v57 = vperm.slane %v3495_v50, 0 }
 0x77a   : > { %v1246_v13 = vadd.f32 %v2565_v11, %v1241_v12  ;;  %v2373_v11 = vld [vmem:[#allocation19 + $0x14] sm:$0xf0]  ;;  %v2213_v12 = vor.u32 %v2371_v4, %v2212_v3  ;;  %v3519_v3 = vld [vmem:[%s3683_s13] sm:$0x3] }
 0x77b   : > { %v2221_v63 = vor.u32 %v2373_v11, %v2220_v61 }
 0x77c   : > { %v1253_v14 = vmul.f32 %v1250_v2, %v1246_v13  ;;  %1418 = vmatpush.bf16.msrb.mxu1 %v2245_v46  ;;  %v2222_v2 = vld [vmem:[#allocation19 + $0x18] sm:$0xf0]  ;;  %v2217_v13 = vor.u32 %v2370_v6, %v2214_v7  ;;  %v1454_v46 = vand.u32 15, %v3428_v25 }
 0x77d   : > { %1433 = vmatpush.bf16.msrb.mxu2 %v2241_v54  ;;  %v2225_v5 = vor.u32 %v2372_v62, %v2222_v2  ;;  %v2393_v7 = vld [vmem:[#allocation20 + $0x38] sm:$0xff] }
 0x77e   : > { %v3463_v16 = vadd.f32 %v2566_v15, %v1253_v14  ;;  %vm3503_vm7 = vcmp.eq.s32.totalorder %v1454_v46, 15  ;;  %1841 = vmatpush.bf16.msrb.mxu3 %v2393_v7 }
 0x780   : > { %1264 = vadd.xlane.f32.xlu0 %v3463_v16  ;;  %1419 = vmatpush.bf16.msrb.mxu1 %v2237_v52  ;;  %v1332_v52 = vperm.slane %v1329_v45, 1 }
 0x781   : > { %1434 = vmatpush.bf16.msrb.mxu2 %v2233_v60 }
 0x784   : > { %1420 = vmatpush.bf16.msrb.mxu1 %v2229_v58  ;;  %v1525_v58 = vperm.slane %v3500_v51, 0 }
 0x785   : > { %1435 = vmatpush.bf16.msrb.mxu2 %v2225_v5 }
 0x788   : > { %1421 = vmatpush.bf16.msrb.mxu1 %v2221_v63 }
 0x789   : > { %1436 = vmatpush.bf16.msrb.mxu2 %v2217_v13 }
 0x78c   : > { %1422 = vmatpush.bf16.msrb.mxu1 %v2213_v12 }
 0x7eb   : > { %v1263_v17 = vpop.xlane.xlu2 %1262 }
 0x7ec   : > { %v1266_v18 = vmul.f32 %v1263_v17, %v3404_v8 }
 0x7ee   : > { %v3468_v19 = vsub.f32 %v3460_v10, %v1266_v18 }
 0x7f0   : > { %v1270_v20 = vmul.f32 %v3468_v19, %v3468_v19 }
 0x7f2   : > { %1272 = vadd.xlane.f32.xlu2 %v1270_v20 }
 0x7f3   : > { %v1265_v22 = vpop.xlane.xlu0 %1264 }
 0x7f4   : > { %v1267_v23 = vmul.f32 %v1265_v22, %v3404_v8 }
 0x7f6   : > { %v3474_v24 = vsub.f32 %v3463_v16, %v1267_v23 }
 0x7f8   : > { %v1271_v26 = vmul.f32 %v3474_v24, %v3474_v24 }
 0x7fa   : > { %1274 = vadd.xlane.f32.xlu0 %v1271_v26 }
 0x865   : > { %v1273_v15 = vpop.xlane.xlu2 %1272 }
 0x866   : > { %v1276_v9 = vmul.f32 %v1273_v15, %v3404_v8 }
 0x868   : > { %v1278_v14 = vadd.f32 1e-05, %v1276_v9  ;;  %v2401_v9 = vld [vmem:[#allocation20 + $0x78] sm:$0xff] }
 0x869   : > { %1855 = vmatpush.bf16.msra.mxu0 %v2401_v9  ;;  %v2396_v9 = vld [vmem:[#allocation20 + $0x50] sm:$0xff] }
 0x86a   : > { %2596 = vrsqrt.f32 %v1278_v14  ;;  %vm1286_vm2 = vweird.f32 %v1278_v14 }
 0x86d   : > { %v1275_v17 = vpop.xlane.xlu0 %1274 }
 0x86e   : > { %v1277_v18 = vmul.f32 %v1275_v17, %v3404_v8 }
 0x870   : > { %v2597_v20 = vpop.eup %2596  ;;  %v1279_v22 = vadd.f32 1e-05, %v1277_v18 }
 0x871   : > { %v1281_v23 = vmul.f32 %v2597_v20, %v1278_v14  ;;  %vm1287_vm1 = vweird.f32 %v2597_v20 }
 0x872   : > { %2598 = vrsqrt.f32 %v1279_v22  ;;  %vm1288_vm3 = vmor %vm1286_vm2, %vm1287_vm1  ;;  %vm1296_vm5 = vweird.f32 %v1279_v22 }
 0x873   : > { %v1282_v26 = vmul.f32 %v2597_v20, %v1281_v23  ;;  %v1539_v23 = vperm.slane %v3519_v3, 0 }
 0x875   : > { %v1283_v27 = vmul.f32 0.5, %v1282_v26 }
 0x877   : > { %v1284_v28 = vsub.f32 1.5, %v1283_v27  ;;  %v2392_v27 = vld [vmem:[#allocation20 + $0x30] sm:$0xff] }
 0x878   : > { %v2599_v29 = vpop.eup %2598  ;;  %1842 = vmatpush.bf16.msrb.mxu3 %v2392_v27 }
 0x879   : > { %v1285_v30 = vmul.f32 %v2597_v20, %v1284_v28  ;;  %v1291_v31 = vmul.f32 %v2599_v29, %v1279_v22  ;;  %vm1297_vm4 = vweird.f32 %v2599_v29 }
 0x87a   : > { %vm1298_vm6 = vmor %vm1296_vm5, %vm1297_vm4 }
 0x87b   : > { %v1292_v32 = vmul.f32 %v2599_v29, %v1291_v31  ;;  %v1289_v33 = vsel %vm1288_vm3, %v2597_v20, %v1285_v30  ;;  %v1500_v31 = vperm.slane %v3495_v50, 1 }
 0x87c   : > { %v1300_v8 = vmul.f32 %v1289_v33, %v3468_v19 }
 0x87d   : > { %v1293_v34 = vmul.f32 0.5, %v1292_v32  ;;  %v2400_v32 = vld [vmem:[#allocation20 + $0x70] sm:$0xff] }
 0x87e   : > { %v1305_v40 = vmul.f32 %v2567_v36, %v1300_v8  ;;  %1856 = vmatpush.bf16.msra.mxu0 %v2400_v32 }
 0x87f   : > { %v1294_v35 = vsub.f32 1.5, %v1293_v34 }
 0x880   : > { %v1310_v43 = vadd.f32 %v2568_v41, %v1305_v40 }
 0x881   : > { %v1295_v37 = vmul.f32 %v2599_v29, %v1294_v35 }
 0x883   : > { %v1299_v38 = vsel %vm1298_vm6, %v2599_v29, %v1295_v37 }
 0x884   : > { %v1301_v39 = vmul.f32 %v1299_v38, %v3474_v24  ;;  %v3489_v24 = vld [vmem:[%s3682_s12 + $0x1] ss:$4 sm:$0x3]  ;;  %v1526_v38 = vperm.slane %v3500_v51, 1 }
 0x885   : > { %v1510_v25 = vperm.slane %v3489_v24, 0  ;;  %v1511_v2 = vperm.slane %v3489_v24, 1 }
 0x886   : > { %v1306_v42 = vmul.f32 %v2567_v36, %v1301_v39 }
 0x888   : > { %v1311_v0 = vadd.f32 %v2568_v41, %v1306_v42 }
 0x88a   : > { %v1312_v44 = vpack.c.bf16 %v1311_v0, %v1310_v43  ;;  %v2391_v43 = vld [vmem:[#allocation20 + $0x28] sm:$0xff] }
 0x88b   : > { %1843 = vmatpush.bf16.msrb.mxu3 %v2391_v43 }
 0x88c   : > { %1423 = vmatmul.bf16.vlgmr.msrb.gmra.mxu1 %v1312_v44  ;;  %1437 = vmatmul.bf16.vlgmr.msrb.gmra.mxu2 %v1312_v44 }
 0x909   : > { %v1424_v19 = vpop.f32.mrf.mxu1 }
 0x90a   : > { %v1425_v49 = vadd.f32 %v1424_v19, %v1331_v1 }
 0x90c   : > { %v1469_v59 = vrot.slane %v1425_v49, 7  ;;  %v1484_v60 = vrot.slane %v1425_v49, 1  ;;  %v1514_v62 = vmul.f32 %v1510_v25, %v1425_v49 }
 0x90f   : > { %v1438_v48 = vpop.f32.mrf.mxu2 }
 0x910   : > { %v1439_v63 = vadd.f32 %v1438_v48, %v1332_v52 }
 0x911   : > { %v1426_v53 = vpop.f32.mrf.mxu1 }
 0x912   : > { %v1427_v55 = vadd.f32 %v1426_v53, %v1331_v1  ;;  %v1470_v28 = vrot.slane %v1439_v63, 7  ;;  %v1485_v29 = vrot.slane %v1439_v63, 1  ;;  %v2399_v1 = vld [vmem:[#allocation20 + $0x68] sm:$0xff]  ;;  %v1515_v46 = vmul.f32 %v1511_v2, %v1439_v63  ;;  %v2390_v53 = vld [vmem:[#allocation20 + $0x20] sm:$0xff] }
 0x913   : > { %1857 = vmatpush.bf16.msra.mxu0 %v2399_v1  ;;  %1844 = vmatpush.bf16.msrb.mxu3 %v2390_v53 }
 0x914   : > { %v1471_v61 = vrot.slane %v1427_v55, 7  ;;  %v1486_v11 = vrot.slane %v1427_v55, 1  ;;  %v1516_v6 = vmul.f32 %v1510_v25, %v1427_v55  ;;  %v1540_v25 = vperm.slane %v3519_v3, 1  ;;  %v2397_v3 = vld [vmem:[#allocation20 + $0x58] sm:$0xff] }
 0x916   : > { %v1474_v4 = vsel %vm1473_vm9, %v1469_v59, %v1471_v61  ;;  %v1476_v15 = vsel %vm1473_vm9, %v1471_v61, %v1469_v59  ;;  %v1491_v5 = vsel %vm1488_vm10, %v1486_v11, %v1484_v60  ;;  %v1489_v13 = vsel %vm1488_vm10, %v1484_v60, %v1486_v11  ;;  %v2389_v11 = vld [vmem:[#allocation20 + $0x18] sm:$0xff] }
 0x917   : > { %v1478_v12 = vsel %vm3507_vm8, 0.0, %v1476_v15  ;;  %v1495_v14 = vsel %vm3503_vm7, 0.0, %v1491_v5  ;;  %v1505_v17 = vmul.f32 %v1499_v57, %v1474_v4  ;;  %v1440_v18 = vpop.f32.mrf.mxu2  ;;  %v1529_v34 = vmul.f32 %v1525_v58, %v1489_v13  ;;  %1845 = vmatpush.bf16.msrb.mxu3 %v2389_v11 }
 0x918   : > { %v1503_v20 = vmul.f32 %v1499_v57, %v1478_v12  ;;  %v1531_v22 = vmul.f32 %v1525_v58, %v1495_v14  ;;  %v1441_v26 = vadd.f32 %v1440_v18, %v1332_v52  ;;  %v2398_v57 = vld [vmem:[#allocation20 + $0x60] sm:$0xff]  ;;  %v2387_v14 = vld [vmem:[#allocation20 + $0x8] sm:$0xff] }
 0x919   : > { %v1520_v30 = vadd.f32 %v1516_v6, %v1505_v17  ;;  %1858 = vmatpush.bf16.msra.mxu0 %v2398_v57  ;;  %v2388_v6 = vld [vmem:[#allocation20 + $0x10] sm:$0xff]  ;;  %v2395_v18 = vld [vmem:[#allocation20 + $0x48] sm:$0xff] }
 0x91a   : > { %v1518_v33 = vadd.f32 %v1514_v62, %v1503_v20  ;;  %v1472_v35 = vrot.slane %v1441_v26, 7  ;;  %v1487_v8 = vrot.slane %v1441_v26, 1  ;;  %v1517_v37 = vmul.f32 %v1511_v2, %v1441_v26 }
 0x91b   : > { %v1535_v36 = vadd.f32 %v1531_v22, %v1520_v30  ;;  %1846 = vmatpush.bf16.msrb.mxu3 %v2388_v6 }
 0x91c   : > { %v1533_v39 = vadd.f32 %v1529_v34, %v1518_v33  ;;  %v1475_v40 = vsel %vm1473_vm9, %v1470_v28, %v1472_v35  ;;  %v1477_v41 = vsel %vm1473_vm9, %v1472_v35, %v1470_v28  ;;  %v1490_v42 = vsel %vm1488_vm10, %v1485_v29, %v1487_v8 }
 0x91d   : > { %v3542_v0 = vadd.f32 %v1539_v23, %v1535_v36  ;;  %v1479_v44 = vsel %vm3507_vm8, 0.0, %v1477_v41  ;;  %v1492_v45 = vsel %vm1488_vm10, %v1487_v8, %v1485_v29  ;;  %v1506_v19 = vmul.f32 %v1500_v31, %v1475_v40  ;;  %1859 = vmatpush.bf16.msra.mxu0 %v2397_v3  ;;  %v2386_v29 = vld [vmem:[#allocation20] sm:$0xff] }
 0x91e   : > { %v1496_v24 = vsel %vm3503_vm7, 0.0, %v1492_v45  ;;  %v1504_v47 = vmul.f32 %v1500_v31, %v1479_v44  ;;  %v3550_v48 = vadd.f32 %v1539_v23, %v1533_v39  ;;  %v1530_v21 = vmul.f32 %v1526_v38, %v1490_v42 }
 0x91f   : > { %v3553_v49 = vmul.f32 0.70710677, %v3542_v0  ;;  %v1521_v50 = vadd.f32 %v1517_v37, %v1506_v19  ;;  %v1532_v51 = vmul.f32 %v1526_v38, %v1496_v24  ;;  %1847 = vmatpush.bf16.msrb.mxu3 %v2387_v14  ;;  %v2394_v24 = vld [vmem:[#allocation20 + $0x40] sm:$0xff] }
 0x920   : > { %v1519_v52 = vadd.f32 %v1515_v46, %v1504_v47  ;;  %v3557_v55 = vmul.f32 0.70710677, %v3550_v48 }
 0x921   : > { %v3560_v54 = vand.u32 2147483647, %v3553_v49  ;;  %v1536_v56 = vadd.f32 %v1532_v51, %v1521_v50  ;;  %1860 = vmatpush.bf16.msra.mxu0 %v2396_v9 }
 0x922   : > { %v1534_v58 = vadd.f32 %v1530_v21, %v1519_v52  ;;  %v3563_v59 = vand.u32 2147483647, %v3557_v55 }
 0x923   : > { %v1569_v60 = vmul.f32 0.3275911, %v3560_v54  ;;  %v3566_v61 = vadd.f32 %v1540_v25, %v1536_v56  ;;  %v1673_v37 = vsub.f32 0.0, %v3560_v54  ;;  %1848 = vmatpush.bf16.msrb.mxu3 %v2386_v29 }
 0x924   : > { %v1567_v62 = vmul.f32 0.3275911, %v3563_v59  ;;  %v3572_v4 = vadd.f32 %v1540_v25, %v1534_v58  ;;  %v1671_v41 = vsub.f32 0.0, %v3563_v59 }
 0x925   : > { %v1573_v63 = vadd.f32 1.0, %v1569_v60  ;;  %v3570_v2 = vmul.f32 0.70710677, %v3566_v61  ;;  %1861 = vmatpush.bf16.msra.mxu0 %v2395_v18  ;;  %v1677_v53 = vmul.f32 %v1673_v37, %v3560_v54 }
 0x926   : > { %v1571_v15 = vadd.f32 1.0, %v1567_v62  ;;  %v3579_v12 = vmul.f32 0.70710677, %v3572_v4 }
 0x927   : > { %2600 = vrcp.f32 %v1573_v63  ;;  %v3575_v5 = vand.u32 2147483647, %v3570_v2  ;;  %v1616_v32 = vand.u32 2147483648, %v1573_v63  ;;  %v1614_v8 = vand.u32 2147483647, %v1573_v63 }
 0x928   : > { %2602 = vrcp.f32 %v1571_v15  ;;  %v3585_v20 = vand.u32 2147483647, %v3579_v12  ;;  %v1584_v31 = vand.u32 2147483647, %v1571_v15  ;;  %v1586_v34 = vand.u32 2147483648, %v1571_v15 }
 0x929   : > { %v1570_v7 = vmul.f32 0.3275911, %v3575_v5  ;;  %vm1610_vm13 = vweird.f32 %v1573_v63  ;;  %vm1580_vm14 = vweird.f32 %v1571_v15  ;;  %v1617_v43 = vor.u32 1.1754944e-38, %v1616_v32  ;;  %1862 = vmatpush.bf16.msra.mxu0 %v2394_v24 }
 0x92a   : > { %v1568_v27 = vmul.f32 0.3275911, %v3585_v20  ;;  %vm1585_vm15 = vcmp.eq.f32.partialorder %v1584_v31, 8.507059e+37  ;;  %v1587_v45 = vor.u32 1.1754944e-38, %v1586_v34  ;;  %vm1615_vm2 = vcmp.eq.f32.partialorder %v1614_v8, 8.507059e+37 }
 0x92b   : > { %v3581_v13 = vadd.f32 1.0, %v1570_v7  ;;  %v1674_v11 = vsub.f32 0.0, %v3575_v5 }
 0x92c   : > { %v3588_v33 = vadd.f32 1.0, %v1568_v27 }
 0x92d   : > { %v2601_v17 = vpop.eup %2600  ;;  %2604 = vrcp.f32 %v3581_v13  ;;  %v1629_v47 = vand.u32 2147483647, %v3581_v13  ;;  %v1631_v50 = vand.u32 2147483648, %v3581_v13  ;;  %vm1625_vm4 = vweird.f32 %v3581_v13 }
 0x92e   : > { %v2603_v22 = vpop.eup %2602  ;;  %v1606_v23 = vmul.f32 %v2601_v17, %v1573_v63  ;;  %vm1611_vm11 = vweird.f32 %v2601_v17  ;;  %2606 = vrcp.f32 %v3588_v33  ;;  %v1675_v63 = vmul.f32 %v1671_v41, %v3563_v59 }
 0x92f   : > { %v1576_v26 = vmul.f32 %v2603_v22, %v1571_v15  ;;  %vm1581_vm12 = vweird.f32 %v2603_v22  ;;  %vm1612_vm0 = vmor %vm1610_vm13, %vm1611_vm11  ;;  %v1632_v3 = vor.u32 1.1754944e-38, %v1631_v50  ;;  %vm1630_vm6 = vcmp.eq.f32.partialorder %v1629_v47, 8.507059e+37 }
 0x930   : > { %v1607_v28 = vsub.f32 1.0, %v1606_v23  ;;  %vm1582_vm1 = vmor %vm1580_vm14, %vm1581_vm12  ;;  %v1599_v9 = vand.u32 2147483647, %v3588_v33  ;;  %v1601_v14 = vand.u32 2147483648, %v3588_v33  ;;  %v1683_v23 = vmul.f32 1.442695, %v1677_v53 }
 0x931   : > { %v1577_v30 = vsub.f32 1.0, %v1576_v26  ;;  %v1679_v26 = vmul.f32 1.442695, %v1675_v63  ;;  %vm1595_vm8 = vweird.f32 %v3588_v33  ;;  %vm1557_vm11 = vcmp.lt.f32.partialorder %v3553_v49, 0.0 }
 0x932   : > { %v1608_v35 = vmul.f32 %v2601_v17, %v1607_v28  ;;  %v1602_v32 = vor.u32 1.1754944e-38, %v1601_v14  ;;  %vm1600_vm10 = vcmp.eq.f32.partialorder %v1599_v9, 8.507059e+37  ;;  %2608 = vpow2.f32 %v1683_v23 }
 0x933   : > { %v2605_v36 = vpop.eup %2604  ;;  %v1578_v38 = vmul.f32 %v2603_v22, %v1577_v30  ;;  %v1678_v30 = vmul.f32 %v1674_v11, %v3575_v5  ;;  %2610 = vpow2.f32 %v1679_v26  ;;  %vm1555_vm12 = vcmp.lt.f32.partialorder %v3557_v55, 0.0 }
 0x934   : > { %v1621_v39 = vmul.f32 %v2605_v36, %v3581_v13  ;;  %v1609_v40 = vadd.f32 %v2601_v17, %v1608_v35  ;;  %vm1626_vm3 = vweird.f32 %v2605_v36  ;;  %v2607_v21 = vpop.eup %2606  ;;  %v1549_v49 = vmul.f32 0.5, %v3542_v0 }
 0x935   : > { %v1579_v42 = vadd.f32 %v2603_v22, %v1578_v38  ;;  %v1591_v58 = vmul.f32 %v2607_v21, %v3588_v33  ;;  %vm1627_vm5 = vmor %vm1625_vm4, %vm1626_vm3  ;;  %vm1596_vm7 = vweird.f32 %v2607_v21  ;;  %v1672_v38 = vsub.f32 0.0, %v3585_v20 }
 0x936   : > { %v1622_v44 = vsub.f32 1.0, %v1621_v39  ;;  %v1613_v19 = vsel %vm1612_vm0, %v2601_v17, %v1609_v40  ;;  %vm1597_vm9 = vmor %vm1595_vm8, %vm1596_vm7  ;;  %v1685_v41 = vmul.f32 1.442695, %v1678_v30  ;;  %vm1558_vm13 = vcmp.lt.f32.partialorder %v3570_v2, 0.0 }
 0x937   : > { %v1583_v1 = vsel %vm1582_vm1, %v2603_v22, %v1579_v42  ;;  %v3595_v46 = vsel %vm1615_vm2, %v1617_v43, %v1613_v19  ;;  %v1592_v6 = vsub.f32 1.0, %v1591_v58  ;;  %v1676_v19 = vmul.f32 %v1672_v38, %v3585_v20 }
 0x938   : > { %v3599_v51 = vsel %vm1585_vm15, %v1587_v45, %v1583_v1  ;;  %v1637_v25 = vmul.f32 1.0614054, %v3595_v46  ;;  %v1623_v52 = vmul.f32 %v2605_v36, %v1622_v44  ;;  %v2609_v50 = vpop.eup %2608  ;;  %2612 = vpow2.f32 %v1685_v41 }
 0x939   : > { %v1635_v56 = vmul.f32 1.0614054, %v3599_v51  ;;  %v1593_v18 = vmul.f32 %v2607_v21, %v1592_v6  ;;  %v1681_v58 = vmul.f32 1.442695, %v1676_v19  ;;  %vm1556_vm14 = vcmp.lt.f32.partialorder %v3579_v12, 0.0 }
 0x93a   : > { %v1641_v57 = vadd.f32 -1.4531521, %v1637_v25  ;;  %v1624_v60 = vadd.f32 %v2605_v36, %v1623_v52  ;;  %v2611_v52 = vpop.eup %2610  ;;  %v2569_v12 = vld [vmem:[%s3747_s19] ss:$0 sm:$0xff] }
 0x93b   : > { %v1639_v62 = vadd.f32 -1.4531521, %v1635_v56  ;;  %v1594_v28 = vadd.f32 %v2607_v21, %v1593_v18  ;;  %2614 = vpow2.f32 %v1681_v58 }
 0x93c   : > { %v1645_v15 = vmul.f32 %v1641_v57, %v3595_v46  ;;  %v1628_v54 = vsel %vm1627_vm5, %v2605_v36, %v1624_v60 }
 0x93d   : > { %v1643_v7 = vmul.f32 %v1639_v62, %v3599_v51  ;;  %v1633_v17 = vsel %vm1630_vm6, %v1632_v3, %v1628_v54  ;;  %v1598_v35 = vsel %vm1597_vm9, %v2607_v21, %v1594_v28 }
 0x93e   : > { %v1649_v13 = vadd.f32 1.4214138, %v1645_v15  ;;  %v1638_v22 = vmul.f32 1.0614054, %v1633_v17  ;;  %v1603_v37 = vsel %vm1600_vm10, %v1602_v32, %v1598_v35  ;;  %v2613_v54 = vpop.eup %2612  ;;  %v1548_v35 = vmul.f32 0.5, %v3572_v4 }
 0x93f   : > { %v1647_v59 = vadd.f32 1.4214138, %v1643_v7  ;;  %v1636_v33 = vmul.f32 1.0614054, %v1603_v37 }
 0x940   : > { %v1653_v27 = vmul.f32 %v1649_v13, %v3595_v46  ;;  %v1642_v29 = vadd.f32 -1.4531521, %v1638_v22  ;;  %v1547_v13 = vmul.f32 0.5, %v3550_v48  ;;  %v1550_v48 = vmul.f32 0.5, %v3566_v61 }
 0x941   : > { %v1651_v31 = vmul.f32 %v1647_v59, %v3599_v51  ;;  %v1640_v43 = vadd.f32 -1.4531521, %v1636_v33 }
 0x942   : > { %v1657_v34 = vadd.f32 -0.28449672, %v1653_v27  ;;  %v1646_v8 = vmul.f32 %v1642_v29, %v1633_v17  ;;  %v2615_v29 = vpop.eup %2614 }
 0x943   : > { %v1655_v36 = vadd.f32 -0.28449672, %v1651_v31  ;;  %v1644_v24 = vmul.f32 %v1640_v43, %v1603_v37 }
 0x944   : > { %v1661_v39 = vmul.f32 %v1657_v34, %v3595_v46  ;;  %v1650_v40 = vadd.f32 1.4214138, %v1646_v8 }
 0x945   : > { %v1659_v5 = vmul.f32 %v1655_v36, %v3599_v51  ;;  %v1648_v53 = vadd.f32 1.4214138, %v1644_v24 }
 0x946   : > { %v1665_v42 = vadd.f32 0.2548296, %v1661_v39  ;;  %v1654_v44 = vmul.f32 %v1650_v40, %v1633_v17 }
 0x947   : > { %v1663_v45 = vadd.f32 0.2548296, %v1659_v5  ;;  %v1652_v20 = vmul.f32 %v1648_v53, %v1603_v37 }
 0x948   : > { %v1669_v1 = vmul.f32 %v1665_v42, %v3595_v46  ;;  %v1658_v47 = vadd.f32 -0.28449672, %v1654_v44  ;;  %v3086_v46 = vmov 1.0  }
 0x949   : > { %v1667_v25 = vmul.f32 %v1663_v45, %v3599_v51  ;;  %v1561_v62 = vsel %vm1557_vm11, -1.0, %v3086_v46  ;;  %v1559_v3 = vsel %vm1555_vm12, -1.0, %v3086_v46  ;;  %v1656_v6 = vadd.f32 -0.28449672, %v1652_v20 }
 0x94a   : > { %v1689_v21 = vmul.f32 %v2609_v50, %v1669_v1  ;;  %v1662_v56 = vmul.f32 %v1658_v47, %v1633_v17  ;;  %v1562_v27 = vsel %vm1558_vm13, -1.0, %v3086_v46  ;;  %v1560_v32 = vsel %vm1556_vm14, -1.0, %v3086_v46 }
 0x94b   : > { %v1687_v57 = vmul.f32 %v2611_v52, %v1667_v25  ;;  %v1660_v55 = vmul.f32 %v1656_v6, %v1603_v37 }
 0x94c   : > { %v1693_v60 = vsub.f32 1.0, %v1689_v21  ;;  %v1666_v11 = vadd.f32 0.2548296, %v1662_v56 }
 0x94d   : > { %v1691_v63 = vsub.f32 1.0, %v1687_v57  ;;  %v1664_v23 = vadd.f32 0.2548296, %v1660_v55 }
 0x94e   : > { %v1697_v15 = vmul.f32 %v1693_v60, %v1561_v62  ;;  %v1670_v51 = vmul.f32 %v1666_v11, %v1633_v17 }
 0x94f   : > { %v1695_v7 = vmul.f32 %v1691_v63, %v1559_v3  ;;  %v1668_v28 = vmul.f32 %v1664_v23, %v1603_v37 }
 0x950   : > { %v1701_v9 = vadd.f32 1.0, %v1697_v15  ;;  %v1690_v14 = vmul.f32 %v2613_v54, %v1670_v51 }
 0x951   : > { %v1699_v18 = vadd.f32 1.0, %v1695_v7  ;;  %v1688_v0 = vmul.f32 %v2615_v29, %v1668_v28 }
 0x952   : > { %v1705_v22 = vmul.f32 %v1701_v9, %v1549_v49  ;;  %v1694_v59 = vsub.f32 1.0, %v1690_v14 }
 0x953   : > { %v1703_v26 = vmul.f32 %v1699_v18, %v1547_v13  ;;  %v1692_v31 = vsub.f32 1.0, %v1688_v0 }
 0x954   : > { %v1698_v17 = vmul.f32 %v1694_v59, %v1562_v27 }
 0x955   : > { %v1707_v30 = vpack.c.bf16 %v1705_v22, %v1703_v26  ;;  %v1696_v34 = vmul.f32 %v1692_v31, %v1560_v32 }
 0x956   : > { %v1702_v2 = vadd.f32 1.0, %v1698_v17 }
 0x957   : > { %1849 = vmatmul.bf16.vlgmr.msrb.gmra.mxu3 %v1707_v30  ;;  %v1700_v8 = vadd.f32 1.0, %v1696_v34 }
 0x958   : > { %v1706_v36 = vmul.f32 %v1702_v2, %v1550_v48 }
 0x959   : > { %v1704_v37 = vmul.f32 %v1700_v8, %v1548_v35 }
 0x95b   : > { %v1708_v38 = vpack.c.bf16 %v1706_v36, %v1704_v37 }
 0x95d   : > { %1863 = vmatmul.bf16.vlgmr.msra.gmra.mxu0 %v1708_v38 }
 0x9da   : > { %v1850_v39 = vpop.f32.mrf.mxu3  ;;  %v1864_v40 = vpop.f32.mrf.mxu0 }
 0x9db   : > { %v1851_v33 = vadd.f32 %v2569_v12, %v1850_v39 }
 0x9dd   : > { %v1865_v41 = vadd.f32 %v1864_v40, %v1851_v33 }
 0x9df   : > { %v1869_v61 = vadd.f32 %v1865_v41, %v3460_v10 }
 0x9e1   : > { %1871 = vst [vmem:[%s745_s29] sm:$0xff] %v1869_v61 }
 0x9e2   : > { %v1852_v5 = vpop.f32.mrf.mxu3  ;;  %v1866_v42 = vpop.f32.mrf.mxu0 }
 0x9e3   : > { %v1853_v4 = vadd.f32 %v2569_v12, %v1852_v5 }
 0x9e5   : > { %v1867_v43 = vadd.f32 %v1866_v42, %v1853_v4 }
 0x9e7   : > { %v1870_v44 = vadd.f32 %v1867_v43, %v3463_v16 }
 0x9e9   : > { %1872 = vst [vmem:[%s745_s29 + $0x8] sm:$0xff] %v1870_v44 }
 0x9ea   : > { %3003 = shalt.err (!%p3000_p2)
}
 0x9eb   : > { %s3087_s15 = smov 128   ;;  %s3088_s25 = smov 8  }
 0x9ec   : > { %2445 = dma.vmem_to_hbm [thread:$0]  (%p3259_p5), %s1887_s1, 256, %s1889_s27, %s1874_s28, %s3087_s15, %s3087_s15, %s3088_s25  }
 0x9ed PF: > { %s3750_s26 = sld [smem:[#allocation31_spill]]  ;;  %p3752_p1 = scmp.ge.s32.totalorder %s3066_s24, 2 }
 0x9ef   : > { %p2486_p12 = pnand %p3752_p1, %p3263_p4 }
 0x9f1   : > { %p2487_p8 = pneg %p2486_p12 }
 0x9f3   : > { %s1903_s19 = sand.u32 1, %s3750_s26  }
 0x9f4   : > { %s1904_s21 = scalar_lea.sflag [#allocation4], %s1903_s19 }
 0x9f5   : > { %3049 = dma.done.wait (%p2487_p8), %s1904_s21, 256  }
 0x9f6   : > { %3051 = vsyncadd (%p2487_p8), %s1904_s21, 4294967040  ;;  %s3753_s24 = sld [smem:[#allocation33_spill]]  ;;  %s3756_s21 = smov %s3058_s22 }
 0x9f7   : > { %s3754_s29 = sld [smem:[#allocation32_spill]] }
 0x9f8   : > { %s3755_s23 = sld [smem:[#allocation34_spill]] }
 0x9fc   : > { %p37_p6 = scmp.ge.s32.totalorder %s3753_s24, 4  }
 0x9fd   : > { %s3757_s22 = smov %s3754_s29 }
 0x9fe   :  { %39 = sbr.rel (!%p37_p6) target bundleno = 24 (0x18), region = 191 }
 0xa03   :  { %1910 = vsyncpa [#allocation3], 1 }
 0xa04   :  { %1912 = vsyncpa [#allocation3 + $0x1], 1 }
 0xa05   :  { %1913 = vsyncpa [#allocation6], 1 }
 0xa06   :  { %1915 = vsyncpa [#allocation6 + $0x1], 1 }
 0xa07   :  { %1916 = vsyncpa [#allocation9], 1 }
 0xa08   :  { %1917 = vsyncpa [#allocation12], 1 }
 0xa09   :  { %1918 = vsyncpa [#allocation15], 1 }
 0xa0a   :  { %1919 = vsyncpa [#allocation18], 1 }
 0xa0b   :  { %1920 = vsyncpa [#allocation21], 1 }
 0xa0c   :  { %1921 = vsyncpa [#allocation4], 1 }
 0xa0d   :  { %1923 = vsyncpa [#allocation4 + $0x1], 1 }

// kernel: tpu_custom_call.1
= control target key start
LH: loop header
LB: loop body
LE: loop exit
PB: predicated region body
PF: predicated region fallthrough
CT: control target
= control target key end

     0   :  { %s3670_s0 = inlined_call_operand.hbm [shape: f32[2,16,128], index: 0, kind: input, shape index: {}]   ;;  %s3671_s1 = inlined_call_operand.hbm [shape: f32[2,1,128], index: 1, kind: input, shape index: {}]   ;;  %s3672_s2 = inlined_call_operand.hbm [shape: f32[2,1,128], index: 2, kind: input, shape index: {}]   ;;  %s3673_s3 = inlined_call_operand.hbm [shape: f32[1,128], index: 3, kind: input, shape index: {}]   ;;  %s3674_s4 = inlined_call_operand.hbm [shape: f32[1,128], index: 4, kind: input, shape index: {}]   ;;  %s3675_s5 = inlined_call_operand.hbm [shape: bf16[128,384], index: 5, kind: input, shape index: {}]   ;;  %s3676_s6 = inlined_call_operand.hbm [shape: f32[1,128], index: 6, kind: input, shape index: {}]   ;;  %s3677_s7 = inlined_call_operand.hbm [shape: f32[1,128], index: 7, kind: input, shape index: {}]   ;;  %s3678_s8 = inlined_call_operand.hbm [shape: f32[1,128], index: 8, kind: input, shape index: {}]   ;;  %s3679_s9 = inlined_call_operand.hbm [shape: f32[1,128], index: 9, kind: input, shape index: {}]   ;;  %s3680_s10 = inlined_call_operand.hbm [shape: bf16[128,256], index: 10, kind: input, shape index: {}]   ;;  %s3681_s11 = inlined_call_operand.vmem [shape: f32[1,256], index: 11, kind: input, shape index: {}]   ;;  %s3682_s12 = inlined_call_operand.vmem [shape: f32[3,256], index: 12, kind: input, shape index: {}]   ;;  %s3683_s13 = inlined_call_operand.vmem [shape: f32[1,256], index: 13, kind: input, shape index: {}]   ;;  %s3684_s14 = inlined_call_operand.hbm [shape: bf16[256,128], index: 14, kind: input, shape index: {}]   ;;  %s3685_s15 = inlined_call_operand.vmem [shape: f32[1,128], index: 15, kind: input, shape index: {}]   ;;  %s3686_s16 = inlined_call_operand.hbm [shape: f32[2,16,128], index: 16, kind: output, shape index: {}]  }
   0x1   :  { %3699 = sst [smem:[#allocation37_spill]] %s3670_s0 }
   0x2   :  { %3700 = sst [smem:[#allocation38_spill]] %s3671_s1 }
   0x3   :  { %3701 = sst [smem:[#allocation39_spill]] %s3673_s3 }
   0x4   :  { %3702 = sst [smem:[#allocation40_spill]] %s3674_s4 }
   0x5   :  { %3703 = sst [smem:[#allocation41_spill]] %s3675_s5 }
   0x6   :  { %3704 = sst [smem:[#allocation42_spill]] %s3676_s6 }
   0x7   :  { %3705 = sst [smem:[#allocation43_spill]] %s3677_s7 }
   0x8   :  { %3706 = sst [smem:[#allocation44_spill]] %s3678_s8 }
   0x9   :  { %3707 = sst [smem:[#allocation45_spill]] %s3679_s9 }
   0xa   :  { %3708 = sst [smem:[#allocation46_spill]] %s3685_s15 }
   0xb   :  { %3709 = sst [smem:[#allocation47_spill]] %s3686_s16 }
   0xc   :  { %21 = vsyncpa [#allocation3], 0 }
   0xd   :  { %23 = vsyncpa [#allocation3 + $0x1], 0 }
   0xe   :  { %24 = vsyncpa [#allocation6], 0 }
   0xf   :  { %26 = vsyncpa [#allocation6 + $0x1], 0 }
  0x10   :  { %27 = vsyncpa [#allocation9], 0 }
  0x11   :  { %28 = vsyncpa [#allocation12], 0 }
  0x12   :  { %29 = vsyncpa [#allocation15], 0 }
  0x13   :  { %30 = vsyncpa [#allocation18], 0 }
  0x14   :  { %31 = vsyncpa [#allocation21], 0 }
  0x15   :  { %32 = vsyncpa [#allocation4], 0 }
  0x16   :  { %34 = vsyncpa [#allocation4 + $0x1], 0  ;;  %s3174_s21 = smov 0   ;;  %s3176_s22 = smov 0  }
  0x17   :  { %s3178_s23 = smov 0   ;;  %s3180_s24 = smov 0  }
  0x18 LB: > { %3710 = sst [smem:[#allocation31_spill]] %s3054_s21  ;;  %s3198_s28 = sadd.s32 4294967295, %s3066_s24   ;;  %s3066_s24 = sphi %s3180_s24, %s3753_s24   ;;  %s3062_s23 = sphi %s3178_s23, %s3755_s23   ;;  %s3058_s22 = sphi %s3176_s22, %s3757_s22   ;;  %s3054_s21 = sphi %s3174_s21, %s3756_s21  }
  0x19   : > { %3711 = sst [smem:[#allocation32_spill]] %s3062_s23  ;;  %p2084_p0 = scmp.ge.s32.totalorder %s3066_s24, 1 }
  0x1a   : > { %s3712_s3 = sld [smem:[#allocation39_spill]]  ;;  %p3693_p1 = scmp.eq.s32.totalorder %s3198_s28, 0 }
  0x1b   : > { %p422_p2 = scmp.lt.s32.totalorder %s3066_s24, 3  ;;  %s3068_s30 = smov [#allocation8]  }
  0x1c   : > { %s436_s0 = sshll.u32 %s3068_s30, 4  ;;  %s3714_s5 = sld [smem:[#allocation41_spill]]  ;;  %s437_s0 = int_to_ptr.vmem [resolvable:$true] %s436_s0 }
  0x1d   : > { %p3203_p3 = pnand %p2084_p0, %p422_p2  ;;  %s3069_s25 = smov [#allocation11]  }
  0x1e   : > { %s459_s26 = sshll.u32 %s3069_s25, 4  ;;  %s3070_s30 = smov 192   ;;  %s460_s26 = int_to_ptr.vmem [resolvable:$true] %s459_s26 }
  0x1f   : > { %p2447_p5 = pneg %p3203_p3  ;;  %s3071_s17 = smov 12  }
  0x20   : > { %s434_s27 = sshll.u32 %s3712_s3, 4  ;;  %s3716_s7 = sld [smem:[#allocation43_spill]]  ;;  %s435_s27 = int_to_ptr.hbm [resolvable:$true] %s434_s27 }
  0x21   : > { %p3215_p6 = pnand %p2447_p5, %p3693_p1  ;;  %s3072_s25 = smov [#allocation14]  }
  0x22   : > { %s457_s19 = sshll.u32 %s3714_s5, 4  ;;  %s486_s16 = sshll.u32 %s3072_s25, 4  ;;  %s458_s19 = int_to_ptr.hbm [resolvable:$true] %s457_s19  ;;  %s487_s16 = int_to_ptr.vmem [resolvable:$true] %s486_s16 }
  0x23   : > { %2450 = dma.hbm_to_vmem [thread:$0]  (!%p3215_p6), %s435_s27, 16, %s437_s0, [#allocation9]  }
  0x24   : > { %2456 = dma.hbm_to_vmem [thread:$0]  (!%p3215_p6), %s458_s19, 3072, %s460_s26, [#allocation12], %s3070_s30, %s3070_s30, %s3071_s17  }
  0x25   : > { %s3717_s9 = sld [smem:[#allocation45_spill]]  ;;  %s3073_s3 = smov [#allocation17]  }
  0x26   : > { %s484_s5 = sshll.u32 %s3716_s7, 4  ;;  %s510_s19 = sshll.u32 %s3073_s3, 4  ;;  %s485_s5 = int_to_ptr.hbm [resolvable:$true] %s484_s5  ;;  %s511_s19 = int_to_ptr.vmem [resolvable:$true] %s510_s19 }
  0x27   : > { %2462 = dma.hbm_to_vmem [thread:$0]  (!%p3215_p6), %s485_s5, 16, %s487_s16, [#allocation15]  }
  0x28   : > { %s2083_s26 = sadd.s32 4294967294, %s3066_s24   ;;  %s3235_s30 = sadd.s32 1, %s3066_s24  }
  0x29   : > { %3718 = sst [smem:[#allocation33_spill]] %s3235_s30  ;;  %s44_s17 = ssub.s32 %s3066_s24, %s3235_s30 }
  0x2a   : > { %s47_s18 = sadd.s32 1, %s3062_s23  ;;  %p45_p7 = scmp.eq.s32.totalorder %s44_s17, 0 }
  0x2b   : > { %s508_s15 = sshll.u32 %s3717_s9, 4  ;;  %p54_p8 = scmp.ne.s32.totalorder %s3062_s23, %s3058_s22  ;;  %s509_s15 = int_to_ptr.hbm [resolvable:$true] %s508_s15 }
  0x2c   : > { %2468 = dma.hbm_to_vmem [thread:$0]  (!%p3215_p6), %s509_s15, 16, %s511_s19, [#allocation18]  }
  0x2d   : > { %p55_p9 = scmp.eq.s32.totalorder %s3066_s24, 0  ;;  %p60_p10 = scmp.ne.s32.totalorder %s3058_s22, %s3054_s21 }
  0x2e   : > { %s3246_s5 = scalar_select %p45_p7, %s3062_s23, %s47_s18  }
  0x2f   : > { %p56_p11 = por %p55_p9, %p54_p8  ;;  %p3250_p12 = por %p3693_p1, %p60_p10 }
  0x30   : > { %3719 = sst [smem:[#allocation34_spill]] %s3246_s5  ;;  %p409_p13 = scmp.eq.s32.totalorder %s3198_s28, 1 }
  0x31   : > { %p415_p0 = scmp.eq.s32.totalorder %s2083_s26, 1  ;;  %p2498_p2 = scmp.lt.s32.totalorder %s3066_s24, 2 }
  0x32   : > { %s3257_s15 = sand.u32 1, %s3062_s23   ;;  %p3259_p5 = por %p409_p13, %p54_p8 }
  0x33   : > { %p3263_p4 = por %p415_p0, %p60_p10  ;;  %p3267_p7 = pnand %p2498_p2, %p56_p11 }
  0x34   : > { %s3721_s25 = scalar_select %p3259_p5, 1, 0 }
  0x35   : > { %s3723_s27 = scalar_select %p3263_p4, 1, 0 }
  0x36   : > { %3722 = sst [smem:[#allocation35_spill]] %s3721_s25  ;;  %s583_s3 = sand.u32 1, %s3066_s24  }
  0x37   : > { %3724 = sst [smem:[#allocation36_spill]] %s3723_s27  ;;  %s586_s7 = scalar_lea.vmem [#allocation5], %s3257_s15 }
  0x38   : > { %s3726_s1 = sld [smem:[#allocation38_spill]]  ;;  %s593_s9 = sshll.u32 %s586_s7, 4  ;;  %s594_s9 = int_to_ptr.vmem [resolvable:$true] %s593_s9 }
  0x39   : > { %s3277_s5 = scalar_lea.sflag [#allocation6], %s583_s3  ;;  %p2740_p9 = pneg %p3267_p7 }
  0x3e   : > { %s589_s17 = scalar_lea.hbm %s3726_s1, %s3066_s24  ;;  %s2743_s26 = scalar_lea.hbm %s3726_s1, 2 }
  0x3f   : > { %s591_s18 = sshll.u32 %s589_s17, 4  ;;  %s592_s18 = int_to_ptr.hbm [resolvable:$true] %s591_s18 }
  0x40   : > { %s2736_s23 = sshra.s32 %s592_s18, 4  ;;  %s2737_s23 = int_to_ptr.hbm [resolvable:$true] %s2736_s23 }
  0x41   : > { %s2738_s30 = scalar_lea.hbm %s2737_s23, 1  ;;  %p2744_p13 = scmp.lt.s32.totalorder %s2737_s23, %s3726_s1 }
  0x42   : > { %p2739_p8 = scmp.ne.s32.totalorder %s2737_s23, %s2738_s30  ;;  %p2745_p0 = scmp.lt.s32.totalorder %s2743_s26, %s2738_s30 }
  0x44   : > { %p2741_p10 = pnand %p2740_p9, %p2739_p8  ;;  %p2746_p2 = por %p2745_p0, %p2744_p13 }
  0x46   : > { %p2742_p11 = pneg %p2741_p10 }
  0x48   : > { %p2747_p1 = pnand %p2746_p2, %p2742_p11 }
  0x4a   : > { %2750 = shalt.err (!%p2747_p1)
}
  0x4b   : > { %2481 = dma.hbm_to_vmem [thread:$0]  (!%p3267_p7), %s592_s18, 16, %s594_s9, %s3277_s5  }
  0x4c   : > { %s3727_s4 = sld [smem:[#allocation40_spill]]  ;;  %s3074_s27 = smov [#allocation10]  }
  0x4d   : > { %s448_s19 = sshll.u32 %s3074_s27, 4  ;;  %s3728_s6 = sld [smem:[#allocation42_spill]]  ;;  %s449_s19 = int_to_ptr.vmem [resolvable:$true] %s448_s19 }
  0x4e   : > { %s3075_s17 = smov [#allocation13]   ;;  %s3729_s8 = sld [smem:[#allocation44_spill]] }
  0x4f   : > { %s474_s7 = sshll.u32 %s3075_s17, 4  ;;  %s519_s27 = sshll.u32 %s3680_s10, 4  ;;  %s475_s7 = int_to_ptr.vmem [resolvable:$true] %s474_s7  ;;  %s520_s27 = int_to_ptr.hbm [resolvable:$true] %s519_s27 }
  0x50   : > { %s3076_s23 = smov [#allocation16]   ;;  %s3077_s1 = smov [#allocation19]  }
  0x51   : > { %s498_s30 = sshll.u32 %s3076_s23, 4  ;;  %s3698_s17 = smov 8   ;;  %s499_s30 = int_to_ptr.vmem [resolvable:$true] %s498_s30 }
  0x52   : > { %s446_s25 = sshll.u32 %s3727_s4, 4  ;;  %s542_s9 = sshll.u32 %s3684_s14, 4  ;;  %s447_s25 = int_to_ptr.hbm [resolvable:$true] %s446_s25  ;;  %s543_s9 = int_to_ptr.hbm [resolvable:$true] %s542_s9 }
  0x53   : > { %s472_s26 = sshll.u32 %s3728_s6, 4  ;;  %s3080_s18 = smov [#allocation20]   ;;  %s473_s26 = int_to_ptr.hbm [resolvable:$true] %s472_s26 }
  0x54   : > { %2453 = dma.hbm_to_vmem [thread:$0]  (!%p3215_p6), %s447_s25, 16, %s449_s19, [#allocation9]  }
  0x55   : > { %s496_s21 = sshll.u32 %s3729_s8, 4  ;;  %s521_s25 = sshll.u32 %s3077_s1, 4  ;;  %s497_s21 = int_to_ptr.hbm [resolvable:$true] %s496_s21  ;;  %s522_s25 = int_to_ptr.vmem [resolvable:$true] %s521_s25 }
  0x56   : > { %2459 = dma.hbm_to_vmem [thread:$0]  (!%p3215_p6), %s473_s26, 16, %s475_s7, [#allocation12]  }
  0x57   : > { %2465 = dma.hbm_to_vmem [thread:$0]  (!%p3215_p6), %s497_s21, 16, %s499_s30, [#allocation15]  }
  0x58   : > { %s3697_s19 = smov 128   ;;  %s544_s3 = sshll.u32 %s3080_s18, 4  ;;  %s545_s3 = int_to_ptr.vmem [resolvable:$true] %s544_s3 }
  0x59   : > { %2471 = dma.hbm_to_vmem [thread:$0]  (!%p3215_p6), %s520_s27, 2048, %s522_s25, [#allocation18], %s3697_s19, %s3697_s19, %s3698_s17  }
  0x5a   : > { %s3081_s21 = smov 64   ;;  %s3082_s23 = smov 4  }
  0x5b   : > { %2474 = dma.hbm_to_vmem [thread:$0]  (!%p3215_p6), %s543_s9, 2048, %s545_s3, [#allocation21], %s3081_s21, %s3081_s21, %s3082_s23  }
  0x5c   : > { %s2095_s30 = sshll.u32 %s3257_s15, 4  ;;  %s2345_s1 = sshll.u32 %s3066_s24, 4 }
  0x5d   : > { %s3730_s8 = sld [smem:[#allocation37_spill]]  ;;  %s565_s19 = scalar_lea.vmem [#allocation2], %s2095_s30 }
  0x5e   : > { %s573_s26 = sshll.u32 %s565_s19, 4  ;;  %s562_s7 = scalar_lea.sflag [#allocation3], %s3257_s15  ;;  %s574_s26 = int_to_ptr.vmem [resolvable:$true] %s573_s26 }
  0x63   : > { %s570_s27 = scalar_lea.hbm %s3730_s8, %s2345_s1  ;;  %s2923_s3 = scalar_lea.hbm %s3730_s8, 32 }
  0x64   : > { %s571_s25 = sshll.u32 %s570_s27, 4  ;;  %s572_s25 = int_to_ptr.hbm [resolvable:$true] %s571_s25 }
  0x65   : > { %s2916_s17 = sshra.s32 %s572_s25, 4  ;;  %s2917_s17 = int_to_ptr.hbm [resolvable:$true] %s2916_s17 }
  0x66   : > { %s2918_s18 = scalar_lea.hbm %s2917_s17, 16  ;;  %p2924_p10 = scmp.lt.s32.totalorder %s2917_s17, %s3730_s8 }
  0x67   : > { %p2919_p1 = scmp.ne.s32.totalorder %s2917_s17, %s2918_s18  ;;  %p2925_p11 = scmp.lt.s32.totalorder %s2923_s3, %s2918_s18 }
  0x69   : > { %p2921_p8 = pnand %p2919_p1, %p2740_p9  ;;  %p2926_p13 = por %p2925_p11, %p2924_p10 }
  0x6b   : > { %p2922_p6 = pneg %p2921_p8 }
  0x6d   : > { %p2927_p0 = pnand %p2926_p13, %p2922_p6 }
  0x6f   : > { %2930 = shalt.err (!%p2927_p0)
}
  0x70   : > { %s3731_s19 = smov 8   ;;  %s3732_s21 = smov 128  }
  0x71   : > { %2478 = dma.hbm_to_vmem [thread:$0]  (!%p3267_p7), %s572_s25, 256, %s574_s26, %s562_s7, %s3732_s21, %s3732_s21, %s3731_s19  }
  0x72   : > { %s606_s1 = scalar_lea.hbm %s3672_s2, %s3066_s24  ;;  %s603_s20 = scalar_lea.vmem [#allocation7], %s3257_s15 }
  0x73   : > { %s608_s27 = sshll.u32 %s606_s1, 4  ;;  %s610_s17 = sshll.u32 %s603_s20, 4  ;;  %s609_s27 = int_to_ptr.hbm [resolvable:$true] %s608_s27  ;;  %s611_s17 = int_to_ptr.vmem [resolvable:$true] %s610_s17 }
  0x74   : > { %s2946_s18 = sshra.s32 %s609_s27, 4  ;;  %s2953_s25 = scalar_lea.hbm %s3672_s2, 2  ;;  %s2947_s18 = int_to_ptr.hbm [resolvable:$true] %s2946_s18 }
  0x75   : > { %s2948_s9 = scalar_lea.hbm %s2947_s18, 1  ;;  %p2954_p6 = scmp.lt.s32.totalorder %s2947_s18, %s3672_s2 }
  0x76   : > { %p2949_p2 = scmp.ne.s32.totalorder %s2947_s18, %s2948_s9  ;;  %p2955_p10 = scmp.lt.s32.totalorder %s2953_s25, %s2948_s9 }
  0x78   : > { %p2951_p1 = pnand %p2949_p2, %p2740_p9  ;;  %p2956_p11 = por %p2955_p10, %p2954_p6 }
  0x7a   : > { %p2952_p8 = pneg %p2951_p1 }
  0x7c   : > { %p2957_p13 = pnand %p2956_p11, %p2952_p8 }
  0x7e   : > { %2960 = shalt.err (!%p2957_p13)
}
  0x7f   : > { %2484 = dma.hbm_to_vmem [thread:$0]  (!%p3267_p7), %s609_s27, 16, %s611_s17, %s3277_s5  }
  0x80   : > { %619 = sbr.rel (%p3203_p3) target bundleno = 2541 (0x9ed), region = 84  ;;  %s3361_s15 = sand.u32 (!%p3203_p3), 1, %s3058_s22  }
  0x81   : > { %s2099_s6 = sshll.u32 (!%p3203_p3), %s3361_s15, 4  ;;  %s622_s19 = scalar_lea.sflag (!%p3203_p3), [#allocation3], %s3361_s15 }
  0x82   : > { %s625_s21 = scalar_lea.vmem (!%p3203_p3), [#allocation2], %s2099_s6 }
  0x85   : > { %3021 = dma.done.wait (%p3250_p12), %s622_s19, 256  }
  0x86   : > { %3023 = vsyncadd (%p3250_p12), %s622_s19, 4294967040  ;;  %s631_s29 = sand.u32 1, %s3198_s28   ;;  %s634_s0 = scalar_lea.vmem [#allocation5], %s3361_s15 }
  0x87   : > { %s632_s5 = scalar_lea.sflag [#allocation6], %s631_s29 }
  0x88   : > { %3025 = dma.done.wait (%p3250_p12), %s632_s5, 32  }
  0x89   : > { %3027 = vsyncadd (%p3250_p12), %s632_s5, 4294967264  ;;  %s643_s23 = scalar_lea.vmem [#allocation7], %s3361_s15  ;;  %p3733_p3 = scmp.eq.s32.totalorder %s3198_s28, 0 }
  0x8b   : > { %3029 = dma.done.wait (%p3733_p3), [#allocation9], 32   ;;  %p3734_p7 = pmov %p3733_p3 }
  0x8c   : > { %p3735_p9 = pmov %p3733_p3 }
  0x8d   : > { %3031 = vsyncadd (%p3734_p7), [#allocation9], 4294967264 }
  0x8e   : > { %3033 = dma.done.wait (%p3735_p9), [#allocation12], 3088   ;;  %p3736_p0 = pmov %p3733_p3 }
  0x90   : > { %3035 = vsyncadd (%p3736_p0), [#allocation12], 4294964208  ;;  %p3737_p2 = pmov %p3736_p0 }
  0x91   : > { %p3738_p1 = pmov %p3736_p0 }
  0x92   : > { %3037 = dma.done.wait (%p3737_p2), [#allocation15], 32  }
  0x93   : > { %3039 = vsyncadd (%p3738_p1), [#allocation15], 4294967264  ;;  %p3739_p12 = pmov %p3736_p0 }
  0x94   : > { %p3740_p8 = pmov %p3736_p0 }
  0x95   : > { %3041 = dma.done.wait (%p3739_p12), [#allocation18], 2064  }
  0x96   : > { %3043 = vsyncadd (%p3740_p8), [#allocation18], 4294965232  ;;  %p3741_p6 = pmov %p3736_p0 }
  0x97   : > { %p3742_p10 = pmov %p3736_p0 }
  0x98   : > { %3045 = dma.done.wait (%p3741_p6), [#allocation21], 2048  }
  0x99   : > { %3047 = vsyncadd (%p3742_p10), [#allocation21], 4294965248  ;;  %v3398_v0 = vld [vmem:[%s625_s21] sm:$0xff]  ;;  %v3401_v1 = vld [vmem:[%s625_s21 + $0x8] sm:$0xff]  ;;  %v3083_v2 = vmov 128.0   ;;  %vm1036_vm7 = vcmask 523264  }
  0x9a   : > { %751 = vadd.xlane.f32.xlu0 %v3398_v0  ;;  %2570 = vrcp.f32 %v3083_v2  ;;  %v2196_v17 = vld [vmem:[#allocation11 + $0xa8] sm:$0xf]  ;;  %v2368_v18 = vld [vmem:[#allocation11 + $0xb0] sm:$0xf0]  ;;  %v2367_v19 = vld [vmem:[#allocation11 + $0xac] sm:$0xf] }
  0x9b   : > { %v2197_v20 = vor.u32 %v2368_v18, %v2196_v17  ;;  %v2198_v21 = vld [vmem:[#allocation11 + $0xb4] sm:$0xf0]  ;;  %v2204_v22 = vld [vmem:[#allocation11 + $0xb0] sm:$0xf]  ;;  %v2369_v23 = vld [vmem:[#allocation11 + $0xb8] sm:$0xf0] }
  0x9c   : > { %v2201_v24 = vor.u32 %v2367_v19, %v2198_v21  ;;  %v2205_v25 = vor.u32 %v2369_v23, %v2204_v22  ;;  %v2184_v26 = vld [vmem:[#allocation11 + $0x90] sm:$0xf]  ;;  %v2365_v27 = vld [vmem:[#allocation11 + $0x98] sm:$0xf0]  ;;  %v2364_v28 = vld [vmem:[#allocation11 + $0x94] sm:$0xf] }
  0x9d   : > { %969 = vmatpush.bf16.msra.mxu0 %v2197_v20  ;;  %v2185_v29 = vor.u32 %v2365_v27, %v2184_v26  ;;  %v2186_v30 = vld [vmem:[#allocation11 + $0x9c] sm:$0xf0]  ;;  %v2192_v31 = vld [vmem:[#allocation11 + $0x98] sm:$0xf]  ;;  %v2366_v32 = vld [vmem:[#allocation11 + $0xa0] sm:$0xf0] }
  0x9e   : > { %983 = vmatpush.bf16.msra.mxu1 %v2201_v24  ;;  %997 = vmatpush.bf16.msra.mxu2 %v2205_v25  ;;  %v2189_v33 = vor.u32 %v2364_v28, %v2186_v30  ;;  %v2193_v34 = vor.u32 %v2366_v32, %v2192_v31  ;;  %v2172_v35 = vld [vmem:[#allocation11 + $0x78] sm:$0xf]  ;;  %v2362_v36 = vld [vmem:[#allocation11 + $0x80] sm:$0xf0]  ;;  %v2361_v37 = vld [vmem:[#allocation11 + $0x7c] sm:$0xf] }
  0x9f   : > { %v2173_v38 = vor.u32 %v2362_v36, %v2172_v35  ;;  %v2174_v39 = vld [vmem:[#allocation11 + $0x84] sm:$0xf0]  ;;  %v2180_v40 = vld [vmem:[#allocation11 + $0x80] sm:$0xf]  ;;  %v2363_v41 = vld [vmem:[#allocation11 + $0x88] sm:$0xf0] }
  0xa0   : > { %v2571_v3 = vpop.eup %2570  ;;  %v2177_v42 = vor.u32 %v2361_v37, %v2174_v39  ;;  %v2181_v43 = vor.u32 %v2363_v41, %v2180_v40  ;;  %v2160_v44 = vld [vmem:[#allocation11 + $0x60] sm:$0xf]  ;;  %v2359_v45 = vld [vmem:[#allocation11 + $0x68] sm:$0xf0]  ;;  %v2358_v46 = vld [vmem:[#allocation11 + $0x64] sm:$0xf] }
  0xa1   : > { %v756_v4 = vmul.f32 128.0, %v2571_v3  ;;  %vm760_vm0 = vweird.f32 %v2571_v3  ;;  %970 = vmatpush.bf16.msra.mxu0 %v2185_v29  ;;  %v2161_v47 = vor.u32 %v2359_v45, %v2160_v44  ;;  %v2162_v48 = vld [vmem:[#allocation11 + $0x6c] sm:$0xf0]  ;;  %v2168_v49 = vld [vmem:[#allocation11 + $0x68] sm:$0xf]  ;;  %vm1057_vm9 = vcmask 130048  }
  0xa2   : > { %753 = vadd.xlane.f32.xlu0 %v3401_v1  ;;  %984 = vmatpush.bf16.msra.mxu1 %v2189_v33  ;;  %v2360_v50 = vld [vmem:[#allocation11 + $0x70] sm:$0xf0]  ;;  %v2165_v51 = vor.u32 %v2358_v46, %v2162_v48  ;;  %v2148_v53 = vld [vmem:[#allocation11 + $0x48] sm:$0xf]  ;;  %v2355_v55 = vld [vmem:[#allocation11 + $0x4c] sm:$0xf] }
  0xa3   : > { %v757_v5 = vsub.f32 1.0, %v756_v4  ;;  %998 = vmatpush.bf16.msra.mxu2 %v2193_v34  ;;  %v2169_v52 = vor.u32 %v2360_v50, %v2168_v49  ;;  %v2356_v54 = vld [vmem:[#allocation11 + $0x50] sm:$0xf0]  ;;  %v2150_v57 = vld [vmem:[#allocation11 + $0x54] sm:$0xf0]  ;;  %s3085_s16 = smov 64  }
  0xa4   : > { %v2149_v56 = vor.u32 %v2356_v54, %v2148_v53  ;;  %v2156_v58 = vld [vmem:[#allocation11 + $0x50] sm:$0xf]  ;;  %v2357_v59 = vld [vmem:[#allocation11 + $0x58] sm:$0xf0]  ;;  %v2153_v60 = vor.u32 %v2355_v55, %v2150_v57  ;;  %v2352_v2 = vld [vmem:[#allocation11 + $0x34] sm:$0xf] }
  0xa5   : > { %v758_v6 = vmul.f32 %v2571_v3, %v757_v5  ;;  %971 = vmatpush.bf16.msra.mxu0 %v2173_v38  ;;  %v2157_v61 = vor.u32 %v2357_v59, %v2156_v58  ;;  %v2136_v62 = vld [vmem:[#allocation11 + $0x30] sm:$0xf]  ;;  %v2353_v63 = vld [vmem:[#allocation11 + $0x38] sm:$0xf0]  ;;  %v2138_v4 = vld [vmem:[#allocation11 + $0x3c] sm:$0xf0] }
  0xa6   : > { %985 = vmatpush.bf16.msra.mxu1 %v2177_v42  ;;  %v2144_v5 = vld [vmem:[#allocation11 + $0x38] sm:$0xf]  ;;  %v2132_v17 = vld [vmem:[#allocation11 + $0x20] sm:$0xf]  ;;  %v2351_v18 = vld [vmem:[#allocation11 + $0x28] sm:$0xf0] }
  0xa7   : > { %v759_v7 = vadd.f32 %v2571_v3, %v758_v6  ;;  %999 = vmatpush.bf16.msra.mxu2 %v2181_v43  ;;  %v2354_v6 = vld [vmem:[#allocation11 + $0x40] sm:$0xf0]  ;;  %v2133_v20 = vor.u32 %v2351_v18, %v2132_v17  ;;  %v2112_v21 = vld [vmem:[#allocation11] sm:$0xf]  ;;  %v2347_v22 = vld [vmem:[#allocation11 + $0x8] sm:$0xf0] }
  0xa8   : > { %v2346_v23 = vld [vmem:[#allocation11 + $0x4] sm:$0xf]  ;;  %v2113_v25 = vor.u32 %v2347_v22, %v2112_v21  ;;  %v2114_v26 = vld [vmem:[#allocation11 + $0xc] sm:$0xf0]  ;;  %v2120_v27 = vld [vmem:[#allocation11 + $0x8] sm:$0xf] }
  0xa9   : > { %v3404_v8 = vsel %vm760_vm0, %v2571_v3, %v759_v7  ;;  %972 = vmatpush.bf16.msra.mxu0 %v2161_v47  ;;  %v2137_v3 = vor.u32 %v2353_v63, %v2136_v62  ;;  %v2141_v7 = vor.u32 %v2352_v2, %v2138_v4  ;;  %v2348_v28 = vld [vmem:[#allocation11 + $0x10] sm:$0xf0]  ;;  %v2117_v30 = vor.u32 %v2346_v23, %v2114_v26  ;;  %v2562_v49 = vld [vmem:[#allocation8] ss:$0 sm:$0xff]  ;;  %v2563_v54 = vld [vmem:[#allocation10] ss:$0 sm:$0xff] }
  0xaa   : > { %986 = vmatpush.bf16.msra.mxu1 %v2165_v51  ;;  %v2121_v31 = vor.u32 %v2348_v28, %v2120_v27  ;;  %v3084_v23 = vmov 0.0   ;;  %s3747_s19 = sld [smem:[#allocation46_spill]]  ;;  %s2402_s21 = sshll.u32 %s3198_s28, 4 }
  0xab   : > { %1000 = vmatpush.bf16.msra.mxu2 %v2169_v52  ;;  %s745_s29 = scalar_lea.vmem [#allocation22], %s2099_s6  ;;  %s1874_s28 = scalar_lea.sflag [#allocation4], %s3361_s15 }
  0xac   : > { %s1886_s1 = sshll.u32 %s745_s29, 4  ;;  %s1887_s1 = int_to_ptr.vmem [resolvable:$true] %s1886_s1 }
  0xad   : > { %973 = vmatpush.bf16.msra.mxu0 %v2149_v56 }
  0xae   : > { %987 = vmatpush.bf16.msra.mxu1 %v2153_v60 }
  0xaf   : > { %1001 = vmatpush.bf16.msra.mxu2 %v2157_v61 }
  0xb1   : > { %974 = vmatpush.bf16.msra.mxu0 %v2137_v3 }
  0xb2   : > { %988 = vmatpush.bf16.msra.mxu1 %v2141_v7 }
 0x10d   : > { %v752_v9 = vpop.xlane.xlu0 %751 }
 0x10e   : > { %v762_v10 = vmul.f32 %v3404_v8, %v752_v9  ;;  %v2145_v9 = vor.u32 %v2354_v6, %v2144_v5 }
 0x110   : > { %v3408_v11 = vsub.f32 %v3398_v0, %v762_v10  ;;  %1002 = vmatpush.bf16.msra.mxu2 %v2145_v9  ;;  %v2124_v10 = vld [vmem:[#allocation11 + $0x18] sm:$0xf] }
 0x112   : > { %v766_v12 = vmul.f32 %v3408_v11, %v3408_v11 }
 0x114   : > { %768 = vadd.xlane.f32.xlu1 %v766_v12  ;;  %v2350_v12 = vld [vmem:[#allocation11 + $0x20] sm:$0xf0]  ;;  %1003 = vmatpush.bf16.msra.mxu2 %v2133_v20  ;;  %v1011_v20 = vlaneseq }
 0x115   : > { %v754_v13 = vpop.xlane.xlu0 %753 }
 0x116   : > { %v763_v14 = vmul.f32 %v3404_v8, %v754_v13  ;;  %v2349_v13 = vld [vmem:[#allocation11 + $0x1c] sm:$0xf]  ;;  %v3424_v21 = vshrl.u32 %v1011_v20, 7  ;;  %v1015_v22 = vand.u32 127, %v1011_v20 }
 0x118   : > { %v3414_v15 = vsub.f32 %v3401_v1, %v763_v14  ;;  %v2125_v14 = vor.u32 %v2350_v12, %v2124_v10  ;;  %1004 = vmatpush.bf16.msra.mxu2 %v2121_v31  ;;  %vm1016_vm8 = vcmp.gt.s32.totalorder %v1015_v22, %v3424_v21 }
 0x11a   : > { %v767_v16 = vmul.f32 %v3414_v15, %v3414_v15  ;;  %975 = vmatpush.bf16.msra.mxu0 %v2125_v14 }
 0x11c   : > { %770 = vadd.xlane.f32.xlu1 %v767_v16  ;;  %v2126_v16 = vld [vmem:[#allocation11 + $0x24] sm:$0xf0] }
 0x11d   : > { %v2129_v19 = vor.u32 %v2349_v13, %v2126_v16 }
 0x11e   : > { %976 = vmatpush.bf16.msra.mxu0 %v2113_v25  ;;  %v3428_v25 = vadd.s32 8, %v3424_v21 }
 0x11f   : > { %989 = vmatpush.bf16.msra.mxu1 %v2129_v19 }
 0x120   : > { %vm1017_vm10 = vcmp.gt.s32.totalorder %v1015_v22, %v3428_v25 }
 0x123   : > { %990 = vmatpush.bf16.msra.mxu1 %v2117_v30 }
 0x187   : > { %v769_v24 = vpop.xlane.xlu1 %768 }
 0x188   : > { %v772_v29 = vmul.f32 %v769_v24, %v3404_v8  ;;  %v1018_v24 = vsel %vm1016_vm8, -1e+30, %v3084_v23 }
 0x18a   : > { %v774_v32 = vadd.f32 1e-05, %v772_v29  ;;  %v1019_v29 = vsel %vm1017_vm10, -1e+30, %v3084_v23  ;;  %vm1488_vm10 = vcmp.lt.s32.totalorder %v3424_v21, 7 }
 0x18c   : > { %2572 = vrsqrt.f32 %v774_v32  ;;  %vm782_vm2 = vweird.f32 %v774_v32 }
 0x18f   : > { %v771_v33 = vpop.xlane.xlu1 %770 }
 0x190   : > { %v773_v34 = vmul.f32 %v771_v33, %v3404_v8 }
 0x192   : > { %v2573_v35 = vpop.eup %2572  ;;  %v775_v36 = vadd.f32 1e-05, %v773_v34 }
 0x193   : > { %v777_v37 = vmul.f32 %v2573_v35, %v774_v32  ;;  %vm783_vm1 = vweird.f32 %v2573_v35 }
 0x194   : > { %2574 = vrsqrt.f32 %v775_v36  ;;  %vm784_vm3 = vmor %vm782_vm2, %vm783_vm1  ;;  %vm792_vm5 = vweird.f32 %v775_v36 }
 0x195   : > { %v778_v38 = vmul.f32 %v2573_v35, %v777_v37 }
 0x197   : > { %v779_v39 = vmul.f32 0.5, %v778_v38 }
 0x199   : > { %v780_v40 = vsub.f32 1.5, %v779_v39 }
 0x19a   : > { %v2575_v41 = vpop.eup %2574 }
 0x19b   : > { %v781_v42 = vmul.f32 %v2573_v35, %v780_v40  ;;  %v787_v43 = vmul.f32 %v2575_v41, %v775_v36  ;;  %vm793_vm4 = vweird.f32 %v2575_v41 }
 0x19c   : > { %vm794_vm6 = vmor %vm792_vm5, %vm793_vm4 }
 0x19d   : > { %v788_v44 = vmul.f32 %v2575_v41, %v787_v43  ;;  %v785_v45 = vsel %vm784_vm3, %v2573_v35, %v781_v42 }
 0x19e   : > { %v796_v48 = vmul.f32 %v785_v45, %v3408_v11 }
 0x19f   : > { %v789_v46 = vmul.f32 0.5, %v788_v44 }
 0x1a0   : > { %v801_v53 = vmul.f32 %v2562_v49, %v796_v48 }
 0x1a1   : > { %v790_v47 = vsub.f32 1.5, %v789_v46 }
 0x1a2   : > { %v806_v56 = vadd.f32 %v2563_v54, %v801_v53 }
 0x1a3   : > { %v791_v50 = vmul.f32 %v2575_v41, %v790_v47 }
 0x1a5   : > { %v795_v51 = vsel %vm794_vm6, %v2575_v41, %v791_v50 }
 0x1a6   : > { %v797_v52 = vmul.f32 %v795_v51, %v3414_v15 }
 0x1a8   : > { %v802_v55 = vmul.f32 %v2562_v49, %v797_v52 }
 0x1aa   : > { %v807_v57 = vadd.f32 %v2563_v54, %v802_v55 }
 0x1ac   : > { %v808_v58 = vpack.c.bf16 %v807_v57, %v806_v56 }
 0x1ae   : > { %977 = vmatmul.bf16.vlgmr.msra.gmra.mxu0 %v808_v58  ;;  %991 = vmatmul.bf16.vlgmr.msra.gmra.mxu1 %v808_v58 }
 0x1af   : > { %1005 = vmatmul.bf16.vlgmr.msra.gmra.mxu2 %v808_v58 }
 0x22b   : > { %v978_v59 = vpop.f32.mrf.mxu0  ;;  %v992_v60 = vpop.f32.mrf.mxu1 }
 0x22c   : > { %v1022_v61 = vpack.c.bf16 %v992_v60, %v992_v60  ;;  %v1020_v7 = vpack.c.bf16 %v978_v59, %v978_v59 }
 0x22e   : > { %v1033_v3 = vunpack.c.l.b16 %v1022_v61  ;;  %v1028_v17 = vunpack.c.l.b16 %v1020_v7 }
 0x232   : > { %v1006_v11 = vpop.f32.mrf.mxu2 }
 0x233   : > { %v994_v62 = vpop.f32.mrf.mxu1  ;;  %v980_v2 = vpop.f32.mrf.mxu0  ;;  %v1024_v6 = vpack.c.bf16 %v1006_v11, %v1006_v11 }
 0x234   : > { %v1023_v63 = vpack.c.bf16 %v994_v62, %v994_v62  ;;  %v1021_v15 = vpack.c.bf16 %v980_v2, %v980_v2 }
 0x235   : > { %v1089_v14 = vunpack.c.l.b16 %v1024_v6 }
 0x236   : > { %v1034_v4 = vunpack.c.l.b16 %v1023_v63  ;;  %v1029_v13 = vunpack.c.l.b16 %v1021_v15 }
 0x238   : > { %v1035_v5 = vpack.c.b16 %v1034_v4, %v1033_v3  ;;  %v1030_v19 = vpack.c.b16 %v1029_v13, %v1028_v17 }
 0x23a   : > { %v1008_v9 = vpop.f32.mrf.mxu2  ;;  %v1041_v10 = vsel %vm1036_vm7, %v1035_v5, 0 }
 0x23b   : > { %v1025_v12 = vpack.c.bf16 %v1008_v9, %v1008_v9  ;;  %1050 = vmatpush.bf16.xpose.msra.mxu3 %v1041_v10 }
 0x23d   : > { %v1090_v16 = vunpack.c.l.b16 %v1025_v12 }
 0x23f   : > { %v1091_v18 = vpack.c.b16 %v1090_v16, %v1089_v14 }
 0x242   : > { %2206 = vmatmul.msk.bf16.vlgmr.msra.gmra.mxu3 %vm1036_vm7, %v1030_v19 }
 0x243   : > { %1103 = vmatpush.bf16.msrb.mxu3 %v1091_v18 }
 0x2c5   : > { %v1052_v26 = vpop.f32.mrf.mxu3 }
 0x2c6   : > { %v1053_v27 = vadd.f32 %v1052_v26, %v1018_v24 }
 0x2c8   : > { %v1058_v28 = vsel %vm1057_vm9, %v1053_v27, -inf }
 0x2c9   : > { %1059 = vmax.xlane.f32.xlu2 %v1058_v28 }
 0x2cd   : > { %v1054_v30 = vpop.f32.mrf.mxu3 }
 0x2ce   : > { %v1055_v31 = vadd.f32 %v1054_v30, %v1019_v29 }
 0x2d0   : > { %v1061_v32 = vsel %vm1057_vm9, %v1055_v31, -inf }
 0x2d1   : > { %1062 = vmax.xlane.f32.xlu2 %v1061_v32 }
 0x2e9   : > { %1112 = vrot.lane.b32.xlu2 %v1035_v5, %s3085_s16 }
 0x33c   : > { %v1060_v33 = vpop.xlane.xlu2 %1059 }
 0x33d   : > { %v1064_v34 = vsub.f32 %v1053_v27, %v1060_v33 }
 0x33f   : > { %v1066_v35 = vmul.f32 1.442695, %v1064_v34 }
 0x341   : > { %2576 = vpow2.f32 %v1066_v35 }
 0x344   : > { %v1063_v36 = vpop.xlane.xlu2 %1062 }
 0x345   : > { %v1065_v37 = vsub.f32 %v1055_v31, %v1063_v36 }
 0x347   : > { %v2577_v38 = vpop.eup %2576  ;;  %v1068_v39 = vmul.f32 1.442695, %v1065_v37 }
 0x348   : > { %v1070_v40 = vsel %vm1057_vm9, %v2577_v38, 0.0 }
 0x349   : > { %2578 = vpow2.f32 %v1068_v39  ;;  %1071 = vadd.xlane.f32.xlu0 %v1070_v40 }
 0x34c   : > { %v1113_v41 = vpop.permute.xlu2 %1112 }
 0x34d   : > { %v1118_v42 = vsel %vm1036_vm7, %v1113_v41, 0 }
 0x34e   : > { %1127 = vmatpush.bf16.xpose.msra.mxu3 %v1118_v42 }
 0x34f   : > { %v2579_v43 = vpop.eup %2578 }
 0x350   : > { %v1073_v44 = vsel %vm1057_vm9, %v2579_v43, 0.0 }
 0x351   : > { %1074 = vadd.xlane.f32.xlu1 %v1073_v44 }
 0x35d   : > { %1110 = vrot.lane.b32.xlu0 %v1030_v19, %s3085_s16 }
 0x365   : > { %1163 = vrot.lane.b32.xlu0 %v1091_v18, %s3085_s16 }
 0x3bc   : > { %v1072_v45 = vpop.xlane.xlu0 %1071 }
 0x3bd   : > { %2580 = vrcp.f32 %v1072_v45 }
 0x3c3   : > { %v2581_v47 = vpop.eup %2580 }
 0x3c4   : > { %v1075_v46 = vpop.xlane.xlu1 %1074  ;;  %v1078_v48 = vmul.f32 %v2581_v47, %v2577_v38 }
 0x3c5   : > { %2582 = vrcp.f32 %v1075_v46 }
 0x3c6   : > { %v1080_v50 = vpack.c.bf16 %v1078_v48, %v1078_v48 }
 0x3c8   : > { %v1084_v54 = vunpack.c.l.b16 %v1080_v50 }
 0x3cb   : > { %v2583_v49 = vpop.eup %2582 }
 0x3cc   : > { %v1079_v51 = vmul.f32 %v2583_v49, %v2579_v43 }
 0x3ce   : > { %v1081_v52 = vpack.c.bf16 %v1079_v51, %v1079_v51 }
 0x3cf   : > { %v1111_v53 = vpop.permute.xlu0 %1110 }
 0x3d0   : > { %v1085_v55 = vunpack.c.l.b16 %v1081_v52 }
 0x3d2   : > { %v1086_v56 = vpack.c.b16 %v1085_v55, %v1084_v54 }
 0x3d4   : > { %2207 = vmatmul.msk.bf16.vlgmr.msrb.gmra.mxu3 %vm1057_vm9, %v1086_v56 }
 0x3d7   : > { %v1164_v57 = vpop.permute.xlu0 %1163 }
 0x3d8   : > { %1176 = vmatpush.bf16.msrb.mxu0 %v1164_v57  ;;  %v2564_v57 = vld [vmem:[#allocation13] ss:$0 sm:$0xff] }
 0x3e4   : > { %2208 = vmatmul.msk.bf16.vlgmr.msra.gmra.mxu3 %vm1036_vm7, %v1111_v53  ;;  %v1247_v53 = vld [vmem:[%s634_s0] sm:$0x1] }
 0x457   : > { %v1105_v58 = vpop.f32.mrf.mxu3 }
 0x45f   : > { %v1107_v59 = vpop.f32.mrf.mxu3 }
 0x467   : > { %v1129_v60 = vpop.f32.mrf.mxu3 }
 0x468   : > { %v1130_v61 = vadd.f32 %v1129_v60, %v1018_v24 }
 0x46a   : > { %v1134_v11 = vsel %vm1057_vm9, %v1130_v61, -inf }
 0x46b   : > { %1135 = vmax.xlane.f32.xlu1 %v1134_v11  ;;  %v2565_v11 = vld [vmem:[#allocation14] ss:$0 sm:$0xff] }
 0x46f   : > { %v1131_v62 = vpop.f32.mrf.mxu3 }
 0x470   : > { %v1132_v63 = vadd.f32 %v1131_v62, %v1019_v29 }
 0x472   : > { %v1137_v2 = vsel %vm1057_vm9, %v1132_v63, -inf }
 0x473   : > { %1138 = vmax.xlane.f32.xlu1 %v1137_v2 }
 0x4de   : > { %v1136_v3 = vpop.xlane.xlu1 %1135 }
 0x4df   : > { %v1140_v4 = vsub.f32 %v1130_v61, %v1136_v3 }
 0x4e1   : > { %v1142_v15 = vmul.f32 1.442695, %v1140_v4 }
 0x4e3   : > { %2584 = vpow2.f32 %v1142_v15  ;;  %v2566_v15 = vld [vmem:[%s643_s23] ss:$0 sm:$0xff] }
 0x4e6   : > { %v1139_v5 = vpop.xlane.xlu1 %1138 }
 0x4e7   : > { %v1141_v6 = vsub.f32 %v1132_v63, %v1139_v5 }
 0x4e9   : > { %v2585_v7 = vpop.eup %2584  ;;  %v1144_v9 = vmul.f32 1.442695, %v1141_v6 }
 0x4ea   : > { %v1146_v10 = vsel %vm1057_vm9, %v2585_v7, 0.0 }
 0x4eb   : > { %2586 = vpow2.f32 %v1144_v9  ;;  %1147 = vadd.xlane.f32.xlu1 %v1146_v10 }
 0x4f1   : > { %v2587_v12 = vpop.eup %2586 }
 0x4f2   : > { %v1149_v13 = vsel %vm1057_vm9, %v2587_v12, 0.0 }
 0x4f3   : > { %1150 = vadd.xlane.f32.xlu2 %v1149_v13 }
 0x55e   : > { %v1148_v14 = vpop.xlane.xlu1 %1147 }
 0x55f   : > { %2588 = vrcp.f32 %v1148_v14 }
 0x565   : > { %v2589_v17 = vpop.eup %2588 }
 0x566   : > { %v1151_v16 = vpop.xlane.xlu2 %1150  ;;  %v1154_v18 = vmul.f32 %v2589_v17, %v2585_v7 }
 0x567   : > { %2590 = vrcp.f32 %v1151_v16 }
 0x568   : > { %v1156_v20 = vpack.c.bf16 %v1154_v18, %v1154_v18 }
 0x56a   : > { %v1160_v24 = vunpack.c.l.b16 %v1156_v20 }
 0x56d   : > { %v2591_v19 = vpop.eup %2590 }
 0x56e   : > { %v1155_v22 = vmul.f32 %v2591_v19, %v2587_v12 }
 0x570   : > { %v1157_v23 = vpack.c.bf16 %v1155_v22, %v1155_v22 }
 0x572   : > { %v1161_v26 = vunpack.c.l.b16 %v1157_v23 }
 0x574   : > { %v1162_v27 = vpack.c.b16 %v1161_v26, %v1160_v24 }
 0x576   : > { %2209 = vmatmul.msk.bf16.vlgmr.msrb.gmra.mxu0 %vm1057_vm9, %v1162_v27  ;;  %v2268_v27 = vld [vmem:[#allocation19 + $0x70] sm:$0xf]  ;;  %vm1473_vm9 = vcmp.lt.s32.totalorder %v3424_v21, 1 }
 0x5f3   : > { %v1178_v28 = vpop.f32.mrf.mxu0 }
 0x5f4   : > { %1185 = vrot.lane.b32.xlu1 %v1178_v28, %s3085_s16  ;;  %v2385_v28 = vld [vmem:[#allocation19 + $0x74] sm:$0xf0] }
 0x5fb   : > { %v1180_v29 = vpop.f32.mrf.mxu0 }
 0x5fc   : > { %1187 = vrot.lane.b32.xlu0 %v1180_v29, %s3085_s16  ;;  %v2384_v29 = vld [vmem:[#allocation19 + $0x74] sm:$0xf]  ;;  %s3749_s16 = sld [smem:[#allocation47_spill]] }
 0x602   : > { %s1885_s30 = scalar_lea.hbm %s3749_s16, %s2402_s21  ;;  %s2996_s9 = scalar_lea.hbm %s3749_s16, 32 }
 0x603   : > { %s1888_s27 = sshll.u32 %s1885_s30, 4  ;;  %s1889_s27 = int_to_ptr.hbm [resolvable:$true] %s1888_s27 }
 0x604   : > { %s2990_s20 = sshra.s32 %s1889_s27, 4  ;;  %s2991_s20 = int_to_ptr.hbm [resolvable:$true] %s2990_s20 }
 0x605   : > { %s2992_s6 = scalar_lea.hbm %s2991_s20, 16  ;;  %p2997_p7 = scmp.lt.s32.totalorder %s2991_s20, %s3749_s16 }
 0x606   : > { %p2993_p11 = scmp.ne.s32.totalorder %s2991_s20, %s2992_s6  ;;  %p2998_p9 = scmp.lt.s32.totalorder %s2996_s9, %s2992_s6 }
 0x608   : > { %p2994_p13 = pnand %p2993_p11, %p3259_p5  ;;  %p2999_p0 = por %p2998_p9, %p2997_p7 }
 0x60a   : > { %p2995_p3 = pneg %p2994_p13 }
 0x60c   : > { %p3000_p2 = pnand %p2999_p0, %p2995_p3 }
 0x666   : > { %v1186_v30 = vpop.permute.xlu1 %1185 }
 0x667   : > { %v1191_v31 = vsel %vm1036_vm7, %v1105_v58, %v1186_v30  ;;  %v1248_v58 = vadd.f32 1.0, %v1247_v53  ;;  %v2269_v30 = vor.u32 %v2385_v28, %v2268_v27  ;;  %v2238_v53 = vld [vmem:[#allocation19 + $0x38] sm:$0xf0] }
 0x668   : > { %v1193_v32 = vadd.f32 %v1191_v31, %v3398_v0  ;;  %v2270_v31 = vld [vmem:[#allocation19 + $0x78] sm:$0xf0] }
 0x669   : > { %v1250_v2 = vperm.slane %v1248_v58, 0  ;;  %1415 = vmatpush.bf16.msrb.mxu1 %v2269_v30 }
 0x66a   : > { %1197 = vadd.xlane.f32.xlu0 %v1193_v32 }
 0x66e   : > { %v1188_v33 = vpop.permute.xlu0 %1187 }
 0x66f   : > { %v1192_v34 = vsel %vm1036_vm7, %v1107_v59, %v1188_v33  ;;  %v2260_v33 = vld [vmem:[#allocation19 + $0x60] sm:$0xf] }
 0x670   : > { %v1194_v35 = vadd.f32 %v1192_v34, %v3401_v1  ;;  %v2383_v34 = vld [vmem:[#allocation19 + $0x64] sm:$0xf0] }
 0x672   : > { %1199 = vadd.xlane.f32.xlu1 %v1194_v35 }
 0x6dd   : > { %v1198_v36 = vpop.xlane.xlu0 %1197 }
 0x6de   : > { %v1201_v37 = vmul.f32 %v1198_v36, %v3404_v8  ;;  %v2261_v36 = vor.u32 %v2383_v34, %v2260_v33 }
 0x6e0   : > { %v1203_v38 = vsub.f32 %v1193_v32, %v1201_v37  ;;  %v2273_v32 = vor.u32 %v2384_v29, %v2270_v31  ;;  %v2262_v37 = vld [vmem:[#allocation19 + $0x68] sm:$0xf0]  ;;  %1416 = vmatpush.bf16.msrb.mxu1 %v2261_v36  ;;  %v2567_v36 = vld [vmem:[#allocation16] ss:$0 sm:$0xff] }
 0x6e2   : > { %v1205_v39 = vmul.f32 %v1203_v38, %v1203_v38  ;;  %1429 = vmatpush.bf16.msrb.mxu2 %v2273_v32 }
 0x6e4   : > { %1207 = vadd.xlane.f32.xlu2 %v1205_v39  ;;  %v2252_v39 = vld [vmem:[#allocation19 + $0x50] sm:$0xf] }
 0x6e5   : > { %v1200_v40 = vpop.xlane.xlu1 %1199 }
 0x6e6   : > { %v1202_v41 = vmul.f32 %v1200_v40, %v3404_v8  ;;  %v2381_v40 = vld [vmem:[#allocation19 + $0x54] sm:$0xf0] }
 0x6e8   : > { %v1204_v42 = vsub.f32 %v1194_v35, %v1202_v41  ;;  %v2382_v35 = vld [vmem:[#allocation19 + $0x64] sm:$0xf]  ;;  %v2380_v41 = vld [vmem:[#allocation19 + $0x54] sm:$0xf] }
 0x6ea   : > { %v1206_v43 = vmul.f32 %v1204_v42, %v1204_v42 }
 0x6ec   : > { %1209 = vadd.xlane.f32.xlu2 %v1206_v43  ;;  %v2254_v43 = vld [vmem:[#allocation19 + $0x58] sm:$0xf0] }
 0x757   : > { %v1208_v0 = vpop.xlane.xlu2 %1207 }
 0x758   : > { %v1211_v44 = vmul.f32 %v1208_v0, %v3404_v8  ;;  %v2257_v0 = vor.u32 %v2380_v41, %v2254_v43  ;;  %v2568_v41 = vld [vmem:[#allocation17] ss:$0 sm:$0xff] }
 0x75a   : > { %v1213_v45 = vadd.f32 1e-05, %v1211_v44  ;;  %v2244_v44 = vld [vmem:[#allocation19 + $0x40] sm:$0xf] }
 0x75c   : > { %2592 = vrsqrt.f32 %v1213_v45  ;;  %vm1221_vm12 = vweird.f32 %v1213_v45 }
 0x75f   : > { %v1210_v1 = vpop.xlane.xlu2 %1209 }
 0x760   : > { %v1212_v46 = vmul.f32 %v1210_v1, %v3404_v8  ;;  %v2378_v1 = vld [vmem:[#allocation19 + $0x44] sm:$0xf] }
 0x762   : > { %v2593_v47 = vpop.eup %2592  ;;  %v1214_v48 = vadd.f32 1e-05, %v1212_v46 }
 0x763   : > { %v1216_v49 = vmul.f32 %v2593_v47, %v1213_v45  ;;  %vm1222_vm11 = vweird.f32 %v2593_v47  ;;  %v2379_v45 = vld [vmem:[#allocation19 + $0x44] sm:$0xf0] }
 0x764   : > { %2594 = vrsqrt.f32 %v1214_v48  ;;  %vm1223_vm13 = vmor %vm1221_vm12, %vm1222_vm11  ;;  %vm1231_vm15 = vweird.f32 %v1214_v48  ;;  %v2245_v46 = vor.u32 %v2379_v45, %v2244_v44  ;;  %v1329_v45 = vld [vmem:[%s3681_s11] sm:$0x3] }
 0x765   : > { %v1217_v50 = vmul.f32 %v2593_v47, %v1216_v49  ;;  %v2236_v49 = vld [vmem:[#allocation19 + $0x30] sm:$0xf] }
 0x767   : > { %v1218_v51 = vmul.f32 0.5, %v1217_v50  ;;  %v2377_v50 = vld [vmem:[#allocation19 + $0x34] sm:$0xf0] }
 0x769   : > { %v1219_v52 = vsub.f32 1.5, %v1218_v51  ;;  %v2376_v51 = vld [vmem:[#allocation19 + $0x34] sm:$0xf] }
 0x76a   : > { %v2595_v54 = vpop.eup %2594 }
 0x76b   : > { %v1220_v55 = vmul.f32 %v2593_v47, %v1219_v52  ;;  %v1226_v56 = vmul.f32 %v2595_v54, %v1214_v48  ;;  %vm1232_vm14 = vweird.f32 %v2595_v54  ;;  %v2237_v52 = vor.u32 %v2377_v50, %v2236_v49  ;;  %v3495_v50 = vld [vmem:[%s3682_s12] ss:$4 sm:$0x3] }
 0x76c   : > { %vm1233_vm0 = vmor %vm1231_vm15, %vm1232_vm14 }
 0x76d   : > { %v1224_v59 = vsel %vm1223_vm13, %v2593_v47, %v1220_v55  ;;  %v1227_v60 = vmul.f32 %v2595_v54, %v1226_v56  ;;  %v2246_v47 = vld [vmem:[#allocation19 + $0x48] sm:$0xf0]  ;;  %v2228_v55 = vld [vmem:[#allocation19 + $0x20] sm:$0xf]  ;;  %v2375_v56 = vld [vmem:[#allocation19 + $0x24] sm:$0xf0] }
 0x76e   : > { %v1235_v61 = vmul.f32 %v1224_v59, %v1203_v38  ;;  %v2265_v38 = vor.u32 %v2382_v35, %v2262_v37  ;;  %v2249_v48 = vor.u32 %v2378_v1, %v2246_v47  ;;  %v2229_v58 = vor.u32 %v2375_v56, %v2228_v55  ;;  %v2230_v59 = vld [vmem:[#allocation19 + $0x28] sm:$0xf0] }
 0x76f   : > { %v1228_v62 = vmul.f32 0.5, %v1227_v60  ;;  %v1331_v1 = vperm.slane %v1329_v45, 0  ;;  %v1447_v47 = vand.u32 15, %v3424_v21 }
 0x770   : > { %v1240_v63 = vmul.f32 %v2564_v57, %v1235_v61  ;;  %1430 = vmatpush.bf16.msrb.mxu2 %v2265_v38  ;;  %v2220_v61 = vld [vmem:[#allocation19 + $0x10] sm:$0xf] }
 0x771   : > { %v1229_v3 = vsub.f32 1.5, %v1228_v62  ;;  %v2372_v62 = vld [vmem:[#allocation19 + $0x14] sm:$0xf]  ;;  %vm3507_vm8 = vcmp.eq.s32.totalorder %v1447_v47, 0 }
 0x772   : > { %v1245_v4 = vadd.f32 %v2565_v11, %v1240_v63 }
 0x773   : > { %v1230_v5 = vmul.f32 %v2595_v54, %v1229_v3  ;;  %v2212_v3 = vld [vmem:[#allocation19] sm:$0xf] }
 0x774   : > { %v1252_v6 = vmul.f32 %v1250_v2, %v1245_v4  ;;  %1431 = vmatpush.bf16.msrb.mxu2 %v2257_v0  ;;  %v2371_v4 = vld [vmem:[#allocation19 + $0x4] sm:$0xf0] }
 0x775   : > { %v1234_v7 = vsel %vm1233_vm0, %v2595_v54, %v1230_v5  ;;  %v2241_v54 = vor.u32 %v2376_v51, %v2238_v53  ;;  %v3500_v51 = vld [vmem:[%s3682_s12 + $0x2] ss:$4 sm:$0x3] }
 0x776   : > { %v1236_v9 = vmul.f32 %v1234_v7, %v1204_v42  ;;  %v3460_v10 = vadd.f32 %v2566_v15, %v1252_v6  ;;  %v2253_v42 = vor.u32 %v2381_v40, %v2252_v39  ;;  %v2370_v6 = vld [vmem:[#allocation19 + $0x4] sm:$0xf]  ;;  %v2214_v7 = vld [vmem:[#allocation19 + $0x8] sm:$0xf0] }
 0x778   : > { %1262 = vadd.xlane.f32.xlu2 %v3460_v10  ;;  %v1241_v12 = vmul.f32 %v2564_v57, %v1236_v9  ;;  %1417 = vmatpush.bf16.msrb.mxu1 %v2253_v42  ;;  %v2374_v57 = vld [vmem:[#allocation19 + $0x24] sm:$0xf] }
 0x779   : > { %1432 = vmatpush.bf16.msrb.mxu2 %v2249_v48  ;;  %v2233_v60 = vor.u32 %v2374_v57, %v2230_v59  ;;  %v1499_v57 = vperm.slane %v3495_v50, 0 }
 0x77a   : > { %v1246_v13 = vadd.f32 %v2565_v11, %v1241_v12  ;;  %v2373_v11 = vld [vmem:[#allocation19 + $0x14] sm:$0xf0]  ;;  %v2213_v12 = vor.u32 %v2371_v4, %v2212_v3  ;;  %v3519_v3 = vld [vmem:[%s3683_s13] sm:$0x3] }
 0x77b   : > { %v2221_v63 = vor.u32 %v2373_v11, %v2220_v61 }
 0x77c   : > { %v1253_v14 = vmul.f32 %v1250_v2, %v1246_v13  ;;  %1418 = vmatpush.bf16.msrb.mxu1 %v2245_v46  ;;  %v2222_v2 = vld [vmem:[#allocation19 + $0x18] sm:$0xf0]  ;;  %v2217_v13 = vor.u32 %v2370_v6, %v2214_v7  ;;  %v1454_v46 = vand.u32 15, %v3428_v25 }
 0x77d   : > { %1433 = vmatpush.bf16.msrb.mxu2 %v2241_v54  ;;  %v2225_v5 = vor.u32 %v2372_v62, %v2222_v2  ;;  %v2393_v7 = vld [vmem:[#allocation20 + $0x38] sm:$0xff] }
 0x77e   : > { %v3463_v16 = vadd.f32 %v2566_v15, %v1253_v14  ;;  %vm3503_vm7 = vcmp.eq.s32.totalorder %v1454_v46, 15  ;;  %1841 = vmatpush.bf16.msrb.mxu3 %v2393_v7 }
 0x780   : > { %1264 = vadd.xlane.f32.xlu0 %v3463_v16  ;;  %1419 = vmatpush.bf16.msrb.mxu1 %v2237_v52  ;;  %v1332_v52 = vperm.slane %v1329_v45, 1 }
 0x781   : > { %1434 = vmatpush.bf16.msrb.mxu2 %v2233_v60 }
 0x784   : > { %1420 = vmatpush.bf16.msrb.mxu1 %v2229_v58  ;;  %v1525_v58 = vperm.slane %v3500_v51, 0 }
 0x785   : > { %1435 = vmatpush.bf16.msrb.mxu2 %v2225_v5 }
 0x788   : > { %1421 = vmatpush.bf16.msrb.mxu1 %v2221_v63 }
 0x789   : > { %1436 = vmatpush.bf16.msrb.mxu2 %v2217_v13 }
 0x78c   : > { %1422 = vmatpush.bf16.msrb.mxu1 %v2213_v12 }
 0x7eb   : > { %v1263_v17 = vpop.xlane.xlu2 %1262 }
 0x7ec   : > { %v1266_v18 = vmul.f32 %v1263_v17, %v3404_v8 }
 0x7ee   : > { %v3468_v19 = vsub.f32 %v3460_v10, %v1266_v18 }
 0x7f0   : > { %v1270_v20 = vmul.f32 %v3468_v19, %v3468_v19 }
 0x7f2   : > { %1272 = vadd.xlane.f32.xlu2 %v1270_v20 }
 0x7f3   : > { %v1265_v22 = vpop.xlane.xlu0 %1264 }
 0x7f4   : > { %v1267_v23 = vmul.f32 %v1265_v22, %v3404_v8 }
 0x7f6   : > { %v3474_v24 = vsub.f32 %v3463_v16, %v1267_v23 }
 0x7f8   : > { %v1271_v26 = vmul.f32 %v3474_v24, %v3474_v24 }
 0x7fa   : > { %1274 = vadd.xlane.f32.xlu0 %v1271_v26 }
 0x865   : > { %v1273_v15 = vpop.xlane.xlu2 %1272 }
 0x866   : > { %v1276_v9 = vmul.f32 %v1273_v15, %v3404_v8 }
 0x868   : > { %v1278_v14 = vadd.f32 1e-05, %v1276_v9  ;;  %v2401_v9 = vld [vmem:[#allocation20 + $0x78] sm:$0xff] }
 0x869   : > { %1855 = vmatpush.bf16.msra.mxu0 %v2401_v9  ;;  %v2396_v9 = vld [vmem:[#allocation20 + $0x50] sm:$0xff] }
 0x86a   : > { %2596 = vrsqrt.f32 %v1278_v14  ;;  %vm1286_vm2 = vweird.f32 %v1278_v14 }
 0x86d   : > { %v1275_v17 = vpop.xlane.xlu0 %1274 }
 0x86e   : > { %v1277_v18 = vmul.f32 %v1275_v17, %v3404_v8 }
 0x870   : > { %v2597_v20 = vpop.eup %2596  ;;  %v1279_v22 = vadd.f32 1e-05, %v1277_v18 }
 0x871   : > { %v1281_v23 = vmul.f32 %v2597_v20, %v1278_v14  ;;  %vm1287_vm1 = vweird.f32 %v2597_v20 }
 0x872   : > { %2598 = vrsqrt.f32 %v1279_v22  ;;  %vm1288_vm3 = vmor %vm1286_vm2, %vm1287_vm1  ;;  %vm1296_vm5 = vweird.f32 %v1279_v22 }
 0x873   : > { %v1282_v26 = vmul.f32 %v2597_v20, %v1281_v23  ;;  %v1539_v23 = vperm.slane %v3519_v3, 0 }
 0x875   : > { %v1283_v27 = vmul.f32 0.5, %v1282_v26 }
 0x877   : > { %v1284_v28 = vsub.f32 1.5, %v1283_v27  ;;  %v2392_v27 = vld [vmem:[#allocation20 + $0x30] sm:$0xff] }
 0x878   : > { %v2599_v29 = vpop.eup %2598  ;;  %1842 = vmatpush.bf16.msrb.mxu3 %v2392_v27 }
 0x879   : > { %v1285_v30 = vmul.f32 %v2597_v20, %v1284_v28  ;;  %v1291_v31 = vmul.f32 %v2599_v29, %v1279_v22  ;;  %vm1297_vm4 = vweird.f32 %v2599_v29 }
 0x87a   : > { %vm1298_vm6 = vmor %vm1296_vm5, %vm1297_vm4 }
 0x87b   : > { %v1292_v32 = vmul.f32 %v2599_v29, %v1291_v31  ;;  %v1289_v33 = vsel %vm1288_vm3, %v2597_v20, %v1285_v30  ;;  %v1500_v31 = vperm.slane %v3495_v50, 1 }
 0x87c   : > { %v1300_v8 = vmul.f32 %v1289_v33, %v3468_v19 }
 0x87d   : > { %v1293_v34 = vmul.f32 0.5, %v1292_v32  ;;  %v2400_v32 = vld [vmem:[#allocation20 + $0x70] sm:$0xff] }
 0x87e   : > { %v1305_v40 = vmul.f32 %v2567_v36, %v1300_v8  ;;  %1856 = vmatpush.bf16.msra.mxu0 %v2400_v32 }
 0x87f   : > { %v1294_v35 = vsub.f32 1.5, %v1293_v34 }
 0x880   : > { %v1310_v43 = vadd.f32 %v2568_v41, %v1305_v40 }
 0x881   : > { %v1295_v37 = vmul.f32 %v2599_v29, %v1294_v35 }
 0x883   : > { %v1299_v38 = vsel %vm1298_vm6, %v2599_v29, %v1295_v37 }
 0x884   : > { %v1301_v39 = vmul.f32 %v1299_v38, %v3474_v24  ;;  %v3489_v24 = vld [vmem:[%s3682_s12 + $0x1] ss:$4 sm:$0x3]  ;;  %v1526_v38 = vperm.slane %v3500_v51, 1 }
 0x885   : > { %v1510_v25 = vperm.slane %v3489_v24, 0  ;;  %v1511_v2 = vperm.slane %v3489_v24, 1 }
 0x886   : > { %v1306_v42 = vmul.f32 %v2567_v36, %v1301_v39 }
 0x888   : > { %v1311_v0 = vadd.f32 %v2568_v41, %v1306_v42 }
 0x88a   : > { %v1312_v44 = vpack.c.bf16 %v1311_v0, %v1310_v43  ;;  %v2391_v43 = vld [vmem:[#allocation20 + $0x28] sm:$0xff] }
 0x88b   : > { %1843 = vmatpush.bf16.msrb.mxu3 %v2391_v43 }
 0x88c   : > { %1423 = vmatmul.bf16.vlgmr.msrb.gmra.mxu1 %v1312_v44  ;;  %1437 = vmatmul.bf16.vlgmr.msrb.gmra.mxu2 %v1312_v44 }
 0x909   : > { %v1424_v19 = vpop.f32.mrf.mxu1 }
 0x90a   : > { %v1425_v49 = vadd.f32 %v1424_v19, %v1331_v1 }
 0x90c   : > { %v1469_v59 = vrot.slane %v1425_v49, 7  ;;  %v1484_v60 = vrot.slane %v1425_v49, 1  ;;  %v1514_v62 = vmul.f32 %v1510_v25, %v1425_v49 }
 0x90f   : > { %v1438_v48 = vpop.f32.mrf.mxu2 }
 0x910   : > { %v1439_v63 = vadd.f32 %v1438_v48, %v1332_v52 }
 0x911   : > { %v1426_v53 = vpop.f32.mrf.mxu1 }
 0x912   : > { %v1427_v55 = vadd.f32 %v1426_v53, %v1331_v1  ;;  %v1470_v28 = vrot.slane %v1439_v63, 7  ;;  %v1485_v29 = vrot.slane %v1439_v63, 1  ;;  %v2399_v1 = vld [vmem:[#allocation20 + $0x68] sm:$0xff]  ;;  %v1515_v46 = vmul.f32 %v1511_v2, %v1439_v63  ;;  %v2390_v53 = vld [vmem:[#allocation20 + $0x20] sm:$0xff] }
 0x913   : > { %1857 = vmatpush.bf16.msra.mxu0 %v2399_v1  ;;  %1844 = vmatpush.bf16.msrb.mxu3 %v2390_v53 }
 0x914   : > { %v1471_v61 = vrot.slane %v1427_v55, 7  ;;  %v1486_v11 = vrot.slane %v1427_v55, 1  ;;  %v1516_v6 = vmul.f32 %v1510_v25, %v1427_v55  ;;  %v1540_v25 = vperm.slane %v3519_v3, 1  ;;  %v2397_v3 = vld [vmem:[#allocation20 + $0x58] sm:$0xff] }
 0x916   : > { %v1474_v4 = vsel %vm1473_vm9, %v1469_v59, %v1471_v61  ;;  %v1476_v15 = vsel %vm1473_vm9, %v1471_v61, %v1469_v59  ;;  %v1491_v5 = vsel %vm1488_vm10, %v1486_v11, %v1484_v60  ;;  %v1489_v13 = vsel %vm1488_vm10, %v1484_v60, %v1486_v11  ;;  %v2389_v11 = vld [vmem:[#allocation20 + $0x18] sm:$0xff] }
 0x917   : > { %v1478_v12 = vsel %vm3507_vm8, 0.0, %v1476_v15  ;;  %v1495_v14 = vsel %vm3503_vm7, 0.0, %v1491_v5  ;;  %v1505_v17 = vmul.f32 %v1499_v57, %v1474_v4  ;;  %v1440_v18 = vpop.f32.mrf.mxu2  ;;  %v1529_v34 = vmul.f32 %v1525_v58, %v1489_v13  ;;  %1845 = vmatpush.bf16.msrb.mxu3 %v2389_v11 }
 0x918   : > { %v1503_v20 = vmul.f32 %v1499_v57, %v1478_v12  ;;  %v1531_v22 = vmul.f32 %v1525_v58, %v1495_v14  ;;  %v1441_v26 = vadd.f32 %v1440_v18, %v1332_v52  ;;  %v2398_v57 = vld [vmem:[#allocation20 + $0x60] sm:$0xff]  ;;  %v2387_v14 = vld [vmem:[#allocation20 + $0x8] sm:$0xff] }
 0x919   : > { %v1520_v30 = vadd.f32 %v1516_v6, %v1505_v17  ;;  %1858 = vmatpush.bf16.msra.mxu0 %v2398_v57  ;;  %v2388_v6 = vld [vmem:[#allocation20 + $0x10] sm:$0xff]  ;;  %v2395_v18 = vld [vmem:[#allocation20 + $0x48] sm:$0xff] }
 0x91a   : > { %v1518_v33 = vadd.f32 %v1514_v62, %v1503_v20  ;;  %v1472_v35 = vrot.slane %v1441_v26, 7  ;;  %v1487_v8 = vrot.slane %v1441_v26, 1  ;;  %v1517_v37 = vmul.f32 %v1511_v2, %v1441_v26 }
 0x91b   : > { %v1535_v36 = vadd.f32 %v1531_v22, %v1520_v30  ;;  %1846 = vmatpush.bf16.msrb.mxu3 %v2388_v6 }
 0x91c   : > { %v1533_v39 = vadd.f32 %v1529_v34, %v1518_v33  ;;  %v1475_v40 = vsel %vm1473_vm9, %v1470_v28, %v1472_v35  ;;  %v1477_v41 = vsel %vm1473_vm9, %v1472_v35, %v1470_v28  ;;  %v1490_v42 = vsel %vm1488_vm10, %v1485_v29, %v1487_v8 }
 0x91d   : > { %v3542_v0 = vadd.f32 %v1539_v23, %v1535_v36  ;;  %v1479_v44 = vsel %vm3507_vm8, 0.0, %v1477_v41  ;;  %v1492_v45 = vsel %vm1488_vm10, %v1487_v8, %v1485_v29  ;;  %v1506_v19 = vmul.f32 %v1500_v31, %v1475_v40  ;;  %1859 = vmatpush.bf16.msra.mxu0 %v2397_v3  ;;  %v2386_v29 = vld [vmem:[#allocation20] sm:$0xff] }
 0x91e   : > { %v1496_v24 = vsel %vm3503_vm7, 0.0, %v1492_v45  ;;  %v1504_v47 = vmul.f32 %v1500_v31, %v1479_v44  ;;  %v3550_v48 = vadd.f32 %v1539_v23, %v1533_v39  ;;  %v1530_v21 = vmul.f32 %v1526_v38, %v1490_v42 }
 0x91f   : > { %v3553_v49 = vmul.f32 0.70710677, %v3542_v0  ;;  %v1521_v50 = vadd.f32 %v1517_v37, %v1506_v19  ;;  %v1532_v51 = vmul.f32 %v1526_v38, %v1496_v24  ;;  %1847 = vmatpush.bf16.msrb.mxu3 %v2387_v14  ;;  %v2394_v24 = vld [vmem:[#allocation20 + $0x40] sm:$0xff] }
 0x920   : > { %v1519_v52 = vadd.f32 %v1515_v46, %v1504_v47  ;;  %v3557_v55 = vmul.f32 0.70710677, %v3550_v48 }
 0x921   : > { %v3560_v54 = vand.u32 2147483647, %v3553_v49  ;;  %v1536_v56 = vadd.f32 %v1532_v51, %v1521_v50  ;;  %1860 = vmatpush.bf16.msra.mxu0 %v2396_v9 }
 0x922   : > { %v1534_v58 = vadd.f32 %v1530_v21, %v1519_v52  ;;  %v3563_v59 = vand.u32 2147483647, %v3557_v55 }
 0x923   : > { %v1569_v60 = vmul.f32 0.3275911, %v3560_v54  ;;  %v3566_v61 = vadd.f32 %v1540_v25, %v1536_v56  ;;  %v1673_v37 = vsub.f32 0.0, %v3560_v54  ;;  %1848 = vmatpush.bf16.msrb.mxu3 %v2386_v29 }
 0x924   : > { %v1567_v62 = vmul.f32 0.3275911, %v3563_v59  ;;  %v3572_v4 = vadd.f32 %v1540_v25, %v1534_v58  ;;  %v1671_v41 = vsub.f32 0.0, %v3563_v59 }
 0x925   : > { %v1573_v63 = vadd.f32 1.0, %v1569_v60  ;;  %v3570_v2 = vmul.f32 0.70710677, %v3566_v61  ;;  %1861 = vmatpush.bf16.msra.mxu0 %v2395_v18  ;;  %v1677_v53 = vmul.f32 %v1673_v37, %v3560_v54 }
 0x926   : > { %v1571_v15 = vadd.f32 1.0, %v1567_v62  ;;  %v3579_v12 = vmul.f32 0.70710677, %v3572_v4 }
 0x927   : > { %2600 = vrcp.f32 %v1573_v63  ;;  %v3575_v5 = vand.u32 2147483647, %v3570_v2  ;;  %v1616_v32 = vand.u32 2147483648, %v1573_v63  ;;  %v1614_v8 = vand.u32 2147483647, %v1573_v63 }
 0x928   : > { %2602 = vrcp.f32 %v1571_v15  ;;  %v3585_v20 = vand.u32 2147483647, %v3579_v12  ;;  %v1584_v31 = vand.u32 2147483647, %v1571_v15  ;;  %v1586_v34 = vand.u32 2147483648, %v1571_v15 }
 0x929   : > { %v1570_v7 = vmul.f32 0.3275911, %v3575_v5  ;;  %vm1610_vm13 = vweird.f32 %v1573_v63  ;;  %vm1580_vm14 = vweird.f32 %v1571_v15  ;;  %v1617_v43 = vor.u32 1.1754944e-38, %v1616_v32  ;;  %1862 = vmatpush.bf16.msra.mxu0 %v2394_v24 }
 0x92a   : > { %v1568_v27 = vmul.f32 0.3275911, %v3585_v20  ;;  %vm1585_vm15 = vcmp.eq.f32.partialorder %v1584_v31, 8.507059e+37  ;;  %v1587_v45 = vor.u32 1.1754944e-38, %v1586_v34  ;;  %vm1615_vm2 = vcmp.eq.f32.partialorder %v1614_v8, 8.507059e+37 }
 0x92b   : > { %v3581_v13 = vadd.f32 1.0, %v1570_v7  ;;  %v1674_v11 = vsub.f32 0.0, %v3575_v5 }
 0x92c   : > { %v3588_v33 = vadd.f32 1.0, %v1568_v27 }
 0x92d   : > { %v2601_v17 = vpop.eup %2600  ;;  %2604 = vrcp.f32 %v3581_v13  ;;  %v1629_v47 = vand.u32 2147483647, %v3581_v13  ;;  %v1631_v50 = vand.u32 2147483648, %v3581_v13  ;;  %vm1625_vm4 = vweird.f32 %v3581_v13 }
 0x92e   : > { %v2603_v22 = vpop.eup %2602  ;;  %v1606_v23 = vmul.f32 %v2601_v17, %v1573_v63  ;;  %vm1611_vm11 = vweird.f32 %v2601_v17  ;;  %2606 = vrcp.f32 %v3588_v33  ;;  %v1675_v63 = vmul.f32 %v1671_v41, %v3563_v59 }
 0x92f   : > { %v1576_v26 = vmul.f32 %v2603_v22, %v1571_v15  ;;  %vm1581_vm12 = vweird.f32 %v2603_v22  ;;  %vm1612_vm0 = vmor %vm1610_vm13, %vm1611_vm11  ;;  %v1632_v3 = vor.u32 1.1754944e-38, %v1631_v50  ;;  %vm1630_vm6 = vcmp.eq.f32.partialorder %v1629_v47, 8.507059e+37 }
 0x930   : > { %v1607_v28 = vsub.f32 1.0, %v1606_v23  ;;  %vm1582_vm1 = vmor %vm1580_vm14, %vm1581_vm12  ;;  %v1599_v9 = vand.u32 2147483647, %v3588_v33  ;;  %v1601_v14 = vand.u32 2147483648, %v3588_v33  ;;  %v1683_v23 = vmul.f32 1.442695, %v1677_v53 }
 0x931   : > { %v1577_v30 = vsub.f32 1.0, %v1576_v26  ;;  %v1679_v26 = vmul.f32 1.442695, %v1675_v63  ;;  %vm1595_vm8 = vweird.f32 %v3588_v33  ;;  %vm1557_vm11 = vcmp.lt.f32.partialorder %v3553_v49, 0.0 }
 0x932   : > { %v1608_v35 = vmul.f32 %v2601_v17, %v1607_v28  ;;  %v1602_v32 = vor.u32 1.1754944e-38, %v1601_v14  ;;  %vm1600_vm10 = vcmp.eq.f32.partialorder %v1599_v9, 8.507059e+37  ;;  %2608 = vpow2.f32 %v1683_v23 }
 0x933   : > { %v2605_v36 = vpop.eup %2604  ;;  %v1578_v38 = vmul.f32 %v2603_v22, %v1577_v30  ;;  %v1678_v30 = vmul.f32 %v1674_v11, %v3575_v5  ;;  %2610 = vpow2.f32 %v1679_v26  ;;  %vm1555_vm12 = vcmp.lt.f32.partialorder %v3557_v55, 0.0 }
 0x934   : > { %v1621_v39 = vmul.f32 %v2605_v36, %v3581_v13  ;;  %v1609_v40 = vadd.f32 %v2601_v17, %v1608_v35  ;;  %vm1626_vm3 = vweird.f32 %v2605_v36  ;;  %v2607_v21 = vpop.eup %2606  ;;  %v1549_v49 = vmul.f32 0.5, %v3542_v0 }
 0x935   : > { %v1579_v42 = vadd.f32 %v2603_v22, %v1578_v38  ;;  %v1591_v58 = vmul.f32 %v2607_v21, %v3588_v33  ;;  %vm1627_vm5 = vmor %vm1625_vm4, %vm1626_vm3  ;;  %vm1596_vm7 = vweird.f32 %v2607_v21  ;;  %v1672_v38 = vsub.f32 0.0, %v3585_v20 }
 0x936   : > { %v1622_v44 = vsub.f32 1.0, %v1621_v39  ;;  %v1613_v19 = vsel %vm1612_vm0, %v2601_v17, %v1609_v40  ;;  %vm1597_vm9 = vmor %vm1595_vm8, %vm1596_vm7  ;;  %v1685_v41 = vmul.f32 1.442695, %v1678_v30  ;;  %vm1558_vm13 = vcmp.lt.f32.partialorder %v3570_v2, 0.0 }
 0x937   : > { %v1583_v1 = vsel %vm1582_vm1, %v2603_v22, %v1579_v42  ;;  %v3595_v46 = vsel %vm1615_vm2, %v1617_v43, %v1613_v19  ;;  %v1592_v6 = vsub.f32 1.0, %v1591_v58  ;;  %v1676_v19 = vmul.f32 %v1672_v38, %v3585_v20 }
 0x938   : > { %v3599_v51 = vsel %vm1585_vm15, %v1587_v45, %v1583_v1  ;;  %v1637_v25 = vmul.f32 1.0614054, %v3595_v46  ;;  %v1623_v52 = vmul.f32 %v2605_v36, %v1622_v44  ;;  %v2609_v50 = vpop.eup %2608  ;;  %2612 = vpow2.f32 %v1685_v41 }
 0x939   : > { %v1635_v56 = vmul.f32 1.0614054, %v3599_v51  ;;  %v1593_v18 = vmul.f32 %v2607_v21, %v1592_v6  ;;  %v1681_v58 = vmul.f32 1.442695, %v1676_v19  ;;  %vm1556_vm14 = vcmp.lt.f32.partialorder %v3579_v12, 0.0 }
 0x93a   : > { %v1641_v57 = vadd.f32 -1.4531521, %v1637_v25  ;;  %v1624_v60 = vadd.f32 %v2605_v36, %v1623_v52  ;;  %v2611_v52 = vpop.eup %2610  ;;  %v2569_v12 = vld [vmem:[%s3747_s19] ss:$0 sm:$0xff] }
 0x93b   : > { %v1639_v62 = vadd.f32 -1.4531521, %v1635_v56  ;;  %v1594_v28 = vadd.f32 %v2607_v21, %v1593_v18  ;;  %2614 = vpow2.f32 %v1681_v58 }
 0x93c   : > { %v1645_v15 = vmul.f32 %v1641_v57, %v3595_v46  ;;  %v1628_v54 = vsel %vm1627_vm5, %v2605_v36, %v1624_v60 }
 0x93d   : > { %v1643_v7 = vmul.f32 %v1639_v62, %v3599_v51  ;;  %v1633_v17 = vsel %vm1630_vm6, %v1632_v3, %v1628_v54  ;;  %v1598_v35 = vsel %vm1597_vm9, %v2607_v21, %v1594_v28 }
 0x93e   : > { %v1649_v13 = vadd.f32 1.4214138, %v1645_v15  ;;  %v1638_v22 = vmul.f32 1.0614054, %v1633_v17  ;;  %v1603_v37 = vsel %vm1600_vm10, %v1602_v32, %v1598_v35  ;;  %v2613_v54 = vpop.eup %2612  ;;  %v1548_v35 = vmul.f32 0.5, %v3572_v4 }
 0x93f   : > { %v1647_v59 = vadd.f32 1.4214138, %v1643_v7  ;;  %v1636_v33 = vmul.f32 1.0614054, %v1603_v37 }
 0x940   : > { %v1653_v27 = vmul.f32 %v1649_v13, %v3595_v46  ;;  %v1642_v29 = vadd.f32 -1.4531521, %v1638_v22  ;;  %v1547_v13 = vmul.f32 0.5, %v3550_v48  ;;  %v1550_v48 = vmul.f32 0.5, %v3566_v61 }
 0x941   : > { %v1651_v31 = vmul.f32 %v1647_v59, %v3599_v51  ;;  %v1640_v43 = vadd.f32 -1.4531521, %v1636_v33 }
 0x942   : > { %v1657_v34 = vadd.f32 -0.28449672, %v1653_v27  ;;  %v1646_v8 = vmul.f32 %v1642_v29, %v1633_v17  ;;  %v2615_v29 = vpop.eup %2614 }
 0x943   : > { %v1655_v36 = vadd.f32 -0.28449672, %v1651_v31  ;;  %v1644_v24 = vmul.f32 %v1640_v43, %v1603_v37 }
 0x944   : > { %v1661_v39 = vmul.f32 %v1657_v34, %v3595_v46  ;;  %v1650_v40 = vadd.f32 1.4214138, %v1646_v8 }
 0x945   : > { %v1659_v5 = vmul.f32 %v1655_v36, %v3599_v51  ;;  %v1648_v53 = vadd.f32 1.4214138, %v1644_v24 }
 0x946   : > { %v1665_v42 = vadd.f32 0.2548296, %v1661_v39  ;;  %v1654_v44 = vmul.f32 %v1650_v40, %v1633_v17 }
 0x947   : > { %v1663_v45 = vadd.f32 0.2548296, %v1659_v5  ;;  %v1652_v20 = vmul.f32 %v1648_v53, %v1603_v37 }
 0x948   : > { %v1669_v1 = vmul.f32 %v1665_v42, %v3595_v46  ;;  %v1658_v47 = vadd.f32 -0.28449672, %v1654_v44  ;;  %v3086_v46 = vmov 1.0  }
 0x949   : > { %v1667_v25 = vmul.f32 %v1663_v45, %v3599_v51  ;;  %v1561_v62 = vsel %vm1557_vm11, -1.0, %v3086_v46  ;;  %v1559_v3 = vsel %vm1555_vm12, -1.0, %v3086_v46  ;;  %v1656_v6 = vadd.f32 -0.28449672, %v1652_v20 }
 0x94a   : > { %v1689_v21 = vmul.f32 %v2609_v50, %v1669_v1  ;;  %v1662_v56 = vmul.f32 %v1658_v47, %v1633_v17  ;;  %v1562_v27 = vsel %vm1558_vm13, -1.0, %v3086_v46  ;;  %v1560_v32 = vsel %vm1556_vm14, -1.0, %v3086_v46 }
 0x94b   : > { %v1687_v57 = vmul.f32 %v2611_v52, %v1667_v25  ;;  %v1660_v55 = vmul.f32 %v1656_v6, %v1603_v37 }
 0x94c   : > { %v1693_v60 = vsub.f32 1.0, %v1689_v21  ;;  %v1666_v11 = vadd.f32 0.2548296, %v1662_v56 }
 0x94d   : > { %v1691_v63 = vsub.f32 1.0, %v1687_v57  ;;  %v1664_v23 = vadd.f32 0.2548296, %v1660_v55 }
 0x94e   : > { %v1697_v15 = vmul.f32 %v1693_v60, %v1561_v62  ;;  %v1670_v51 = vmul.f32 %v1666_v11, %v1633_v17 }
 0x94f   : > { %v1695_v7 = vmul.f32 %v1691_v63, %v1559_v3  ;;  %v1668_v28 = vmul.f32 %v1664_v23, %v1603_v37 }
 0x950   : > { %v1701_v9 = vadd.f32 1.0, %v1697_v15  ;;  %v1690_v14 = vmul.f32 %v2613_v54, %v1670_v51 }
 0x951   : > { %v1699_v18 = vadd.f32 1.0, %v1695_v7  ;;  %v1688_v0 = vmul.f32 %v2615_v29, %v1668_v28 }
 0x952   : > { %v1705_v22 = vmul.f32 %v1701_v9, %v1549_v49  ;;  %v1694_v59 = vsub.f32 1.0, %v1690_v14 }
 0x953   : > { %v1703_v26 = vmul.f32 %v1699_v18, %v1547_v13  ;;  %v1692_v31 = vsub.f32 1.0, %v1688_v0 }
 0x954   : > { %v1698_v17 = vmul.f32 %v1694_v59, %v1562_v27 }
 0x955   : > { %v1707_v30 = vpack.c.bf16 %v1705_v22, %v1703_v26  ;;  %v1696_v34 = vmul.f32 %v1692_v31, %v1560_v32 }
 0x956   : > { %v1702_v2 = vadd.f32 1.0, %v1698_v17 }
 0x957   : > { %1849 = vmatmul.bf16.vlgmr.msrb.gmra.mxu3 %v1707_v30  ;;  %v1700_v8 = vadd.f32 1.0, %v1696_v34 }
 0x958   : > { %v1706_v36 = vmul.f32 %v1702_v2, %v1550_v48 }
 0x959   : > { %v1704_v37 = vmul.f32 %v1700_v8, %v1548_v35 }
 0x95b   : > { %v1708_v38 = vpack.c.bf16 %v1706_v36, %v1704_v37 }
 0x95d   : > { %1863 = vmatmul.bf16.vlgmr.msra.gmra.mxu0 %v1708_v38 }
 0x9da   : > { %v1850_v39 = vpop.f32.mrf.mxu3  ;;  %v1864_v40 = vpop.f32.mrf.mxu0 }
 0x9db   : > { %v1851_v33 = vadd.f32 %v2569_v12, %v1850_v39 }
 0x9dd   : > { %v1865_v41 = vadd.f32 %v1864_v40, %v1851_v33 }
 0x9df   : > { %v1869_v61 = vadd.f32 %v1865_v41, %v3460_v10 }
 0x9e1   : > { %1871 = vst [vmem:[%s745_s29] sm:$0xff] %v1869_v61 }
 0x9e2   : > { %v1852_v5 = vpop.f32.mrf.mxu3  ;;  %v1866_v42 = vpop.f32.mrf.mxu0 }
 0x9e3   : > { %v1853_v4 = vadd.f32 %v2569_v12, %v1852_v5 }
 0x9e5   : > { %v1867_v43 = vadd.f32 %v1866_v42, %v1853_v4 }
 0x9e7   : > { %v1870_v44 = vadd.f32 %v1867_v43, %v3463_v16 }
 0x9e9   : > { %1872 = vst [vmem:[%s745_s29 + $0x8] sm:$0xff] %v1870_v44 }
 0x9ea   : > { %3003 = shalt.err (!%p3000_p2)
}
 0x9eb   : > { %s3087_s15 = smov 128   ;;  %s3088_s25 = smov 8  }
 0x9ec   : > { %2445 = dma.vmem_to_hbm [thread:$0]  (%p3259_p5), %s1887_s1, 256, %s1889_s27, %s1874_s28, %s3087_s15, %s3087_s15, %s3088_s25  }
 0x9ed PF: > { %s3750_s26 = sld [smem:[#allocation31_spill]]  ;;  %p3752_p1 = scmp.ge.s32.totalorder %s3066_s24, 2 }
 0x9ef   : > { %p2486_p12 = pnand %p3752_p1, %p3263_p4 }
 0x9f1   : > { %p2487_p8 = pneg %p2486_p12 }
 0x9f3   : > { %s1903_s19 = sand.u32 1, %s3750_s26  }
 0x9f4   : > { %s1904_s21 = scalar_lea.sflag [#allocation4], %s1903_s19 }
 0x9f5   : > { %3049 = dma.done.wait (%p2487_p8), %s1904_s21, 256  }
 0x9f6   : > { %3051 = vsyncadd (%p2487_p8), %s1904_s21, 4294967040  ;;  %s3753_s24 = sld [smem:[#allocation33_spill]]  ;;  %s3756_s21 = smov %s3058_s22 }
 0x9f7   : > { %s3754_s29 = sld [smem:[#allocation32_spill]] }
 0x9f8   : > { %s3755_s23 = sld [smem:[#allocation34_spill]] }
 0x9fc   : > { %p37_p6 = scmp.ge.s32.totalorder %s3753_s24, 4  }
 0x9fd   : > { %s3757_s22 = smov %s3754_s29 }
 0x9fe   :  { %39 = sbr.rel (!%p37_p6) target bundleno = 24 (0x18), region = 191 }
 0xa03   :  { %1910 = vsyncpa [#allocation3], 1 }
 0xa04   :  { %1912 = vsyncpa [#allocation3 + $0x1], 1 }
 0xa05   :  { %1913 = vsyncpa [#allocation6], 1 }
 0xa06   :  { %1915 = vsyncpa [#allocation6 + $0x1], 1 }
 0xa07   :  { %1916 = vsyncpa [#allocation9], 1 }
 0xa08   :  { %1917 = vsyncpa [#allocation12], 1 }
 0xa09   :  { %1918 = vsyncpa [#allocation15], 1 }
 0xa0a   :  { %1919 = vsyncpa [#allocation18], 1 }
 0xa0b   :  { %1920 = vsyncpa [#allocation21], 1 }
 0xa0c   :  { %1921 = vsyncpa [#allocation4], 1 }
 0xa0d   :  { %1923 = vsyncpa [#allocation4 + $0x1], 1 }

</bundles_post_ra>
